<compile_context>
chip_gen: v5e
topology: v5e:2x2
jax: 0.10.0
libtpu: 0.0.40
codegen_flags: <defaults>
</compile_context>

<pallas_src>
import functools

import jax
import jax.numpy as jnp
from jax.experimental import pallas as pl
from jax.experimental.pallas import tpu as pltpu


# ----------------------------- shared math -----------------------------------


def _layer_norm(x, gamma, beta, eps=1e-5):
    mean = jnp.mean(x, axis=-1, keepdims=True)
    var = jnp.mean((x - mean) ** 2, axis=-1, keepdims=True)
    return (x - mean) * jax.lax.rsqrt(var + eps) * gamma + beta


# ----------------------------- fused kernel ----------------------------------


def time_encoder_kernel(x_ref, pos_ref, mask_ref, wqkv_ref, wo_ref, w1_ref,
                        w2_ref, vec_ref, o_ref, *, head_num, block_num,
                        atten_dim, ff_dim):
    BT, D = x_ref.shape
    A, F, H = atten_dim, ff_dim, head_num
    hd = A // H

    # time embedding (pos already tiled to (BT, D) host-side).
    x = x_ref[...] + pos_ref[...]              # (BT, D) f32
    mask_bias = mask_ref[...]                  # (BT, BT) f32 block-diag batch mask

    for blk in range(block_num):               # static unroll; weights VMEM-resident
        wqkv = wqkv_ref[blk]                   # (D, 3A) bf16 (Wq/bq pre-scaled 1/sqrt(hd))
        wo = wo_ref[blk]                       # (A, D)  bf16
        w1 = w1_ref[blk]                       # (D, F)  bf16
        w2 = w2_ref[blk]                       # (F, D)  bf16
        vec = vec_ref[blk]                     # (8, Vmax) f32 packed bias / LN vectors

        bqkv = vec[0:1, :3 * A]
        bo = vec[1:2, :D]
        ln1_g = vec[2:3, :D]
        ln1_b = vec[3:4, :D]
        b1 = vec[4:5, :F]
        b2 = vec[5:6, :D]
        ln2_g = vec[6:7, :D]
        ln2_b = vec[7:8, :D]

        # Fused Q/K/V projection: one MXU dot (bf16 operands, f32 accumulate).
        qkv = jnp.dot(x.astype(jnp.bfloat16), wqkv,
                      preferred_element_type=jnp.float32) + bqkv

        # Hoisted K transpose: one (BT, A) -> (A, BT) XLU transpose per block;
        # heads take cheap sublane slices of kT.
        kT = qkv[:, A:2 * A].T                 # (A, BT) f32

        # Multi-head attention over the flattened (BT) rows with a
        # block-diagonal batch mask (BT=32, cross-sample waste negligible).
        ctx_heads = []
        for h in range(H):                     # static, small head count
            q_h = qkv[:, h * hd:(h + 1) * hd]
            kT_h = kT[h * hd:(h + 1) * hd, :]
            v_h = qkv[:, 2 * A + h * hd:2 * A + (h + 1) * hd]
            s = jnp.dot(q_h, kT_h, preferred_element_type=jnp.float32)
            s = s + mask_bias
            s = s - jnp.max(s, axis=-1, keepdims=True)
            p = jnp.exp(s)
            ctx = jnp.dot(p, v_h, preferred_element_type=jnp.float32)
            # normalize the (BT, hd) context, not the (BT, BT) probabilities.
            ctx = ctx * pl.reciprocal(jnp.sum(p, axis=-1, keepdims=True),
                                      approx=True)
            ctx_heads.append(ctx)

        # Single output projection: lane-concat the head contexts, one MXU dot.
        ctx_all = jnp.concatenate(ctx_heads, axis=-1)      # (BT, A)
        attn = jnp.dot(ctx_all.astype(jnp.bfloat16), wo,
                       preferred_element_type=jnp.float32) + bo

        # add & norm, feed-forward, add & norm (post-LN; dropout inert).
        y = _layer_norm(x + attn, ln1_g, ln1_b)
        h1 = jnp.maximum(jnp.dot(y.astype(jnp.bfloat16), w1,
                                 preferred_element_type=jnp.float32) + b1, 0.0)
        h2 = jnp.dot(h1.astype(jnp.bfloat16), w2,
                     preferred_element_type=jnp.float32) + b2
        x = _layer_norm(y + h2, ln2_g, ln2_b)

    o_ref[...] = x.astype(o_ref.dtype)


# ----------------------------- wrapper ---------------------------------------


def _full_spec(shape):
    n = len(shape)
    return pl.BlockSpec(shape, lambda i, _n=n: (0,) * _n)


def time_encoder_forward(x, packed, head_num):
    B, T, D = x.shape
    block_num = packed["wqkv"].shape[0]
    atten_dim = packed["wqkv"].shape[2] // 3
    ff_dim = packed["w1"].shape[2]
    time_num = packed["pos"].shape[0]
    assert T <= time_num, f"T={T} exceeds time_num={time_num}"
    BT = B * T

    # Reshapes / tiny host-side precompute are free in XLA.
    x2 = x.reshape(BT, D)
    pos_bt = jnp.tile(packed["pos"][:T], (B, 1))                   # (BT, D) f32
    row_b = jnp.arange(BT, dtype=jnp.int32) // T
    mask = jnp.where(row_b[:, None] == row_b[None, :],
                     0.0, -1e30).astype(jnp.float32)               # (BT, BT) f32

    kernel = functools.partial(
        time_encoder_kernel, head_num=head_num, block_num=block_num,
        atten_dim=atten_dim, ff_dim=ff_dim)

    args = (x2, pos_bt, mask, packed["wqkv"], packed["wo"], packed["w1"],
            packed["w2"], packed["vec"])
    out2 = pl.pallas_call(
        kernel,
        out_shape=jax.ShapeDtypeStruct((BT, D), x.dtype),
        grid=(1,),
        in_specs=[_full_spec(a.shape) for a in args],
        out_specs=_full_spec((BT, D)),
        compiler_params=pltpu.CompilerParams(
            dimension_semantics=("arbitrary",),
            vmem_limit_bytes=32 * 1024 * 1024),
    )(*args)
    return out2.reshape(B, T, D)


# ----------------------------- parameter handling -----------------------------


def init_params(key, model_dim, ff_dim, atten_dim, time_num, block_num):
    keys = jax.random.split(key, 1 + block_num)

    def lin(k, fan_in, fan_out):
        return (jax.random.normal(k, (fan_in, fan_out), jnp.float32)
                * (1.0 / float(fan_in) ** 0.5))

    params = {
        "pos": jax.random.normal(keys[0], (time_num, model_dim), jnp.float32) * 0.02,
        "blocks": [],
    }
    for i in range(block_num):
        ks = jax.random.split(keys[1 + i], 6)
        params["blocks"].append({
            "wq": lin(ks[0], model_dim, atten_dim),
            "bq": jnp.zeros((1, atten_dim), jnp.float32),
            "wk": lin(ks[1], model_dim, atten_dim),
            "bk": jnp.zeros((1, atten_dim), jnp.float32),
            "wv": lin(ks[2], model_dim, atten_dim),
            "bv": jnp.zeros((1, atten_dim), jnp.float32),
            "wo": lin(ks[3], atten_dim, model_dim),
            "bo": jnp.zeros((1, model_dim), jnp.float32),
            "ln1_g": jnp.ones((1, model_dim), jnp.float32),
            "ln1_b": jnp.zeros((1, model_dim), jnp.float32),
            "w1": lin(ks[4], model_dim, ff_dim),
            "b1": jnp.zeros((1, ff_dim), jnp.float32),
            "w2": lin(ks[5], ff_dim, model_dim),
            "b2": jnp.zeros((1, model_dim), jnp.float32),
            "ln2_g": jnp.ones((1, model_dim), jnp.float32),
            "ln2_b": jnp.zeros((1, model_dim), jnp.float32),
        })
    return params


def pack_params(params, head_num):
    """Stack per-block weights, fuse QKV, fold 1/sqrt(hd) into Wq/bq, store the
    matmul weights as bf16, and pack all bias/LayerNorm vectors into one
    (block_num, 8, Vmax) f32 table."""
    blocks = params["blocks"]
    D, A = blocks[0]["wq"].shape
    F = blocks[0]["w1"].shape[1]
    hd = A // head_num
    scale = 1.0 / float(hd) ** 0.5
    vmax = max(3 * A, F, D)

    def row(v):
        v = v.reshape(1, -1)
        return jnp.pad(v, ((0, 0), (0, vmax - v.shape[1])))

    wqkv, wo, w1, w2, vec = [], [], [], [], []
    for bp in blocks:
        wqkv.append(jnp.concatenate([bp["wq"] * scale, bp["wk"], bp["wv"]],
                                    axis=1).astype(jnp.bfloat16))
        wo.append(bp["wo"].astype(jnp.bfloat16))
        w1.append(bp["w1"].astype(jnp.bfloat16))
        w2.append(bp["w2"].astype(jnp.bfloat16))
        bqkv = jnp.concatenate([bp["bq"] * scale, bp["bk"], bp["bv"]], axis=1)
        vec.append(jnp.concatenate(
            [row(bqkv), row(bp["bo"]), row(bp["ln1_g"]), row(bp["ln1_b"]),
             row(bp["b1"]), row(bp["b2"]), row(bp["ln2_g"]), row(bp["ln2_b"])],
            axis=0))
    return {
        "pos": params["pos"],
        "wqkv": jnp.stack(wqkv), "wo": jnp.stack(wo),
        "w1": jnp.stack(w1), "w2": jnp.stack(w2), "vec": jnp.stack(vec),
    }


# ----------------------------- pure-JAX reference -----------------------------


def time_encoder_reference(x, params, head_num):
    B, T, D = x.shape
    x = x + params["pos"][:T][None, :, :]
    for bp in params["blocks"]:
        A = bp["wq"].shape[1]
        hd = A // head_num
        scale = 1.0 / float(hd) ** 0.5
        x2 = x.reshape(B * T, D)
        q = (x2 @ bp["wq"] + bp["bq"]).reshape(B, T, head_num, hd)
        k = (x2 @ bp["wk"] + bp["bk"]).reshape(B, T, head_num, hd)
        v = (x2 @ bp["wv"] + bp["bv"]).reshape(B, T, head_num, hd)
        s = jnp.einsum("bthd,bshd->bhts", q, k) * scale
        p = jax.nn.softmax(s, axis=-1)
        ctx = jnp.einsum("bhts,bshd->bthd", p, v).reshape(B * T, A)
        attn = ctx @ bp["wo"] + bp["bo"]
        y = _layer_norm(x2 + attn, bp["ln1_g"], bp["ln1_b"])
        h1 = jax.nn.relu(y @ bp["w1"] + bp["b1"])
        h2 = h1 @ bp["w2"] + bp["b2"]
        x = _layer_norm(y + h2, bp["ln2_g"], bp["ln2_b"]).reshape(B, T, D)
    return x


# ----------------------------- main -------------------------------------------


if __name__ == "__main__":
    B, T = 2, 16
    model_dim, ff_dim, atten_dim = 32, 64, 32
    time_num, block_num, head_num, dropout = 32, 2, 4, 0.1  # dropout inert (inference)

    key = jax.random.PRNGKey(0)
    kx, kp = jax.random.split(key)
    x = jax.random.normal(kx, (B, T, model_dim), jnp.float32)
    params = init_params(kp, model_dim, ff_dim, atten_dim, time_num, block_num)
    packed = pack_params(params, head_num)

    out = time_encoder_forward(x, packed, head_num)
    out = jax.block_until_ready(out)
    assert out.shape == (B, T, model_dim)
    assert bool(jnp.all(jnp.isfinite(out)))

    ref = time_encoder_reference(x, params, head_num)
    max_err = float(jnp.max(jnp.abs(out - ref)))
    assert max_err < 5e-2, f"mismatch vs pure-JAX reference: {max_err}"

    print("KERNEL_OK")
</pallas_src>

<mosaic_0001>
module attributes {stable_mosaic.version = 11 : i64} {
  func.func @time_encoder_kernel(%arg0: i32, %arg1: memref<32x32xf32, #tpu.memory_space<vmem>>, %arg2: memref<32x32xf32, #tpu.memory_space<vmem>>, %arg3: memref<32x32xf32, #tpu.memory_space<vmem>>, %arg4: memref<2x32x96xbf16, #tpu.memory_space<vmem>>, %arg5: memref<2x32x32xbf16, #tpu.memory_space<vmem>>, %arg6: memref<2x32x64xbf16, #tpu.memory_space<vmem>>, %arg7: memref<2x64x32xbf16, #tpu.memory_space<vmem>>, %arg8: memref<2x8x96xf32, #tpu.memory_space<vmem>>, %arg9: memref<32x32xf32, #tpu.memory_space<vmem>>) attributes {dimension_semantics = [#tpu.dimension_semantics<arbitrary>], iteration_bounds = array<i64: 1>, scalar_prefetch = 0 : i64, scratch_operands = 0 : i64, tpu.core_type = #tpu.core_type<tc>, window_params = [{pipeline_mode = #tpu.pipeline_mode<synchronous>, transform_indices = @transform_0, window_bounds = array<i64: 32, 32>}, {pipeline_mode = #tpu.pipeline_mode<synchronous>, transform_indices = @transform_1, window_bounds = array<i64: 32, 32>}, {pipeline_mode = #tpu.pipeline_mode<synchronous>, transform_indices = @transform_2, window_bounds = array<i64: 32, 32>}, {pipeline_mode = #tpu.pipeline_mode<synchronous>, transform_indices = @transform_3, window_bounds = array<i64: 2, 32, 96>}, {pipeline_mode = #tpu.pipeline_mode<synchronous>, transform_indices = @transform_4, window_bounds = array<i64: 2, 32, 32>}, {pipeline_mode = #tpu.pipeline_mode<synchronous>, transform_indices = @transform_5, window_bounds = array<i64: 2, 32, 64>}, {pipeline_mode = #tpu.pipeline_mode<synchronous>, transform_indices = @transform_6, window_bounds = array<i64: 2, 64, 32>}, {pipeline_mode = #tpu.pipeline_mode<synchronous>, transform_indices = @transform_7, window_bounds = array<i64: 2, 8, 96>}, {pipeline_mode = #tpu.pipeline_mode<synchronous>, transform_indices = @transform_8, window_bounds = array<i64: 32, 32>}]} {
    %c0 = arith.constant 0 : index
    %c0_0 = arith.constant 0 : index
    %0 = vector.load %arg1[%c0, %c0_0] : memref<32x32xf32, #tpu.memory_space<vmem>>, vector<32x32xf32>
    %c0_1 = arith.constant 0 : index
    %c0_2 = arith.constant 0 : index
    %1 = vector.load %arg2[%c0_1, %c0_2] : memref<32x32xf32, #tpu.memory_space<vmem>>, vector<32x32xf32>
    %2 = arith.addf %0, %1 : vector<32x32xf32>
    %c0_3 = arith.constant 0 : index
    %c0_4 = arith.constant 0 : index
    %3 = vector.load %arg3[%c0_3, %c0_4] : memref<32x32xf32, #tpu.memory_space<vmem>>, vector<32x32xf32>
    %c0_5 = arith.constant 0 : index
    %c0_6 = arith.constant 0 : index
    %c0_7 = arith.constant 0 : index
    %4 = vector.load %arg4[%c0_5, %c0_6, %c0_7] : memref<2x32x96xbf16, #tpu.memory_space<vmem>>, vector<1x32x96xbf16>
    %5 = vector.shape_cast %4 : vector<1x32x96xbf16> to vector<32x96xbf16>
    %c0_8 = arith.constant 0 : index
    %c0_9 = arith.constant 0 : index
    %c0_10 = arith.constant 0 : index
    %6 = vector.load %arg5[%c0_8, %c0_9, %c0_10] : memref<2x32x32xbf16, #tpu.memory_space<vmem>>, vector<1x32x32xbf16>
    %7 = vector.shape_cast %6 : vector<1x32x32xbf16> to vector<32x32xbf16>
    %c0_11 = arith.constant 0 : index
    %c0_12 = arith.constant 0 : index
    %c0_13 = arith.constant 0 : index
    %8 = vector.load %arg6[%c0_11, %c0_12, %c0_13] : memref<2x32x64xbf16, #tpu.memory_space<vmem>>, vector<1x32x64xbf16>
    %9 = vector.shape_cast %8 : vector<1x32x64xbf16> to vector<32x64xbf16>
    %c0_14 = arith.constant 0 : index
    %c0_15 = arith.constant 0 : index
    %c0_16 = arith.constant 0 : index
    %10 = vector.load %arg7[%c0_14, %c0_15, %c0_16] : memref<2x64x32xbf16, #tpu.memory_space<vmem>>, vector<1x64x32xbf16>
    %11 = vector.shape_cast %10 : vector<1x64x32xbf16> to vector<64x32xbf16>
    %c0_17 = arith.constant 0 : index
    %c0_18 = arith.constant 0 : index
    %c0_19 = arith.constant 0 : index
    %12 = vector.load %arg8[%c0_17, %c0_18, %c0_19] : memref<2x8x96xf32, #tpu.memory_space<vmem>>, vector<1x8x96xf32>
    %13 = vector.shape_cast %12 : vector<1x8x96xf32> to vector<8x96xf32>
    %14 = vector.extract_strided_slice %13 {offsets = [0, 0], sizes = [1, 96], strides = [1, 1]} : vector<8x96xf32> to vector<1x96xf32>
    %15 = vector.extract_strided_slice %13 {offsets = [1, 0], sizes = [1, 32], strides = [1, 1]} : vector<8x96xf32> to vector<1x32xf32>
    %16 = vector.extract_strided_slice %13 {offsets = [2, 0], sizes = [1, 32], strides = [1, 1]} : vector<8x96xf32> to vector<1x32xf32>
    %17 = vector.extract_strided_slice %13 {offsets = [3, 0], sizes = [1, 32], strides = [1, 1]} : vector<8x96xf32> to vector<1x32xf32>
    %18 = vector.extract_strided_slice %13 {offsets = [4, 0], sizes = [1, 64], strides = [1, 1]} : vector<8x96xf32> to vector<1x64xf32>
    %19 = vector.extract_strided_slice %13 {offsets = [5, 0], sizes = [1, 32], strides = [1, 1]} : vector<8x96xf32> to vector<1x32xf32>
    %20 = vector.extract_strided_slice %13 {offsets = [6, 0], sizes = [1, 32], strides = [1, 1]} : vector<8x96xf32> to vector<1x32xf32>
    %21 = vector.extract_strided_slice %13 {offsets = [7, 0], sizes = [1, 32], strides = [1, 1]} : vector<8x96xf32> to vector<1x32xf32>
    %22 = arith.truncf %2 : vector<32x32xf32> to vector<32x32xbf16>
    %cst = arith.constant dense<0.000000e+00> : vector<32x96xf32>
    %23 = tpu.matmul %22, %5, %cst {dimension_numbers = #tpu.dot_dimension_numbers<[1], [0], [0], [1], [0, 0, 1, 1], [], []>} : vector<32x32xbf16>, vector<32x96xbf16>, vector<32x96xf32> -> vector<32x96xf32>
    %24 = vector.broadcast %14 : vector<1x96xf32> to vector<32x96xf32>
    %25 = arith.addf %23, %24 : vector<32x96xf32>
    %26 = vector.extract_strided_slice %25 {offsets = [0, 32], sizes = [32, 32], strides = [1, 1]} : vector<32x96xf32> to vector<32x32xf32>
    %27 = tpu.transpose %26, [1, 0] : vector<32x32xf32> -> vector<32x32xf32>
    %28 = vector.extract_strided_slice %25 {offsets = [0, 0], sizes = [32, 8], strides = [1, 1]} : vector<32x96xf32> to vector<32x8xf32>
    %29 = vector.extract_strided_slice %27 {offsets = [0, 0], sizes = [8, 32], strides = [1, 1]} : vector<32x32xf32> to vector<8x32xf32>
    %30 = vector.extract_strided_slice %25 {offsets = [0, 64], sizes = [32, 8], strides = [1, 1]} : vector<32x96xf32> to vector<32x8xf32>
    %cst_20 = arith.constant dense<0.000000e+00> : vector<32x32xf32>
    %31 = tpu.matmul %28, %29, %cst_20 {dimension_numbers = #tpu.dot_dimension_numbers<[1], [0], [0], [1], [0, 0, 1, 1], [], []>} : vector<32x8xf32>, vector<8x32xf32>, vector<32x32xf32> -> vector<32x32xf32>
    %32 = arith.addf %31, %3 : vector<32x32xf32>
    %cst_21 = arith.constant dense<0xFF800000> : vector<32xf32>
    %33 = vector.multi_reduction <maximumf>, %32, %cst_21 [1] : vector<32x32xf32> to vector<32xf32>
    %34 = vector.shape_cast %33 : vector<32xf32> to vector<32x1xf32>
    %35 = vector.broadcast %34 : vector<32x1xf32> to vector<32x32xf32>
    %36 = arith.subf %32, %35 : vector<32x32xf32>
    %37 = math.exp %36 : vector<32x32xf32>
    %cst_22 = arith.constant dense<0.000000e+00> : vector<32x8xf32>
    %38 = tpu.matmul %37, %30, %cst_22 {dimension_numbers = #tpu.dot_dimension_numbers<[1], [0], [0], [1], [0, 0, 1, 1], [], []>} : vector<32x32xf32>, vector<32x8xf32>, vector<32x8xf32> -> vector<32x8xf32>
    %cst_23 = arith.constant dense<0.000000e+00> : vector<32xf32>
    %39 = vector.multi_reduction <add>, %37, %cst_23 [1] : vector<32x32xf32> to vector<32xf32>
    %40 = vector.shape_cast %39 : vector<32xf32> to vector<32x1xf32>
    %41 = tpu.reciprocal %40 {approx = true} : vector<32x1xf32> -> vector<32x1xf32>
    %42 = vector.broadcast %41 : vector<32x1xf32> to vector<32x8xf32>
    %43 = arith.mulf %38, %42 : vector<32x8xf32>
    %44 = vector.extract_strided_slice %25 {offsets = [0, 8], sizes = [32, 8], strides = [1, 1]} : vector<32x96xf32> to vector<32x8xf32>
    %45 = vector.extract_strided_slice %27 {offsets = [8, 0], sizes = [8, 32], strides = [1, 1]} : vector<32x32xf32> to vector<8x32xf32>
    %46 = vector.extract_strided_slice %25 {offsets = [0, 72], sizes = [32, 8], strides = [1, 1]} : vector<32x96xf32> to vector<32x8xf32>
    %cst_24 = arith.constant dense<0.000000e+00> : vector<32x32xf32>
    %47 = tpu.matmul %44, %45, %cst_24 {dimension_numbers = #tpu.dot_dimension_numbers<[1], [0], [0], [1], [0, 0, 1, 1], [], []>} : vector<32x8xf32>, vector<8x32xf32>, vector<32x32xf32> -> vector<32x32xf32>
    %48 = arith.addf %47, %3 : vector<32x32xf32>
    %cst_25 = arith.constant dense<0xFF800000> : vector<32xf32>
    %49 = vector.multi_reduction <maximumf>, %48, %cst_25 [1] : vector<32x32xf32> to vector<32xf32>
    %50 = vector.shape_cast %49 : vector<32xf32> to vector<32x1xf32>
    %51 = vector.broadcast %50 : vector<32x1xf32> to vector<32x32xf32>
    %52 = arith.subf %48, %51 : vector<32x32xf32>
    %53 = math.exp %52 : vector<32x32xf32>
    %cst_26 = arith.constant dense<0.000000e+00> : vector<32x8xf32>
    %54 = tpu.matmul %53, %46, %cst_26 {dimension_numbers = #tpu.dot_dimension_numbers<[1], [0], [0], [1], [0, 0, 1, 1], [], []>} : vector<32x32xf32>, vector<32x8xf32>, vector<32x8xf32> -> vector<32x8xf32>
    %cst_27 = arith.constant dense<0.000000e+00> : vector<32xf32>
    %55 = vector.multi_reduction <add>, %53, %cst_27 [1] : vector<32x32xf32> to vector<32xf32>
    %56 = vector.shape_cast %55 : vector<32xf32> to vector<32x1xf32>
    %57 = tpu.reciprocal %56 {approx = true} : vector<32x1xf32> -> vector<32x1xf32>
    %58 = vector.broadcast %57 : vector<32x1xf32> to vector<32x8xf32>
    %59 = arith.mulf %54, %58 : vector<32x8xf32>
    %60 = vector.extract_strided_slice %25 {offsets = [0, 16], sizes = [32, 8], strides = [1, 1]} : vector<32x96xf32> to vector<32x8xf32>
    %61 = vector.extract_strided_slice %27 {offsets = [16, 0], sizes = [8, 32], strides = [1, 1]} : vector<32x32xf32> to vector<8x32xf32>
    %62 = vector.extract_strided_slice %25 {offsets = [0, 80], sizes = [32, 8], strides = [1, 1]} : vector<32x96xf32> to vector<32x8xf32>
    %cst_28 = arith.constant dense<0.000000e+00> : vector<32x32xf32>
    %63 = tpu.matmul %60, %61, %cst_28 {dimension_numbers = #tpu.dot_dimension_numbers<[1], [0], [0], [1], [0, 0, 1, 1], [], []>} : vector<32x8xf32>, vector<8x32xf32>, vector<32x32xf32> -> vector<32x32xf32>
    %64 = arith.addf %63, %3 : vector<32x32xf32>
    %cst_29 = arith.constant dense<0xFF800000> : vector<32xf32>
    %65 = vector.multi_reduction <maximumf>, %64, %cst_29 [1] : vector<32x32xf32> to vector<32xf32>
    %66 = vector.shape_cast %65 : vector<32xf32> to vector<32x1xf32>
    %67 = vector.broadcast %66 : vector<32x1xf32> to vector<32x32xf32>
    %68 = arith.subf %64, %67 : vector<32x32xf32>
    %69 = math.exp %68 : vector<32x32xf32>
    %cst_30 = arith.constant dense<0.000000e+00> : vector<32x8xf32>
    %70 = tpu.matmul %69, %62, %cst_30 {dimension_numbers = #tpu.dot_dimension_numbers<[1], [0], [0], [1], [0, 0, 1, 1], [], []>} : vector<32x32xf32>, vector<32x8xf32>, vector<32x8xf32> -> vector<32x8xf32>
    %cst_31 = arith.constant dense<0.000000e+00> : vector<32xf32>
    %71 = vector.multi_reduction <add>, %69, %cst_31 [1] : vector<32x32xf32> to vector<32xf32>
    %72 = vector.shape_cast %71 : vector<32xf32> to vector<32x1xf32>
    %73 = tpu.reciprocal %72 {approx = true} : vector<32x1xf32> -> vector<32x1xf32>
    %74 = vector.broadcast %73 : vector<32x1xf32> to vector<32x8xf32>
    %75 = arith.mulf %70, %74 : vector<32x8xf32>
    %76 = vector.extract_strided_slice %25 {offsets = [0, 24], sizes = [32, 8], strides = [1, 1]} : vector<32x96xf32> to vector<32x8xf32>
    %77 = vector.extract_strided_slice %27 {offsets = [24, 0], sizes = [8, 32], strides = [1, 1]} : vector<32x32xf32> to vector<8x32xf32>
    %78 = vector.extract_strided_slice %25 {offsets = [0, 88], sizes = [32, 8], strides = [1, 1]} : vector<32x96xf32> to vector<32x8xf32>
    %cst_32 = arith.constant dense<0.000000e+00> : vector<32x32xf32>
    %79 = tpu.matmul %76, %77, %cst_32 {dimension_numbers = #tpu.dot_dimension_numbers<[1], [0], [0], [1], [0, 0, 1, 1], [], []>} : vector<32x8xf32>, vector<8x32xf32>, vector<32x32xf32> -> vector<32x32xf32>
    %80 = arith.addf %79, %3 : vector<32x32xf32>
    %cst_33 = arith.constant dense<0xFF800000> : vector<32xf32>
    %81 = vector.multi_reduction <maximumf>, %80, %cst_33 [1] : vector<32x32xf32> to vector<32xf32>
    %82 = vector.shape_cast %81 : vector<32xf32> to vector<32x1xf32>
    %83 = vector.broadcast %82 : vector<32x1xf32> to vector<32x32xf32>
    %84 = arith.subf %80, %83 : vector<32x32xf32>
    %85 = math.exp %84 : vector<32x32xf32>
    %cst_34 = arith.constant dense<0.000000e+00> : vector<32x8xf32>
    %86 = tpu.matmul %85, %78, %cst_34 {dimension_numbers = #tpu.dot_dimension_numbers<[1], [0], [0], [1], [0, 0, 1, 1], [], []>} : vector<32x32xf32>, vector<32x8xf32>, vector<32x8xf32> -> vector<32x8xf32>
    %cst_35 = arith.constant dense<0.000000e+00> : vector<32xf32>
    %87 = vector.multi_reduction <add>, %85, %cst_35 [1] : vector<32x32xf32> to vector<32xf32>
    %88 = vector.shape_cast %87 : vector<32xf32> to vector<32x1xf32>
    %89 = tpu.reciprocal %88 {approx = true} : vector<32x1xf32> -> vector<32x1xf32>
    %90 = vector.broadcast %89 : vector<32x1xf32> to vector<32x8xf32>
    %91 = arith.mulf %86, %90 : vector<32x8xf32>
    %92 = tpu.concatenate %43, %59, %75, %91 in 1 : vector<32x8xf32>, vector<32x8xf32>, vector<32x8xf32>, vector<32x8xf32> -> vector<32x32xf32>
    %93 = arith.truncf %92 : vector<32x32xf32> to vector<32x32xbf16>
    %cst_36 = arith.constant dense<0.000000e+00> : vector<32x32xf32>
    %94 = tpu.matmul %93, %7, %cst_36 {dimension_numbers = #tpu.dot_dimension_numbers<[1], [0], [0], [1], [0, 0, 1, 1], [], []>} : vector<32x32xbf16>, vector<32x32xbf16>, vector<32x32xf32> -> vector<32x32xf32>
    %95 = vector.broadcast %15 : vector<1x32xf32> to vector<32x32xf32>
    %96 = arith.addf %94, %95 : vector<32x32xf32>
    %97 = arith.addf %2, %96 : vector<32x32xf32>
    %cst_37 = arith.constant dense<0.000000e+00> : vector<32xf32>
    %98 = vector.multi_reduction <add>, %97, %cst_37 [1] : vector<32x32xf32> to vector<32xf32>
    %99 = vector.shape_cast %98 : vector<32xf32> to vector<32x1xf32>
    %cst_38 = arith.constant 3.200000e+01 : f32
    %100 = vector.broadcast %cst_38 : f32 to vector<32x1xf32>
    %101 = arith.divf %99, %100 : vector<32x1xf32>
    %102 = vector.broadcast %101 : vector<32x1xf32> to vector<32x32xf32>
    %103 = arith.subf %97, %102 : vector<32x32xf32>
    %104 = arith.mulf %103, %103 : vector<32x32xf32>
    %cst_39 = arith.constant dense<0.000000e+00> : vector<32xf32>
    %105 = vector.multi_reduction <add>, %104, %cst_39 [1] : vector<32x32xf32> to vector<32xf32>
    %106 = vector.shape_cast %105 : vector<32xf32> to vector<32x1xf32>
    %cst_40 = arith.constant 3.200000e+01 : f32
    %107 = vector.broadcast %cst_40 : f32 to vector<32x1xf32>
    %108 = arith.divf %106, %107 : vector<32x1xf32>
    %109 = vector.broadcast %101 : vector<32x1xf32> to vector<32x32xf32>
    %110 = arith.subf %97, %109 : vector<32x32xf32>
    %cst_41 = arith.constant 9.99999974E-6 : f32
    %111 = vector.broadcast %cst_41 : f32 to vector<32x1xf32>
    %112 = arith.addf %108, %111 : vector<32x1xf32>
    %113 = math.rsqrt %112 : vector<32x1xf32>
    %114 = vector.broadcast %113 : vector<32x1xf32> to vector<32x32xf32>
    %115 = arith.mulf %110, %114 : vector<32x32xf32>
    %116 = vector.broadcast %16 : vector<1x32xf32> to vector<32x32xf32>
    %117 = arith.mulf %115, %116 : vector<32x32xf32>
    %118 = vector.broadcast %17 : vector<1x32xf32> to vector<32x32xf32>
    %119 = arith.addf %117, %118 : vector<32x32xf32>
    %120 = arith.truncf %119 : vector<32x32xf32> to vector<32x32xbf16>
    %cst_42 = arith.constant dense<0.000000e+00> : vector<32x64xf32>
    %121 = tpu.matmul %120, %9, %cst_42 {dimension_numbers = #tpu.dot_dimension_numbers<[1], [0], [0], [1], [0, 0, 1, 1], [], []>} : vector<32x32xbf16>, vector<32x64xbf16>, vector<32x64xf32> -> vector<32x64xf32>
    %122 = vector.broadcast %18 : vector<1x64xf32> to vector<32x64xf32>
    %123 = arith.addf %121, %122 : vector<32x64xf32>
    %cst_43 = arith.constant 0.000000e+00 : f32
    %124 = vector.broadcast %cst_43 : f32 to vector<32x64xf32>
    %125 = arith.maximumf %123, %124 : vector<32x64xf32>
    %126 = arith.truncf %125 : vector<32x64xf32> to vector<32x64xbf16>
    %cst_44 = arith.constant dense<0.000000e+00> : vector<32x32xf32>
    %127 = tpu.matmul %126, %11, %cst_44 {dimension_numbers = #tpu.dot_dimension_numbers<[1], [0], [0], [1], [0, 0, 1, 1], [], []>} : vector<32x64xbf16>, vector<64x32xbf16>, vector<32x32xf32> -> vector<32x32xf32>
    %128 = vector.broadcast %19 : vector<1x32xf32> to vector<32x32xf32>
    %129 = arith.addf %127, %128 : vector<32x32xf32>
    %130 = arith.addf %119, %129 : vector<32x32xf32>
    %cst_45 = arith.constant dense<0.000000e+00> : vector<32xf32>
    %131 = vector.multi_reduction <add>, %130, %cst_45 [1] : vector<32x32xf32> to vector<32xf32>
    %132 = vector.shape_cast %131 : vector<32xf32> to vector<32x1xf32>
    %cst_46 = arith.constant 3.200000e+01 : f32
    %133 = vector.broadcast %cst_46 : f32 to vector<32x1xf32>
    %134 = arith.divf %132, %133 : vector<32x1xf32>
    %135 = vector.broadcast %134 : vector<32x1xf32> to vector<32x32xf32>
    %136 = arith.subf %130, %135 : vector<32x32xf32>
    %137 = arith.mulf %136, %136 : vector<32x32xf32>
    %cst_47 = arith.constant dense<0.000000e+00> : vector<32xf32>
    %138 = vector.multi_reduction <add>, %137, %cst_47 [1] : vector<32x32xf32> to vector<32xf32>
    %139 = vector.shape_cast %138 : vector<32xf32> to vector<32x1xf32>
    %cst_48 = arith.constant 3.200000e+01 : f32
    %140 = vector.broadcast %cst_48 : f32 to vector<32x1xf32>
    %141 = arith.divf %139, %140 : vector<32x1xf32>
    %142 = vector.broadcast %134 : vector<32x1xf32> to vector<32x32xf32>
    %143 = arith.subf %130, %142 : vector<32x32xf32>
    %cst_49 = arith.constant 9.99999974E-6 : f32
    %144 = vector.broadcast %cst_49 : f32 to vector<32x1xf32>
    %145 = arith.addf %141, %144 : vector<32x1xf32>
    %146 = math.rsqrt %145 : vector<32x1xf32>
    %147 = vector.broadcast %146 : vector<32x1xf32> to vector<32x32xf32>
    %148 = arith.mulf %143, %147 : vector<32x32xf32>
    %149 = vector.broadcast %20 : vector<1x32xf32> to vector<32x32xf32>
    %150 = arith.mulf %148, %149 : vector<32x32xf32>
    %151 = vector.broadcast %21 : vector<1x32xf32> to vector<32x32xf32>
    %152 = arith.addf %150, %151 : vector<32x32xf32>
    %c1 = arith.constant 1 : index
    %c0_50 = arith.constant 0 : index
    %c0_51 = arith.constant 0 : index
    %153 = vector.load %arg4[%c1, %c0_50, %c0_51] : memref<2x32x96xbf16, #tpu.memory_space<vmem>>, vector<1x32x96xbf16>
    %154 = vector.shape_cast %153 : vector<1x32x96xbf16> to vector<32x96xbf16>
    %c1_52 = arith.constant 1 : index
    %c0_53 = arith.constant 0 : index
    %c0_54 = arith.constant 0 : index
    %155 = vector.load %arg5[%c1_52, %c0_53, %c0_54] : memref<2x32x32xbf16, #tpu.memory_space<vmem>>, vector<1x32x32xbf16>
    %156 = vector.shape_cast %155 : vector<1x32x32xbf16> to vector<32x32xbf16>
    %c1_55 = arith.constant 1 : index
    %c0_56 = arith.constant 0 : index
    %c0_57 = arith.constant 0 : index
    %157 = vector.load %arg6[%c1_55, %c0_56, %c0_57] : memref<2x32x64xbf16, #tpu.memory_space<vmem>>, vector<1x32x64xbf16>
    %158 = vector.shape_cast %157 : vector<1x32x64xbf16> to vector<32x64xbf16>
    %c1_58 = arith.constant 1 : index
    %c0_59 = arith.constant 0 : index
    %c0_60 = arith.constant 0 : index
    %159 = vector.load %arg7[%c1_58, %c0_59, %c0_60] : memref<2x64x32xbf16, #tpu.memory_space<vmem>>, vector<1x64x32xbf16>
    %160 = vector.shape_cast %159 : vector<1x64x32xbf16> to vector<64x32xbf16>
    %c1_61 = arith.constant 1 : index
    %c0_62 = arith.constant 0 : index
    %c0_63 = arith.constant 0 : index
    %161 = vector.load %arg8[%c1_61, %c0_62, %c0_63] : memref<2x8x96xf32, #tpu.memory_space<vmem>>, vector<1x8x96xf32>
    %162 = vector.shape_cast %161 : vector<1x8x96xf32> to vector<8x96xf32>
    %163 = vector.extract_strided_slice %162 {offsets = [0, 0], sizes = [1, 96], strides = [1, 1]} : vector<8x96xf32> to vector<1x96xf32>
    %164 = vector.extract_strided_slice %162 {offsets = [1, 0], sizes = [1, 32], strides = [1, 1]} : vector<8x96xf32> to vector<1x32xf32>
    %165 = vector.extract_strided_slice %162 {offsets = [2, 0], sizes = [1, 32], strides = [1, 1]} : vector<8x96xf32> to vector<1x32xf32>
    %166 = vector.extract_strided_slice %162 {offsets = [3, 0], sizes = [1, 32], strides = [1, 1]} : vector<8x96xf32> to vector<1x32xf32>
    %167 = vector.extract_strided_slice %162 {offsets = [4, 0], sizes = [1, 64], strides = [1, 1]} : vector<8x96xf32> to vector<1x64xf32>
    %168 = vector.extract_strided_slice %162 {offsets = [5, 0], sizes = [1, 32], strides = [1, 1]} : vector<8x96xf32> to vector<1x32xf32>
    %169 = vector.extract_strided_slice %162 {offsets = [6, 0], sizes = [1, 32], strides = [1, 1]} : vector<8x96xf32> to vector<1x32xf32>
    %170 = vector.extract_strided_slice %162 {offsets = [7, 0], sizes = [1, 32], strides = [1, 1]} : vector<8x96xf32> to vector<1x32xf32>
    %171 = arith.truncf %152 : vector<32x32xf32> to vector<32x32xbf16>
    %cst_64 = arith.constant dense<0.000000e+00> : vector<32x96xf32>
    %172 = tpu.matmul %171, %154, %cst_64 {dimension_numbers = #tpu.dot_dimension_numbers<[1], [0], [0], [1], [0, 0, 1, 1], [], []>} : vector<32x32xbf16>, vector<32x96xbf16>, vector<32x96xf32> -> vector<32x96xf32>
    %173 = vector.broadcast %163 : vector<1x96xf32> to vector<32x96xf32>
    %174 = arith.addf %172, %173 : vector<32x96xf32>
    %175 = vector.extract_strided_slice %174 {offsets = [0, 32], sizes = [32, 32], strides = [1, 1]} : vector<32x96xf32> to vector<32x32xf32>
    %176 = tpu.transpose %175, [1, 0] : vector<32x32xf32> -> vector<32x32xf32>
    %177 = vector.extract_strided_slice %174 {offsets = [0, 0], sizes = [32, 8], strides = [1, 1]} : vector<32x96xf32> to vector<32x8xf32>
    %178 = vector.extract_strided_slice %176 {offsets = [0, 0], sizes = [8, 32], strides = [1, 1]} : vector<32x32xf32> to vector<8x32xf32>
    %179 = vector.extract_strided_slice %174 {offsets = [0, 64], sizes = [32, 8], strides = [1, 1]} : vector<32x96xf32> to vector<32x8xf32>
    %cst_65 = arith.constant dense<0.000000e+00> : vector<32x32xf32>
    %180 = tpu.matmul %177, %178, %cst_65 {dimension_numbers = #tpu.dot_dimension_numbers<[1], [0], [0], [1], [0, 0, 1, 1], [], []>} : vector<32x8xf32>, vector<8x32xf32>, vector<32x32xf32> -> vector<32x32xf32>
    %181 = arith.addf %180, %3 : vector<32x32xf32>
    %cst_66 = arith.constant dense<0xFF800000> : vector<32xf32>
    %182 = vector.multi_reduction <maximumf>, %181, %cst_66 [1] : vector<32x32xf32> to vector<32xf32>
    %183 = vector.shape_cast %182 : vector<32xf32> to vector<32x1xf32>
    %184 = vector.broadcast %183 : vector<32x1xf32> to vector<32x32xf32>
    %185 = arith.subf %181, %184 : vector<32x32xf32>
    %186 = math.exp %185 : vector<32x32xf32>
    %cst_67 = arith.constant dense<0.000000e+00> : vector<32x8xf32>
    %187 = tpu.matmul %186, %179, %cst_67 {dimension_numbers = #tpu.dot_dimension_numbers<[1], [0], [0], [1], [0, 0, 1, 1], [], []>} : vector<32x32xf32>, vector<32x8xf32>, vector<32x8xf32> -> vector<32x8xf32>
    %cst_68 = arith.constant dense<0.000000e+00> : vector<32xf32>
    %188 = vector.multi_reduction <add>, %186, %cst_68 [1] : vector<32x32xf32> to vector<32xf32>
    %189 = vector.shape_cast %188 : vector<32xf32> to vector<32x1xf32>
    %190 = tpu.reciprocal %189 {approx = true} : vector<32x1xf32> -> vector<32x1xf32>
    %191 = vector.broadcast %190 : vector<32x1xf32> to vector<32x8xf32>
    %192 = arith.mulf %187, %191 : vector<32x8xf32>
    %193 = vector.extract_strided_slice %174 {offsets = [0, 8], sizes = [32, 8], strides = [1, 1]} : vector<32x96xf32> to vector<32x8xf32>
    %194 = vector.extract_strided_slice %176 {offsets = [8, 0], sizes = [8, 32], strides = [1, 1]} : vector<32x32xf32> to vector<8x32xf32>
    %195 = vector.extract_strided_slice %174 {offsets = [0, 72], sizes = [32, 8], strides = [1, 1]} : vector<32x96xf32> to vector<32x8xf32>
    %cst_69 = arith.constant dense<0.000000e+00> : vector<32x32xf32>
    %196 = tpu.matmul %193, %194, %cst_69 {dimension_numbers = #tpu.dot_dimension_numbers<[1], [0], [0], [1], [0, 0, 1, 1], [], []>} : vector<32x8xf32>, vector<8x32xf32>, vector<32x32xf32> -> vector<32x32xf32>
    %197 = arith.addf %196, %3 : vector<32x32xf32>
    %cst_70 = arith.constant dense<0xFF800000> : vector<32xf32>
    %198 = vector.multi_reduction <maximumf>, %197, %cst_70 [1] : vector<32x32xf32> to vector<32xf32>
    %199 = vector.shape_cast %198 : vector<32xf32> to vector<32x1xf32>
    %200 = vector.broadcast %199 : vector<32x1xf32> to vector<32x32xf32>
    %201 = arith.subf %197, %200 : vector<32x32xf32>
    %202 = math.exp %201 : vector<32x32xf32>
    %cst_71 = arith.constant dense<0.000000e+00> : vector<32x8xf32>
    %203 = tpu.matmul %202, %195, %cst_71 {dimension_numbers = #tpu.dot_dimension_numbers<[1], [0], [0], [1], [0, 0, 1, 1], [], []>} : vector<32x32xf32>, vector<32x8xf32>, vector<32x8xf32> -> vector<32x8xf32>
    %cst_72 = arith.constant dense<0.000000e+00> : vector<32xf32>
    %204 = vector.multi_reduction <add>, %202, %cst_72 [1] : vector<32x32xf32> to vector<32xf32>
    %205 = vector.shape_cast %204 : vector<32xf32> to vector<32x1xf32>
    %206 = tpu.reciprocal %205 {approx = true} : vector<32x1xf32> -> vector<32x1xf32>
    %207 = vector.broadcast %206 : vector<32x1xf32> to vector<32x8xf32>
    %208 = arith.mulf %203, %207 : vector<32x8xf32>
    %209 = vector.extract_strided_slice %174 {offsets = [0, 16], sizes = [32, 8], strides = [1, 1]} : vector<32x96xf32> to vector<32x8xf32>
    %210 = vector.extract_strided_slice %176 {offsets = [16, 0], sizes = [8, 32], strides = [1, 1]} : vector<32x32xf32> to vector<8x32xf32>
    %211 = vector.extract_strided_slice %174 {offsets = [0, 80], sizes = [32, 8], strides = [1, 1]} : vector<32x96xf32> to vector<32x8xf32>
    %cst_73 = arith.constant dense<0.000000e+00> : vector<32x32xf32>
    %212 = tpu.matmul %209, %210, %cst_73 {dimension_numbers = #tpu.dot_dimension_numbers<[1], [0], [0], [1], [0, 0, 1, 1], [], []>} : vector<32x8xf32>, vector<8x32xf32>, vector<32x32xf32> -> vector<32x32xf32>
    %213 = arith.addf %212, %3 : vector<32x32xf32>
    %cst_74 = arith.constant dense<0xFF800000> : vector<32xf32>
    %214 = vector.multi_reduction <maximumf>, %213, %cst_74 [1] : vector<32x32xf32> to vector<32xf32>
    %215 = vector.shape_cast %214 : vector<32xf32> to vector<32x1xf32>
    %216 = vector.broadcast %215 : vector<32x1xf32> to vector<32x32xf32>
    %217 = arith.subf %213, %216 : vector<32x32xf32>
    %218 = math.exp %217 : vector<32x32xf32>
    %cst_75 = arith.constant dense<0.000000e+00> : vector<32x8xf32>
    %219 = tpu.matmul %218, %211, %cst_75 {dimension_numbers = #tpu.dot_dimension_numbers<[1], [0], [0], [1], [0, 0, 1, 1], [], []>} : vector<32x32xf32>, vector<32x8xf32>, vector<32x8xf32> -> vector<32x8xf32>
    %cst_76 = arith.constant dense<0.000000e+00> : vector<32xf32>
    %220 = vector.multi_reduction <add>, %218, %cst_76 [1] : vector<32x32xf32> to vector<32xf32>
    %221 = vector.shape_cast %220 : vector<32xf32> to vector<32x1xf32>
    %222 = tpu.reciprocal %221 {approx = true} : vector<32x1xf32> -> vector<32x1xf32>
    %223 = vector.broadcast %222 : vector<32x1xf32> to vector<32x8xf32>
    %224 = arith.mulf %219, %223 : vector<32x8xf32>
    %225 = vector.extract_strided_slice %174 {offsets = [0, 24], sizes = [32, 8], strides = [1, 1]} : vector<32x96xf32> to vector<32x8xf32>
    %226 = vector.extract_strided_slice %176 {offsets = [24, 0], sizes = [8, 32], strides = [1, 1]} : vector<32x32xf32> to vector<8x32xf32>
    %227 = vector.extract_strided_slice %174 {offsets = [0, 88], sizes = [32, 8], strides = [1, 1]} : vector<32x96xf32> to vector<32x8xf32>
    %cst_77 = arith.constant dense<0.000000e+00> : vector<32x32xf32>
    %228 = tpu.matmul %225, %226, %cst_77 {dimension_numbers = #tpu.dot_dimension_numbers<[1], [0], [0], [1], [0, 0, 1, 1], [], []>} : vector<32x8xf32>, vector<8x32xf32>, vector<32x32xf32> -> vector<32x32xf32>
    %229 = arith.addf %228, %3 : vector<32x32xf32>
    %cst_78 = arith.constant dense<0xFF800000> : vector<32xf32>
    %230 = vector.multi_reduction <maximumf>, %229, %cst_78 [1] : vector<32x32xf32> to vector<32xf32>
    %231 = vector.shape_cast %230 : vector<32xf32> to vector<32x1xf32>
    %232 = vector.broadcast %231 : vector<32x1xf32> to vector<32x32xf32>
    %233 = arith.subf %229, %232 : vector<32x32xf32>
    %234 = math.exp %233 : vector<32x32xf32>
    %cst_79 = arith.constant dense<0.000000e+00> : vector<32x8xf32>
    %235 = tpu.matmul %234, %227, %cst_79 {dimension_numbers = #tpu.dot_dimension_numbers<[1], [0], [0], [1], [0, 0, 1, 1], [], []>} : vector<32x32xf32>, vector<32x8xf32>, vector<32x8xf32> -> vector<32x8xf32>
    %cst_80 = arith.constant dense<0.000000e+00> : vector<32xf32>
    %236 = vector.multi_reduction <add>, %234, %cst_80 [1] : vector<32x32xf32> to vector<32xf32>
    %237 = vector.shape_cast %236 : vector<32xf32> to vector<32x1xf32>
    %238 = tpu.reciprocal %237 {approx = true} : vector<32x1xf32> -> vector<32x1xf32>
    %239 = vector.broadcast %238 : vector<32x1xf32> to vector<32x8xf32>
    %240 = arith.mulf %235, %239 : vector<32x8xf32>
    %241 = tpu.concatenate %192, %208, %224, %240 in 1 : vector<32x8xf32>, vector<32x8xf32>, vector<32x8xf32>, vector<32x8xf32> -> vector<32x32xf32>
    %242 = arith.truncf %241 : vector<32x32xf32> to vector<32x32xbf16>
    %cst_81 = arith.constant dense<0.000000e+00> : vector<32x32xf32>
    %243 = tpu.matmul %242, %156, %cst_81 {dimension_numbers = #tpu.dot_dimension_numbers<[1], [0], [0], [1], [0, 0, 1, 1], [], []>} : vector<32x32xbf16>, vector<32x32xbf16>, vector<32x32xf32> -> vector<32x32xf32>
    %244 = vector.broadcast %164 : vector<1x32xf32> to vector<32x32xf32>
    %245 = arith.addf %243, %244 : vector<32x32xf32>
    %246 = arith.addf %152, %245 : vector<32x32xf32>
    %cst_82 = arith.constant dense<0.000000e+00> : vector<32xf32>
    %247 = vector.multi_reduction <add>, %246, %cst_82 [1] : vector<32x32xf32> to vector<32xf32>
    %248 = vector.shape_cast %247 : vector<32xf32> to vector<32x1xf32>
    %cst_83 = arith.constant 3.200000e+01 : f32
    %249 = vector.broadcast %cst_83 : f32 to vector<32x1xf32>
    %250 = arith.divf %248, %249 : vector<32x1xf32>
    %251 = vector.broadcast %250 : vector<32x1xf32> to vector<32x32xf32>
    %252 = arith.subf %246, %251 : vector<32x32xf32>
    %253 = arith.mulf %252, %252 : vector<32x32xf32>
    %cst_84 = arith.constant dense<0.000000e+00> : vector<32xf32>
    %254 = vector.multi_reduction <add>, %253, %cst_84 [1] : vector<32x32xf32> to vector<32xf32>
    %255 = vector.shape_cast %254 : vector<32xf32> to vector<32x1xf32>
    %cst_85 = arith.constant 3.200000e+01 : f32
    %256 = vector.broadcast %cst_85 : f32 to vector<32x1xf32>
    %257 = arith.divf %255, %256 : vector<32x1xf32>
    %258 = vector.broadcast %250 : vector<32x1xf32> to vector<32x32xf32>
    %259 = arith.subf %246, %258 : vector<32x32xf32>
    %cst_86 = arith.constant 9.99999974E-6 : f32
    %260 = vector.broadcast %cst_86 : f32 to vector<32x1xf32>
    %261 = arith.addf %257, %260 : vector<32x1xf32>
    %262 = math.rsqrt %261 : vector<32x1xf32>
    %263 = vector.broadcast %262 : vector<32x1xf32> to vector<32x32xf32>
    %264 = arith.mulf %259, %263 : vector<32x32xf32>
    %265 = vector.broadcast %165 : vector<1x32xf32> to vector<32x32xf32>
    %266 = arith.mulf %264, %265 : vector<32x32xf32>
    %267 = vector.broadcast %166 : vector<1x32xf32> to vector<32x32xf32>
    %268 = arith.addf %266, %267 : vector<32x32xf32>
    %269 = arith.truncf %268 : vector<32x32xf32> to vector<32x32xbf16>
    %cst_87 = arith.constant dense<0.000000e+00> : vector<32x64xf32>
    %270 = tpu.matmul %269, %158, %cst_87 {dimension_numbers = #tpu.dot_dimension_numbers<[1], [0], [0], [1], [0, 0, 1, 1], [], []>} : vector<32x32xbf16>, vector<32x64xbf16>, vector<32x64xf32> -> vector<32x64xf32>
    %271 = vector.broadcast %167 : vector<1x64xf32> to vector<32x64xf32>
    %272 = arith.addf %270, %271 : vector<32x64xf32>
    %cst_88 = arith.constant 0.000000e+00 : f32
    %273 = vector.broadcast %cst_88 : f32 to vector<32x64xf32>
    %274 = arith.maximumf %272, %273 : vector<32x64xf32>
    %275 = arith.truncf %274 : vector<32x64xf32> to vector<32x64xbf16>
    %cst_89 = arith.constant dense<0.000000e+00> : vector<32x32xf32>
    %276 = tpu.matmul %275, %160, %cst_89 {dimension_numbers = #tpu.dot_dimension_numbers<[1], [0], [0], [1], [0, 0, 1, 1], [], []>} : vector<32x64xbf16>, vector<64x32xbf16>, vector<32x32xf32> -> vector<32x32xf32>
    %277 = vector.broadcast %168 : vector<1x32xf32> to vector<32x32xf32>
    %278 = arith.addf %276, %277 : vector<32x32xf32>
    %279 = arith.addf %268, %278 : vector<32x32xf32>
    %cst_90 = arith.constant dense<0.000000e+00> : vector<32xf32>
    %280 = vector.multi_reduction <add>, %279, %cst_90 [1] : vector<32x32xf32> to vector<32xf32>
    %281 = vector.shape_cast %280 : vector<32xf32> to vector<32x1xf32>
    %cst_91 = arith.constant 3.200000e+01 : f32
    %282 = vector.broadcast %cst_91 : f32 to vector<32x1xf32>
    %283 = arith.divf %281, %282 : vector<32x1xf32>
    %284 = vector.broadcast %283 : vector<32x1xf32> to vector<32x32xf32>
    %285 = arith.subf %279, %284 : vector<32x32xf32>
    %286 = arith.mulf %285, %285 : vector<32x32xf32>
    %cst_92 = arith.constant dense<0.000000e+00> : vector<32xf32>
    %287 = vector.multi_reduction <add>, %286, %cst_92 [1] : vector<32x32xf32> to vector<32xf32>
    %288 = vector.shape_cast %287 : vector<32xf32> to vector<32x1xf32>
    %cst_93 = arith.constant 3.200000e+01 : f32
    %289 = vector.broadcast %cst_93 : f32 to vector<32x1xf32>
    %290 = arith.divf %288, %289 : vector<32x1xf32>
    %291 = vector.broadcast %283 : vector<32x1xf32> to vector<32x32xf32>
    %292 = arith.subf %279, %291 : vector<32x32xf32>
    %cst_94 = arith.constant 9.99999974E-6 : f32
    %293 = vector.broadcast %cst_94 : f32 to vector<32x1xf32>
    %294 = arith.addf %290, %293 : vector<32x1xf32>
    %295 = math.rsqrt %294 : vector<32x1xf32>
    %296 = vector.broadcast %295 : vector<32x1xf32> to vector<32x32xf32>
    %297 = arith.mulf %292, %296 : vector<32x32xf32>
    %298 = vector.broadcast %169 : vector<1x32xf32> to vector<32x32xf32>
    %299 = arith.mulf %297, %298 : vector<32x32xf32>
    %300 = vector.broadcast %170 : vector<1x32xf32> to vector<32x32xf32>
    %301 = arith.addf %299, %300 : vector<32x32xf32>
    %c0_95 = arith.constant 0 : index
    %c0_96 = arith.constant 0 : index
    %302 = vector.load %arg9[%c0_95, %c0_96] : memref<32x32xf32, #tpu.memory_space<vmem>>, vector<32x32xf32>
    tpu.vector_store %arg9[%c0_95, %c0_96], %301 {strides = array<i32>} : memref<32x32xf32, #tpu.memory_space<vmem>>, vector<32x32xf32>,
    return
  }
  func.func @transform_0(%arg0: i32) -> (i32, i32) {
    %c0_i32 = arith.constant 0 : i32
    %c0_i32_0 = arith.constant 0 : i32
    %c0_i32_1 = arith.constant 0 : i32
    return %c0_i32, %c0_i32_0 : i32, i32
  }
  func.func @transform_1(%arg0: i32) -> (i32, i32) {
    %c0_i32 = arith.constant 0 : i32
    %c0_i32_0 = arith.constant 0 : i32
    %c0_i32_1 = arith.constant 0 : i32
    return %c0_i32, %c0_i32_0 : i32, i32
  }
  func.func @transform_2(%arg0: i32) -> (i32, i32) {
    %c0_i32 = arith.constant 0 : i32
    %c0_i32_0 = arith.constant 0 : i32
    %c0_i32_1 = arith.constant 0 : i32
    return %c0_i32, %c0_i32_0 : i32, i32
  }
  func.func @transform_3(%arg0: i32) -> (i32, i32, i32) {
    %c0_i32 = arith.constant 0 : i32
    %c0_i32_0 = arith.constant 0 : i32
    %c0_i32_1 = arith.constant 0 : i32
    %c0_i32_2 = arith.constant 0 : i32
    return %c0_i32, %c0_i32_0, %c0_i32_1 : i32, i32, i32
  }
  func.func @transform_4(%arg0: i32) -> (i32, i32, i32) {
    %c0_i32 = arith.constant 0 : i32
    %c0_i32_0 = arith.constant 0 : i32
    %c0_i32_1 = arith.constant 0 : i32
    %c0_i32_2 = arith.constant 0 : i32
    return %c0_i32, %c0_i32_0, %c0_i32_1 : i32, i32, i32
  }
  func.func @transform_5(%arg0: i32) -> (i32, i32, i32) {
    %c0_i32 = arith.constant 0 : i32
    %c0_i32_0 = arith.constant 0 : i32
    %c0_i32_1 = arith.constant 0 : i32
    %c0_i32_2 = arith.constant 0 : i32
    return %c0_i32, %c0_i32_0, %c0_i32_1 : i32, i32, i32
  }
  func.func @transform_6(%arg0: i32) -> (i32, i32, i32) {
    %c0_i32 = arith.constant 0 : i32
    %c0_i32_0 = arith.constant 0 : i32
    %c0_i32_1 = arith.constant 0 : i32
    %c0_i32_2 = arith.constant 0 : i32
    return %c0_i32, %c0_i32_0, %c0_i32_1 : i32, i32, i32
  }
  func.func @transform_7(%arg0: i32) -> (i32, i32, i32) {
    %c0_i32 = arith.constant 0 : i32
    %c0_i32_0 = arith.constant 0 : i32
    %c0_i32_1 = arith.constant 0 : i32
    %c0_i32_2 = arith.constant 0 : i32
    return %c0_i32, %c0_i32_0, %c0_i32_1 : i32, i32, i32
  }
  func.func @transform_8(%arg0: i32) -> (i32, i32) {
    %c0_i32 = arith.constant 0 : i32
    %c0_i32_0 = arith.constant 0 : i32
    %c0_i32_1 = arith.constant 0 : i32
    return %c0_i32, %c0_i32_0 : i32, i32
  }
}

</mosaic_0001>

<bundles_post_ra>
// kernel: tpu_custom_call.1
= control target key start
LH: loop header
LB: loop body
LE: loop exit
PB: predicated region body
PF: predicated region fallthrough
CT: control target
= control target key end

     0   :  { %13 = vsyncpa [#allocation3], 0  ;;  %s3898_s0 = inlined_call_operand.vmem [shape: f32[32,32], index: 0, kind: input, shape index: {}]   ;;  %s3899_s1 = inlined_call_operand.vmem [shape: f32[32,32], index: 1, kind: input, shape index: {}]   ;;  %s3900_s2 = inlined_call_operand.vmem [shape: f32[32,32], index: 2, kind: input, shape index: {}]   ;;  %s3901_s3 = inlined_call_operand.hbm [shape: bf16[2,32,96], index: 3, kind: input, shape index: {}]   ;;  %s3902_s4 = inlined_call_operand.hbm [shape: bf16[2,32,32], index: 4, kind: input, shape index: {}]   ;;  %s3903_s5 = inlined_call_operand.hbm [shape: bf16[2,32,64], index: 5, kind: input, shape index: {}]   ;;  %s3904_s6 = inlined_call_operand.vmem [shape: bf16[2,64,32], index: 6, kind: input, shape index: {}]   ;;  %s3905_s7 = inlined_call_operand.hbm [shape: f32[2,8,96], index: 7, kind: input, shape index: {}]   ;;  %s3906_s8 = inlined_call_operand.hbm [shape: f32[32,32], index: 8, kind: output, shape index: {}]  }
   0x1   :  { %14 = vsyncpa [#allocation6], 0 }
   0x2   :  { %15 = vsyncpa [#allocation9], 0 }
   0x3   :  { %16 = vsyncpa [#allocation4], 0  ;;  %s40_s29 = sshll.u32 %s3902_s4, 4  ;;  %s3008_s30 = smov [#allocation5]   ;;  %s41_s29 = int_to_ptr.hbm [resolvable:$true] %s40_s29 }
   0x4   :  { %s42_s9 = sshll.u32 %s3008_s30, 4  ;;  %s27_s12 = sshll.u32 %s3901_s3, 4  ;;  %s43_s9 = int_to_ptr.vmem [resolvable:$true] %s42_s9  ;;  %s28_s12 = int_to_ptr.hbm [resolvable:$true] %s27_s12 }
   0x5   :  { %s3009_s13 = smov 64   ;;  %s3010_s14 = smov 4  }
   0x6   :  { %48 = dma.hbm_to_vmem [thread:$0]  %s41_s29, 512, %s43_s9, [#allocation6], %s3009_s13, %s3009_s13, %s3010_s14  }
   0x7   :  { %s3011_s15 = smov [#allocation2]   ;;  %s53_s4 = sshll.u32 %s3903_s5, 4  ;;  %s54_s4 = int_to_ptr.hbm [resolvable:$true] %s53_s4 }
   0x8   :  { %s29_s16 = sshll.u32 %s3011_s15, 4  ;;  %s68_s3 = sshll.u32 %s3905_s7, 4  ;;  %s30_s16 = int_to_ptr.vmem [resolvable:$true] %s29_s16  ;;  %s69_s3 = int_to_ptr.hbm [resolvable:$true] %s68_s3 }
   0x9   :  { %35 = dma.hbm_to_vmem [thread:$0]  %s28_s12, 512, %s30_s16, [#allocation3], %s3009_s13, %s3009_s13, %s3010_s14  }
   0xa   :  { %s3012_s21 = smov [#allocation7]   ;;  %s3013_s23 = smov [#allocation8]  }
   0xb   :  { %s55_s22 = sshll.u32 %s3012_s21, 4  ;;  %s70_s24 = sshll.u32 %s3013_s23, 4  ;;  %s56_s22 = int_to_ptr.vmem [resolvable:$true] %s55_s22  ;;  %s71_s24 = int_to_ptr.vmem [resolvable:$true] %s70_s24 }
   0xc   :  { %61 = dma.hbm_to_vmem [thread:$0]  %s54_s4, 512, %s56_s22, [#allocation6], %s3009_s13, %s3009_s13, %s3010_s14  }
   0xd   :  { %s3014_s5 = smov 128   ;;  %s3015_s25 = smov 8  }
   0xe   :  { %76 = dma.hbm_to_vmem [thread:$0]  %s69_s3, 256, %s71_s24, [#allocation9], %s3014_s5, %s3014_s5, %s3015_s25  }
   0xf   :  { %3000 = dma.done.wait [#allocation3], 512  }
  0x10   :  { %3001 = vsyncadd [#allocation3], 4294966784 }
  0x11   :  { %3002 = dma.done.wait [#allocation6], 1024  }
  0x12   :  { %3003 = vsyncadd [#allocation6], 4294966272 }
  0x13   :  { %3004 = dma.done.wait [#allocation9], 256  }
  0x14   :  { %3005 = vsyncadd [#allocation9], 4294967040  ;;  %v2531_v0 = vld [vmem:[#allocation2 + $0x8] sm:$0xff]  ;;  %v94_v1 = vld [vmem:[%s3898_s0] sm:$0xff]  ;;  %vm146_vm0 = vcmask 261120   ;;  %s3018_s19 = smov 72  }
  0x15   :  { %v95_v2 = vld [vmem:[%s3898_s0 + $0x8] sm:$0xff]  ;;  %v98_v3 = vld [vmem:[%s3899_s1] sm:$0xff]  ;;  %159 = vmatpush.bf16.msra.mxu0 %v2531_v0  ;;  %v96_v9 = vld [vmem:[%s3898_s0 + $0x10] sm:$0xff]  ;;  %s3019_s20 = smov 88   ;;  %s3020_s3 = smov 120   ;;  %vm184_vm1 = vcmask 64512  }
  0x16   :  { %v99_v4 = vld [vmem:[%s3899_s1 + $0x8] sm:$0xff]  ;;  %v2530_v5 = vld [vmem:[#allocation2] sm:$0xff]  ;;  %v3108_v6 = vadd.f32 %v98_v3, %v94_v1  ;;  %v97_v10 = vld [vmem:[%s3898_s0 + $0x18] sm:$0xff]  ;;  %s3016_s0 = smov 80   ;;  %s3021_s21 = smov 104   ;;  %vm853_vm2 = vcmask 130048  }
  0x17   :  { %v3110_v7 = vadd.f32 %v99_v4, %v95_v2  ;;  %v100_v11 = vld [vmem:[%s3899_s1 + $0x10] sm:$0xff]  ;;  %v101_v12 = vld [vmem:[%s3899_s1 + $0x18] sm:$0xff]  ;;  %v3134_v17 = vld [vmem:[#allocation8] sm:$0xff]  ;;  %s3017_s1 = smov 96   ;;  %s3022_s22 = smov 112   ;;  %vm858_vm3 = vcmask 195584  }
  0x18   :  { %v3127_v13 = vadd.f32 %v100_v11, %v96_v9  ;;  %v3129_v14 = vadd.f32 %v101_v12, %v97_v10  ;;  %v133_v18 = vperm.slane %v3134_v17, 0  ;;  %v3235_v55 = vld [vmem:[%s3900_s2] sm:$0xff]  ;;  %v3242_v59 = vld [vmem:[%s3900_s2 + $0x8] sm:$0xff]  ;;  %v3262_v4 = vld [vmem:[%s3900_s2 + $0x10] sm:$0xff]  ;;  %s3023_s29 = smov 56   ;;  %s3024_s10 = smov 40  }
  0x19   :  { %v131_v8 = vpack.c.bf16 %v3110_v7, %v3108_v6  ;;  %160 = vmatpush.bf16.msra.mxu0 %v2530_v5  ;;  %v3271_v9 = vld [vmem:[%s3900_s2 + $0x18] sm:$0xff]  ;;  %s3025_s11 = smov 48   ;;  %s3026_s12 = smov 24  }
  0x1a   :  { %v132_v15 = vpack.c.bf16 %v3129_v14, %v3127_v13  ;;  %s3027_s14 = smov 16   ;;  %s2315_s15 = sshll.u32 %s3906_s8, 4  ;;  %s2316_s15 = int_to_ptr.hbm [resolvable:$true] %s2315_s15 }
  0x1c   :  { %2338 = vmatmul.msk.bf16.vlgmr.msra.gmra.mxu0 %vm146_vm0, %v131_v8 }
  0x2c   :  { %2339 = vmatmul.msk.bf16.gmra.mxu0 %vm146_vm0, %v132_v15 }
  0x99   :  { %v162_v16 = vpop.f32.mrf.mxu0 }
  0x9a   :  { %v3143_v22 = vadd.f32 %v162_v16, %v133_v18 }
  0xa1   :  { %v164_v19 = vpop.f32.mrf.mxu0 }
  0xa2   :  { %v3137_v20 = vadd.f32 %v164_v19, %v133_v18 }
  0xa4   :  { %495 = vrot.lane.b32.xlu2 %v3137_v20, %s3016_s0  ;;  %178 = vrot.lane.b32.xlu1 %v3137_v20, %s3017_s1  ;;  %v3177_v27 = vpack.i.bf16 %v3143_v22, %v3137_v20 }
  0xa9   :  { %v167_v21 = vpop.f32.mrf.mxu0 }
  0xaa   :  { %v3157_v25 = vadd.f32 %v167_v21, %v133_v18 }
  0xac   :  { %651 = vrot.lane.b32.xlu2 %v3143_v22, %s3018_s19  ;;  %176 = vrot.lane.b32.xlu1 %v3143_v22, %s3017_s1 }
  0xb1   :  { %v169_v23 = vpop.f32.mrf.mxu0 }
  0xb2   :  { %v3149_v24 = vadd.f32 %v169_v23, %v133_v18 }
  0xb4   :  { %182 = vrot.lane.b32.xlu0 %v3149_v24, %s3017_s1  ;;  %341 = vrot.lane.b32.xlu2 %v3149_v24, %s3019_s20  ;;  %v3161_v26 = vpack.i.bf16 %v3157_v25, %v3149_v24 }
  0xb5   :  { %653 = vrot.lane.b32.xlu1 %v3137_v20, %s3018_s19 }
  0xbc   :  { %180 = vrot.lane.b32.xlu0 %v3157_v25, %s3017_s1  ;;  %499 = vrot.lane.b32.xlu2 %v3149_v24, %s3016_s0 }
  0xbd   :  { %2578 = vrot.lane.b32.xlu1 %v3161_v26, %s3009_s13 }
  0xc4   :  { %339 = vrot.lane.b32.xlu0 %v3157_v25, %s3019_s20 }
  0xc5   :  { %657 = vrot.lane.b32.xlu1 %v3149_v24, %s3018_s19 }
  0xcc   :  { %337 = vrot.lane.b32.xlu0 %v3137_v20, %s3019_s20 }
  0xd4   :  { %2573 = vrot.lane.b32.xlu0 %v3177_v27, %s3009_s13 }
  0xdc   :  { %335 = vrot.lane.b32.xlu0 %v3143_v22, %s3019_s20 }
  0xe4   :  { %327 = vrot.lane.b32.xlu0 %v3143_v22, %s3020_s3 }
  0xec   :  { %329 = vrot.lane.b32.xlu0 %v3137_v20, %s3020_s3 }
  0xf4   :  { %331 = vrot.lane.b32.xlu0 %v3157_v25, %s3020_s3 }
  0xfc   :  { %497 = vrot.lane.b32.xlu0 %v3157_v25, %s3016_s0 }
  0xfe   :  { %v496_v28 = vpop.permute.xlu2 %495 }
 0x104   :  { %655 = vrot.lane.b32.xlu0 %v3157_v25, %s3018_s19 }
 0x106   :  { %v652_v29 = vpop.permute.xlu2 %651 }
 0x10c   :  { %493 = vrot.lane.b32.xlu0 %v3143_v22, %s3016_s0 }
 0x10e   :  { %v342_v30 = vpop.permute.xlu2 %341 }
 0x10f   :  { %2352 = vmatpush.xpose.msk.msra.mxu3 %vm184_vm1, %v342_v30 }
 0x114   :  { %333 = vrot.lane.b32.xlu0 %v3149_v24, %s3020_s3 }
 0x116   :  { %v179_v31 = vpop.permute.xlu1 %178  ;;  %v500_v44 = vpop.permute.xlu2 %499 }
 0x11c   :  { %643 = vrot.lane.b32.xlu0 %v3143_v22, %s3021_s21 }
 0x11e   :  { %v177_v32 = vpop.permute.xlu1 %176 }
 0x124   :  { %489 = vrot.lane.b32.xlu0 %v3157_v25, %s3022_s22 }
 0x126   :  { %v183_v33 = vpop.permute.xlu0 %182 }
 0x127   :  { %v654_v34 = vpop.permute.xlu1 %653  ;;  %2340 = vmatpush.xpose.msk.msra.mxu1 %vm184_vm1, %v183_v33 }
 0x12c   :  { %649 = vrot.lane.b32.xlu0 %v3149_v24, %s3021_s21 }
 0x12e   :  { %v181_v35 = vpop.permute.xlu0 %180 }
 0x12f   :  { %v2579_v36 = vpop.permute.xlu1 %2578  ;;  %2341 = vmatpush.xpose.msk.msra.mxu1 %vm184_vm1, %v181_v35 }
 0x130   :  { %v2580_v37 = vunpack.i.l.bf16 %v2579_v36  ;;  %v2581_v38 = vunpack.i.h.bf16 %v2579_v36 }
 0x132   :  { %290 = vmatpush.msra.mxu2 %v2580_v37 }
 0x133   :  { %2342 = vmatpush.xpose.msk.msra.mxu1 %vm184_vm1, %v179_v31 }
 0x134   :  { %291 = vmatpush.msra.mxu2 %v2581_v38 }
 0x136   :  { %v340_v39 = vpop.permute.xlu0 %339 }
 0x137   :  { %2343 = vmatpush.xpose.msk.msra.mxu1 %vm184_vm1, %v177_v32  ;;  %2353 = vmatpush.xpose.msk.msra.mxu3 %vm184_vm1, %v340_v39  ;;  %v658_v46 = vpop.permute.xlu1 %657 }
 0x13a   :  { %2344 = vmatmul.msk.f32.vlgmr.msra.gmra.mxu1 %vm184_vm1, %v3143_v22 }
 0x13e   :  { %v338_v40 = vpop.permute.xlu0 %337 }
 0x13f   :  { %2354 = vmatpush.xpose.msk.msra.mxu3 %vm184_vm1, %v338_v40 }
 0x142   :  { %2345 = vmatmul.msk.f32.gmra.mxu1 %vm184_vm1, %v3137_v20 }
 0x146   :  { %v2574_v41 = vpop.permute.xlu0 %2573 }
 0x147   :  { %v2575_v42 = vunpack.i.l.bf16 %v2574_v41  ;;  %v2576_v43 = vunpack.i.h.bf16 %v2574_v41 }
 0x149   :  { %292 = vmatpush.msra.mxu2 %v2575_v42 }
 0x14a   :  { %2346 = vmatmul.msk.f32.gmra.mxu1 %vm184_vm1, %v3157_v25 }
 0x14b   :  { %293 = vmatpush.msra.mxu2 %v2576_v43 }
 0x14d   :  { %2364 = vmatpush.xpose.msk.msrb.mxu2 %vm184_vm1, %v500_v44 }
 0x14e   :  { %v336_v45 = vpop.permute.xlu0 %335 }
 0x14f   :  { %2355 = vmatpush.xpose.msk.msra.mxu3 %vm184_vm1, %v336_v45 }
 0x152   :  { %2347 = vmatmul.msk.f32.gmra.mxu1 %vm184_vm1, %v3149_v24 }
 0x153   :  { %2376 = vmatpush.xpose.msk.msrb.mxu3 %vm184_vm1, %v658_v46 }
 0x156   :  { %v328_v47 = vpop.permute.xlu0 %327 }
 0x157   :  { %2356 = vmatmul.msk.f32.vlgmr.msra.gmra.mxu3 %vm184_vm1, %v328_v47 }
 0x15e   :  { %v330_v48 = vpop.permute.xlu0 %329 }
 0x15f   :  { %2357 = vmatmul.msk.f32.gmra.mxu3 %vm184_vm1, %v330_v48 }
 0x166   :  { %v332_v49 = vpop.permute.xlu0 %331 }
 0x167   :  { %2358 = vmatmul.msk.f32.gmra.mxu3 %vm184_vm1, %v332_v49 }
 0x16e   :  { %v498_v50 = vpop.permute.xlu0 %497 }
 0x16f   :  { %2365 = vmatpush.xpose.msk.msrb.mxu2 %vm184_vm1, %v498_v50 }
 0x173   :  { %2366 = vmatpush.xpose.msk.msrb.mxu2 %vm184_vm1, %v496_v28 }
 0x176   :  { %v656_v51 = vpop.permute.xlu0 %655 }
 0x177   :  { %2377 = vmatpush.xpose.msk.msrb.mxu3 %vm184_vm1, %v656_v51 }
 0x17b   :  { %2378 = vmatpush.xpose.msk.msrb.mxu3 %vm184_vm1, %v654_v34 }
 0x17e   :  { %v494_v52 = vpop.permute.xlu0 %493 }
 0x17f   :  { %2367 = vmatpush.xpose.msk.msrb.mxu2 %vm184_vm1, %v494_v52  ;;  %2379 = vmatpush.xpose.msk.msrb.mxu3 %vm184_vm1, %v652_v29 }
 0x186   :  { %v334_v53 = vpop.permute.xlu0 %333 }
 0x187   :  { %2359 = vmatmul.msk.f32.gmra.mxu3 %vm184_vm1, %v334_v53 }
 0x18e   :  { %v644_v54 = vpop.permute.xlu0 %643 }
 0x18f   :  { %2380 = vmatmul.msk.f32.vlgmr.msrb.gmra.mxu3 %vm184_vm1, %v644_v54 }
 0x196   :  { %v490_v54 = vpop.permute.xlu0 %489 }
 0x1b7   :  { %v218_v56 = vpop.f32.mrf.mxu1 }
 0x1b8   :  { %v219_v57 = vadd.f32 %v218_v56, %v3235_v55 }
 0x1ba   :  { %v230_v58 = vsel %vm146_vm0, %v219_v57, -inf }
 0x1bb   :  { %231 = vmax.xlane.f32.xlu2 %v230_v58  ;;  %v650_v58 = vpop.permute.xlu0 %649 }
 0x1bf   :  { %v221_v60 = vpop.f32.mrf.mxu1 }
 0x1c0   :  { %v222_v61 = vadd.f32 %v221_v60, %v3242_v59 }
 0x1c2   :  { %v233_v62 = vsel %vm146_vm0, %v222_v61, -inf }
 0x1c3   :  { %234 = vmax.xlane.f32.xlu1 %v233_v62 }
 0x1c7   :  { %v224_v3 = vpop.f32.mrf.mxu1 }
 0x1c8   :  { %v225_v5 = vadd.f32 %v224_v3, %v3262_v4 }
 0x1ca   :  { %v236_v8 = vsel %vm146_vm0, %v225_v5, -inf }
 0x1cf   :  { %v227_v10 = vpop.f32.mrf.mxu1 }
 0x1d0   :  { %v228_v11 = vadd.f32 %v227_v10, %v3271_v9 }
 0x1d2   :  { %v239_v12 = vsel %vm146_vm0, %v228_v11, -inf }
 0x1d3   :  { %487 = vrot.lane.b32.xlu2 %v3137_v20, %s3022_s22 }
 0x1da   :  { %v376_v63 = vpop.f32.mrf.mxu3 }
 0x1dc   :  { %485 = vrot.lane.b32.xlu1 %v3143_v22, %s3022_s22 }
 0x1e2   :  { %v379_v0 = vpop.f32.mrf.mxu3 }
 0x1e3   :  { %v3251_v1 = vadd.f32 %v379_v0, %v3242_v59 }
 0x1e4   :  { %645 = vrot.lane.b32.xlu1 %v3137_v20, %s3021_s21 }
 0x1e5   :  { %v391_v2 = vsel %vm146_vm0, %v3251_v1, -inf }
 0x1e6   :  { %392 = vmax.xlane.f32.xlu0 %v391_v2 }
 0x1ea   :  { %v382_v15 = vpop.f32.mrf.mxu3 }
 0x1eb   :  { %v3280_v16 = vadd.f32 %v382_v15, %v3262_v4 }
 0x1ec   :  { %491 = vrot.lane.b32.xlu1 %v3149_v24, %s3022_s22 }
 0x1ed   :  { %v394_v18 = vsel %vm146_vm0, %v3280_v16, -inf }
 0x1f4   :  { %2583 = vrot.lane.b32.xlu1 %v3161_v26, %s3023_s29 }
 0x1fc   :  { %2588 = vrot.lane.b32.xlu1 %v3177_v27, %s3023_s29  ;;  %237 = vmax.xlane.f32.xlu2 %v236_v8 }
 0x204   :  { %240 = vmax.xlane.f32.xlu2 %v239_v12 }
 0x20a   :  { %v385_v30 = vpop.f32.mrf.mxu3 }
 0x20b   :  { %v3295_v32 = vadd.f32 %v385_v30, %v3271_v9 }
 0x20d   :  { %v397_v33 = vsel %vm146_vm0, %v3295_v32, -inf }
 0x212   :  { %v692_v34 = vpop.f32.mrf.mxu3 }
 0x213   :  { %v3300_v36 = vadd.f32 %v692_v34, %v3235_v55 }
 0x215   :  { %v704_v37 = vsel %vm146_vm0, %v3300_v36, -inf }
 0x21c   :  { %647 = vrot.lane.b32.xlu2 %v3157_v25, %s3021_s21  ;;  %v377_v25 = vadd.f32 %v376_v63, %v3235_v55 }
 0x21e   :  { %v388_v31 = vsel %vm146_vm0, %v377_v25, -inf }
 0x226   :  { %395 = vmax.xlane.f32.xlu1 %v394_v18 }
 0x22e   :  { %v232_v19 = vpop.xlane.xlu2 %231 }
 0x22f   :  { %v242_v20 = vsub.f32 %v219_v57, %v232_v19 }
 0x231   :  { %v246_v21 = vmul.f32 1.442695, %v242_v20 }
 0x233   :  { %2712 = vpow2.f32 %v246_v21 }
 0x236   :  { %v235_v22 = vpop.xlane.xlu1 %234  ;;  %v488_v41 = vpop.permute.xlu2 %487 }
 0x237   :  { %v243_v23 = vsub.f32 %v222_v61, %v235_v22 }
 0x239   :  { %v3284_v24 = vpop.eup %2712  ;;  %v248_v28 = vmul.f32 1.442695, %v243_v23 }
 0x23a   :  { %2348 = vmatmul.msk.f32.vlgmr.msra.gmra.mxu2 %vm146_vm0, %v3284_v24 }
 0x23b   :  { %2714 = vpow2.f32 %v248_v28 }
 0x241   :  { %v3289_v29 = vpop.eup %2714 }
 0x242   :  { %2349 = vmatmul.msk.f32.gmra.mxu2 %vm146_vm0, %v3289_v29 }
 0x245   :  { %389 = vmax.xlane.f32.xlu2 %v388_v31 }
 0x24d   :  { %398 = vmax.xlane.f32.xlu2 %v397_v33 }
 0x24e   :  { %v486_v35 = vpop.permute.xlu1 %485 }
 0x255   :  { %705 = vmax.xlane.f32.xlu2 %v704_v37 }
 0x256   :  { %v646_v38 = vpop.permute.xlu1 %645 }
 0x257   :  { %2381 = vmatmul.msk.f32.gmra.mxu3 %vm184_vm1, %v646_v38 }
 0x259   :  { %v393_v62 = vpop.xlane.xlu0 %392 }
 0x25a   :  { %v401_v0 = vsub.f32 %v3251_v1, %v393_v62 }
 0x25c   :  { %v406_v3 = vmul.f32 1.442695, %v401_v0 }
 0x25e   :  { %v492_v39 = vpop.permute.xlu1 %491 }
 0x266   :  { %v2584_v40 = vpop.permute.xlu1 %2583 }
 0x267   :  { %v2585_v42 = vunpack.i.l.bf16 %v2584_v40  ;;  %v2586_v43 = vunpack.i.h.bf16 %v2584_v40 }
 0x269   :  { %448 = vmatpush.msrb.mxu0 %v2585_v42 }
 0x26b   :  { %449 = vmatpush.msrb.mxu0 %v2586_v43 }
 0x26d   :  { %2598 = vrot.lane.b32.xlu2 %v3161_v26, %s3024_s10 }
 0x26e   :  { %v2589_v44 = vpop.permute.xlu1 %2588 }
 0x26f   :  { %v238_v45 = vpop.xlane.xlu2 %237  ;;  %v2590_v46 = vunpack.i.l.bf16 %v2589_v44  ;;  %v2591_v48 = vunpack.i.h.bf16 %v2589_v44 }
 0x270   :  { %v244_v47 = vsub.f32 %v225_v5, %v238_v45 }
 0x271   :  { %450 = vmatpush.msrb.mxu0 %v2590_v46 }
 0x272   :  { %v250_v49 = vmul.f32 1.442695, %v244_v47  ;;  %v307_v47 = vsel %vm146_vm0, %v3284_v24, 0.0 }
 0x273   :  { %451 = vmatpush.msrb.mxu0 %v2591_v48 }
 0x274   :  { %2716 = vpow2.f32 %v250_v49 }
 0x275   :  { %2608 = vrot.lane.b32.xlu2 %v3177_v27, %s3024_s10 }
 0x277   :  { %v241_v50 = vpop.xlane.xlu2 %240 }
 0x278   :  { %v245_v51 = vsub.f32 %v228_v11, %v241_v50 }
 0x27a   :  { %v3309_v52 = vpop.eup %2716  ;;  %v252_v53 = vmul.f32 1.442695, %v245_v51 }
 0x27b   :  { %2350 = vmatmul.msk.f32.gmra.mxu2 %vm146_vm0, %v3309_v52 }
 0x27c   :  { %2718 = vpow2.f32 %v252_v53 }
 0x27f   :  { %v648_v56 = vpop.permute.xlu2 %647 }
 0x280   :  { %2382 = vmatmul.msk.f32.gmra.mxu3 %vm184_vm1, %v648_v56 }
 0x282   :  { %v3314_v57 = vpop.eup %2718 }
 0x283   :  { %2351 = vmatmul.msk.f32.gmra.mxu2 %vm146_vm0, %v3314_v57 }
 0x288   :  { %2383 = vmatmul.msk.f32.gmra.mxu3 %vm184_vm1, %v650_v58 }
 0x28b   :  { %2368 = vmatmul.msk.f32.vlgmr.msrb.gmra.mxu2 %vm184_vm1, %v486_v35 }
 0x293   :  { %2369 = vmatmul.msk.f32.gmra.mxu2 %vm184_vm1, %v488_v41 }
 0x299   :  { %v396_v5 = vpop.xlane.xlu1 %395 }
 0x29a   :  { %v402_v10 = vsub.f32 %v3280_v16, %v396_v5 }
 0x29b   :  { %2370 = vmatmul.msk.f32.gmra.mxu2 %vm184_vm1, %v490_v54 }
 0x29c   :  { %v408_v12 = vmul.f32 1.442695, %v402_v10 }
 0x2a3   :  { %2371 = vmatmul.msk.f32.gmra.mxu2 %vm184_vm1, %v492_v39 }
 0x2b8   :  { %v390_v60 = vpop.xlane.xlu2 %389 }
 0x2b9   :  { %v400_v61 = vsub.f32 %v377_v25, %v390_v60 }
 0x2bb   :  { %v404_v63 = vmul.f32 1.442695, %v400_v61 }
 0x2bd   :  { %2720 = vpow2.f32 %v404_v63  ;;  %v3335_v33 = vpop.f32.mrf.mxu2 }
 0x2be   :  { %2722 = vpow2.f32 %v406_v3 }
 0x2bf   :  { %2724 = vpow2.f32 %v408_v12 }
 0x2c0   :  { %v399_v2 = vpop.xlane.xlu2 %398 }
 0x2c1   :  { %v403_v1 = vsub.f32 %v3295_v32, %v399_v2 }
 0x2c3   :  { %v2721_v8 = vpop.eup %2720  ;;  %v410_v19 = vmul.f32 1.442695, %v403_v1 }
 0x2c4   :  { %2360 = vmatmul.msk.f32.vlgmr.msrb.gmra.mxu0 %vm146_vm0, %v2721_v8  ;;  %v3326_v15 = vpop.eup %2722 }
 0x2c5   :  { %v2725_v21 = vpop.eup %2724  ;;  %2726 = vpow2.f32 %v410_v19  ;;  %v3337_v34 = vpop.f32.mrf.mxu2  ;;  %v468_v60 = vsel %vm146_vm0, %v3326_v15, 0.0 }
 0x2c6   :  { %v471_v46 = vsel %vm146_vm0, %v2725_v21, 0.0 }
 0x2c8   :  { %v706_v11 = vpop.xlane.xlu2 %705 }
 0x2c9   :  { %v716_v16 = vsub.f32 %v3300_v36, %v706_v11 }
 0x2cb   :  { %v720_v28 = vmul.f32 1.442695, %v716_v16  ;;  %v2727_v30 = vpop.eup %2726 }
 0x2cc   :  { %2361 = vmatmul.msk.f32.gmra.mxu0 %vm146_vm0, %v3326_v15  ;;  %v474_v62 = vsel %vm146_vm0, %v2727_v30, 0.0 }
 0x2cd   :  { %2728 = vpow2.f32 %v720_v28 }
 0x2d0   :  { %v2599_v18 = vpop.permute.xlu2 %2598 }
 0x2d1   :  { %v2600_v20 = vunpack.i.l.bf16 %v2599_v18  ;;  %v2601_v22 = vunpack.i.h.bf16 %v2599_v18 }
 0x2d3   :  { %764 = vmatpush.msra.mxu0 %v2600_v20  ;;  %v2729_v32 = vpop.eup %2728 }
 0x2d4   :  { %2362 = vmatmul.msk.f32.gmra.mxu0 %vm146_vm0, %v2725_v21  ;;  %v781_v61 = vsel %vm146_vm0, %v2729_v32, 0.0 }
 0x2d5   :  { %765 = vmatpush.msra.mxu0 %v2601_v22 }
 0x2d8   :  { %v2609_v23 = vpop.permute.xlu2 %2608 }
 0x2d9   :  { %v2610_v25 = vunpack.i.l.bf16 %v2609_v23  ;;  %v2611_v31 = vunpack.i.h.bf16 %v2609_v23 }
 0x2da   :  { %v695_v48 = vpop.f32.mrf.mxu3 }
 0x2db   :  { %766 = vmatpush.msra.mxu0 %v2610_v25  ;;  %v696_v49 = vadd.f32 %v695_v48, %v3242_v59 }
 0x2dc   :  { %2363 = vmatmul.msk.f32.gmra.mxu0 %vm146_vm0, %v2727_v30 }
 0x2dd   :  { %767 = vmatpush.msra.mxu0 %v2611_v31  ;;  %v707_v51 = vsel %vm146_vm0, %v696_v49, -inf }
 0x2e4   :  { %2384 = vmatmul.msk.f32.vlgmr.msra.gmra.mxu0 %vm146_vm0, %v2729_v32 }
 0x2fe   :  { %v3339_v35 = vpop.f32.mrf.mxu2 }
 0x303   :  { %v698_v50 = vpop.f32.mrf.mxu3 }
 0x304   :  { %v699_v56 = vadd.f32 %v698_v50, %v3262_v4  ;;  %v310_v50 = vsel %vm146_vm0, %v3289_v29, 0.0 }
 0x306   :  { %v3341_v36 = vpop.f32.mrf.mxu2  ;;  %v710_v24 = vsel %vm146_vm0, %v699_v56, -inf }
 0x30b   :  { %v701_v58 = vpop.f32.mrf.mxu3 }
 0x30e   :  { %v534_v37 = vpop.f32.mrf.mxu2 }
 0x30f   :  { %v535_v38 = vadd.f32 %v534_v37, %v3235_v55  ;;  %v465_v55 = vsel %vm146_vm0, %v2721_v8, 0.0 }
 0x311   :  { %v546_v39 = vsel %vm146_vm0, %v535_v38, -inf }
 0x312   :  { %547 = vmax.xlane.f32.xlu0 %v546_v39 }
 0x316   :  { %v537_v40 = vpop.f32.mrf.mxu2 }
 0x317   :  { %v538_v41 = vadd.f32 %v537_v40, %v3242_v59 }
 0x319   :  { %v549_v42 = vsel %vm146_vm0, %v538_v41, -inf }
 0x31a   :  { %550 = vmax.xlane.f32.xlu1 %v549_v42 }
 0x31e   :  { %v540_v43 = vpop.f32.mrf.mxu2 }
 0x31f   :  { %v541_v44 = vadd.f32 %v540_v43, %v3262_v4 }
 0x321   :  { %v552_v45 = vsel %vm146_vm0, %v541_v44, -inf }
 0x322   :  { %553 = vmax.xlane.f32.xlu2 %v552_v45 }
 0x326   :  { %2593 = vrot.lane.b32.xlu0 %v3161_v26, %s3025_s11  ;;  %v543_v26 = vpop.f32.mrf.mxu2 }
 0x327   :  { %v544_v53 = vadd.f32 %v543_v26, %v3271_v9 }
 0x329   :  { %v555_v54 = vsel %vm146_vm0, %v544_v53, -inf }
 0x32a   :  { %466 = vadd.xlane.f32.xlu2 %v465_v55 }
 0x332   :  { %472 = vadd.xlane.f32.xlu2 %v471_v46 }
 0x333   :  { %2603 = vrot.lane.b32.xlu1 %v3177_v27, %s3025_s11  ;;  %v702_v27 = vadd.f32 %v701_v58, %v3271_v9 }
 0x335   :  { %v713_v59 = vsel %vm146_vm0, %v702_v27, -inf }
 0x33a   :  { %308 = vadd.xlane.f32.xlu2 %v307_v47 }
 0x350   :  { %708 = vmax.xlane.f32.xlu0 %v707_v51 }
 0x358   :  { %556 = vmax.xlane.f32.xlu0 %v555_v54  ;;  %v453_v54 = vpop.f32.mrf.mxu0 }
 0x35d   :  { %711 = vmax.xlane.f32.xlu1 %v710_v24 }
 0x360   :  { %714 = vmax.xlane.f32.xlu0 %v713_v59  ;;  %v456_v24 = vpop.f32.mrf.mxu0 }
 0x368   :  { %469 = vadd.xlane.f32.xlu0 %v468_v60  ;;  %v459_v29 = vpop.f32.mrf.mxu0 }
 0x370   :  { %782 = vadd.xlane.f32.xlu0 %v781_v61 }
 0x378   :  { %475 = vadd.xlane.f32.xlu0 %v474_v62  ;;  %v313_v62 = vsel %vm146_vm0, %v3309_v52, 0.0 }
 0x385   :  { %v548_v0 = vpop.xlane.xlu0 %547 }
 0x386   :  { %v558_v11 = vsub.f32 %v535_v38, %v548_v0 }
 0x388   :  { %v562_v12 = vmul.f32 1.442695, %v558_v11 }
 0x38d   :  { %v551_v4 = vpop.xlane.xlu1 %550 }
 0x38e   :  { %v559_v63 = vsub.f32 %v538_v41, %v551_v4  ;;  %v462_v4 = vpop.f32.mrf.mxu0 }
 0x390   :  { %v564_v9 = vmul.f32 1.442695, %v559_v63 }
 0x392   :  { %2730 = vpow2.f32 %v564_v9 }
 0x393   :  { %2732 = vpow2.f32 %v562_v12 }
 0x395   :  { %v554_v19 = vpop.xlane.xlu2 %553 }
 0x396   :  { %v560_v21 = vsub.f32 %v541_v44, %v554_v19  ;;  %v769_v9 = vpop.f32.mrf.mxu0 }
 0x398   :  { %v2731_v2 = vpop.eup %2730  ;;  %v2594_v3 = vpop.permute.xlu0 %2593  ;;  %v566_v22 = vmul.f32 1.442695, %v560_v21 }
 0x399   :  { %v626_v5 = vsel %vm146_vm0, %v2731_v2, 0.0  ;;  %v2595_v8 = vunpack.i.l.bf16 %v2594_v3  ;;  %v2596_v10 = vunpack.i.h.bf16 %v2594_v3  ;;  %v2733_v20 = vpop.eup %2732 }
 0x39a   :  { %627 = vadd.xlane.f32.xlu2 %v626_v5  ;;  %2734 = vpow2.f32 %v566_v22  ;;  %v623_v51 = vsel %vm146_vm0, %v2733_v20, 0.0 }
 0x39b   :  { %606 = vmatpush.msrb.mxu1 %v2595_v8 }
 0x39d   :  { %607 = vmatpush.msrb.mxu1 %v2596_v10 }
 0x3a0   :  { %v2735_v16 = vpop.eup %2734 }
 0x3a1   :  { %v629_v26 = vsel %vm146_vm0, %v2735_v16, 0.0 }
 0x3a5   :  { %v2604_v15 = vpop.permute.xlu1 %2603 }
 0x3a6   :  { %v2605_v1 = vunpack.i.l.bf16 %v2604_v15  ;;  %v2606_v18 = vunpack.i.h.bf16 %v2604_v15 }
 0x3a8   :  { %608 = vmatpush.msrb.mxu1 %v2605_v1 }
 0x3aa   :  { %609 = vmatpush.msrb.mxu1 %v2606_v18 }
 0x3ab   :  { %2372 = vmatmul.msk.f32.vlgmr.msrb.gmra.mxu1 %vm146_vm0, %v2733_v20 }
 0x3b3   :  { %2373 = vmatmul.msk.f32.gmra.mxu1 %vm146_vm0, %v2731_v2 }
 0x3bb   :  { %2374 = vmatmul.msk.f32.gmra.mxu1 %vm146_vm0, %v2735_v16 }
 0x3c3   :  { %v709_v23 = vpop.xlane.xlu0 %708 }
 0x3c4   :  { %v717_v28 = vsub.f32 %v696_v49, %v709_v23 }
 0x3c6   :  { %v722_v25 = vmul.f32 1.442695, %v717_v28 }
 0x3c8   :  { %2736 = vpow2.f32 %v722_v25 }
 0x3cb   :  { %v557_v30 = vpop.xlane.xlu0 %556 }
 0x3cc   :  { %v561_v31 = vsub.f32 %v544_v53, %v557_v30 }
 0x3ce   :  { %v2737_v32 = vpop.eup %2736  ;;  %v568_v37 = vmul.f32 1.442695, %v561_v31 }
 0x3cf   :  { %2385 = vmatmul.msk.f32.gmra.mxu0 %vm146_vm0, %v2737_v32  ;;  %v784_v38 = vsel %vm146_vm0, %v2737_v32, 0.0 }
 0x3d0   :  { %2738 = vpow2.f32 %v568_v37  ;;  %v712_v39 = vpop.xlane.xlu1 %711  ;;  %785 = vadd.xlane.f32.xlu1 %v784_v38 }
 0x3d1   :  { %v718_v40 = vsub.f32 %v699_v56, %v712_v39  ;;  %v467_v56 = vpop.xlane.xlu2 %466 }
 0x3d3   :  { %v724_v41 = vmul.f32 1.442695, %v718_v40  ;;  %v715_v42 = vpop.xlane.xlu0 %714 }
 0x3d4   :  { %v719_v43 = vsub.f32 %v702_v27, %v715_v42 }
 0x3d5   :  { %2740 = vpow2.f32 %v724_v41 }
 0x3d6   :  { %v2739_v44 = vpop.eup %2738  ;;  %v726_v45 = vmul.f32 1.442695, %v719_v43 }
 0x3d7   :  { %2375 = vmatmul.msk.f32.gmra.mxu1 %vm146_vm0, %v2739_v44  ;;  %v632_v55 = vsel %vm146_vm0, %v2739_v44, 0.0 }
 0x3d8   :  { %2742 = vpow2.f32 %v726_v45  ;;  %633 = vadd.xlane.f32.xlu2 %v632_v55 }
 0x3d9   :  { %v473_v2 = vpop.xlane.xlu2 %472 }
 0x3db   :  { %v2741_v46 = vpop.eup %2740  ;;  %v470_v53 = vpop.xlane.xlu0 %469 }
 0x3dc   :  { %2386 = vmatmul.msk.f32.gmra.mxu0 %vm146_vm0, %v2741_v46  ;;  %v787_v47 = vsel %vm146_vm0, %v2741_v46, 0.0  ;;  %2744 = vrcp.f32 %v470_v53 }
 0x3dd   :  { %788 = vadd.xlane.f32.xlu0 %v787_v47  ;;  %2746 = vrcp.f32 %v467_v56  ;;  %v316_v56 = vsel %vm146_vm0, %v3314_v57, 0.0 }
 0x3de   :  { %v2743_v48 = vpop.eup %2742 }
 0x3df   :  { %v790_v49 = vsel %vm146_vm0, %v2743_v48, 0.0 }
 0x3e0   :  { %791 = vadd.xlane.f32.xlu1 %v790_v49 }
 0x3e1   :  { %v309_v52 = vpop.xlane.xlu2 %308 }
 0x3e2   :  { %v2745_v58 = vpop.eup %2744 }
 0x3e3   :  { %v2747_v27 = vpop.eup %2746  ;;  %v482_v59 = vmul.f32 %v2745_v58, %v456_v24  ;;  %v783_v63 = vpop.xlane.xlu0 %782  ;;  %v2533_v58 = vld [vmem:[#allocation5 + $0x8] sm:$0xff] }
 0x3e4   :  { %2387 = vmatmul.msk.f32.gmra.mxu0 %vm146_vm0, %v2743_v48  ;;  %v481_v60 = vmul.f32 %v2747_v27, %v453_v54  ;;  %2748 = vrcp.f32 %v783_v63  ;;  %890 = vmatpush.bf16.msra.mxu2 %v2533_v58  ;;  %v2532_v27 = vld [vmem:[#allocation5] sm:$0xff] }
 0x3e5   :  { %311 = vadd.xlane.f32.xlu0 %v310_v50 }
 0x3e6   :  { %v2612_v61 = vpack.i.bf16 %v482_v59, %v481_v60 }
 0x3e8   :  { %624 = vadd.xlane.f32.xlu1 %v623_v51  ;;  %891 = vmatpush.bf16.msra.mxu2 %v2532_v27  ;;  %v3028_v27 = vmov 32.0  }
 0x3ea   :  { %v2749_v5 = vpop.eup %2748 }
 0x3eb   :  { %v476_v3 = vpop.xlane.xlu0 %475  ;;  %v797_v12 = vmul.f32 %v2749_v5, %v769_v9 }
 0x3f0   :  { %630 = vadd.xlane.f32.xlu1 %v629_v26 }
 0x409   :  { %2613 = vrot.lane.b32.xlu1 %v2612_v61, %s3015_s25 }
 0x40d   :  { %v628_v28 = vpop.xlane.xlu2 %627 }
 0x428   :  { %v611_v10 = vpop.f32.mrf.mxu1 }
 0x430   :  { %v614_v16 = vpop.f32.mrf.mxu1 }
 0x433   :  { %314 = vadd.xlane.f32.xlu1 %v313_v62 }
 0x438   :  { %v617_v30 = vpop.f32.mrf.mxu1 }
 0x443   :  { %v786_v0 = vpop.xlane.xlu1 %785 }
 0x444   :  { %2750 = vrcp.f32 %v786_v0 }
 0x445   :  { %2752 = vrcp.f32 %v476_v3 }
 0x446   :  { %2754 = vrcp.f32 %v473_v2 }
 0x447   :  { %2756 = vrcp.f32 %v628_v28 }
 0x44a   :  { %v2751_v8 = vpop.eup %2750 }
 0x44b   :  { %v2753_v18 = vpop.eup %2752  ;;  %v634_v31 = vpop.xlane.xlu2 %633 }
 0x44c   :  { %v772_v11 = vpop.f32.mrf.mxu0  ;;  %v2755_v19 = vpop.eup %2754  ;;  %v484_v21 = vmul.f32 %v2753_v18, %v462_v4 }
 0x44d   :  { %v798_v15 = vmul.f32 %v2751_v8, %v772_v11  ;;  %v483_v22 = vmul.f32 %v2755_v19, %v459_v29  ;;  %v2757_v32 = vpop.eup %2756 }
 0x44e   :  { %v640_v38 = vmul.f32 %v2757_v32, %v614_v16 }
 0x44f   :  { %v2617_v1 = vpack.i.bf16 %v798_v15, %v797_v12  ;;  %v2627_v23 = vpack.i.bf16 %v484_v21, %v483_v22 }
 0x450   :  { %v789_v45 = vpop.xlane.xlu0 %788 }
 0x451   :  { %2618 = vrot.lane.b32.xlu0 %v2617_v1, %s3026_s12 }
 0x453   :  { %v792_v20 = vpop.xlane.xlu1 %791 }
 0x454   :  { %v620_v43 = vpop.f32.mrf.mxu1 }
 0x458   :  { %v312_v24 = vpop.xlane.xlu0 %311 }
 0x459   :  { %2628 = vrot.lane.b32.xlu0 %v2627_v23, %s3015_s25  ;;  %v775_v41 = vpop.f32.mrf.mxu0 }
 0x45b   :  { %v625_v25 = vpop.xlane.xlu1 %624 }
 0x45c   :  { %2758 = vrcp.f32 %v625_v25 }
 0x45d   :  { %2760 = vrcp.f32 %v634_v31 }
 0x461   :  { %v778_v49 = vpop.f32.mrf.mxu0 }
 0x462   :  { %v2759_v37 = vpop.eup %2758 }
 0x463   :  { %v631_v39 = vpop.xlane.xlu1 %630  ;;  %v639_v40 = vmul.f32 %v2759_v37, %v611_v10  ;;  %v2761_v44 = vpop.eup %2760 }
 0x464   :  { %2762 = vrcp.f32 %v631_v39  ;;  %v642_v46 = vmul.f32 %v2761_v44, %v620_v43 }
 0x465   :  { %v2622_v42 = vpack.i.bf16 %v640_v38, %v639_v40  ;;  %2764 = vrcp.f32 %v792_v20 }
 0x466   :  { %2766 = vrcp.f32 %v789_v45 }
 0x467   :  { %2623 = vrot.lane.b32.xlu2 %v2622_v42, %s3027_s14  ;;  %2768 = vrcp.f32 %v309_v52 }
 0x468   :  { %2770 = vrcp.f32 %v312_v24 }
 0x46a   :  { %v2763_v55 = vpop.eup %2762 }
 0x46b   :  { %v641_v47 = vmul.f32 %v2763_v55, %v617_v30  ;;  %v2765_v50 = vpop.eup %2764 }
 0x46c   :  { %v800_v51 = vmul.f32 %v2765_v50, %v778_v49  ;;  %v2767_v26 = vpop.eup %2766 }
 0x46d   :  { %v2632_v48 = vpack.i.bf16 %v642_v46, %v641_v47  ;;  %v799_v53 = vmul.f32 %v2767_v26, %v775_v41  ;;  %v2769_v60 = vpop.eup %2768 }
 0x46e   :  { %v2771_v61 = vpop.eup %2770  ;;  %v323_v4 = vmul.f32 %v2769_v60, %v3335_v33 }
 0x46f   :  { %2633 = vrot.lane.b32.xlu0 %v2632_v48, %s3027_s14  ;;  %v2637_v54 = vpack.i.bf16 %v800_v51, %v799_v53  ;;  %v324_v63 = vmul.f32 %v2771_v61, %v3337_v34 }
 0x477   :  { %2638 = vrot.lane.b32.xlu0 %v2637_v54, %s3026_s12 }
 0x47b   :  { %v2614_v59 = vpop.permute.xlu1 %2613 }
 0x47c   :  { %v2616_v29 = vunpack.i.h.bf16 %v2614_v59  ;;  %v2615_v62 = vunpack.i.l.bf16 %v2614_v59 }
 0x47e   :  { %v849_v2 = vsel %vm184_vm1, %v323_v4, %v2615_v62  ;;  %v850_v3 = vsel %vm184_vm1, %v324_v63, %v2616_v29 }
 0x490   :  { %317 = vadd.xlane.f32.xlu2 %v316_v56 }
 0x4a6   :  { %v315_v52 = vpop.xlane.xlu1 %314 }
 0x4a7   :  { %2772 = vrcp.f32 %v315_v52  ;;  %v2535_v52 = vld [vmem:[#allocation7 + $0x8] sm:$0xff] }
 0x4a8   :  { %1039 = vmatpush.bf16.msra.mxu1 %v2535_v52 }
 0x4ad   :  { %v2773_v20 = vpop.eup %2772 }
 0x4ae   :  { %v325_v28 = vmul.f32 %v2773_v20, %v3339_v35  ;;  %v865_v35 = vperm.slane %v3134_v17, 1 }
 0x4c1   :  { %v2624_v0 = vpop.permute.xlu2 %2623 }
 0x4c2   :  { %v2626_v57 = vunpack.i.h.bf16 %v2624_v0  ;;  %v2625_v9 = vunpack.i.l.bf16 %v2624_v0 }
 0x4c3   :  { %v2619_v5 = vpop.permute.xlu0 %2618 }
 0x4c4   :  { %v855_v8 = vsel %vm853_vm2, %v850_v3, %v2626_v57  ;;  %v854_v10 = vsel %vm853_vm2, %v849_v2, %v2625_v9  ;;  %v2621_v11 = vunpack.i.h.bf16 %v2619_v5  ;;  %v2620_v12 = vunpack.i.l.bf16 %v2619_v5 }
 0x4c6   :  { %v859_v33 = vsel %vm858_vm3, %v854_v10, %v2620_v12  ;;  %v860_v34 = vsel %vm858_vm3, %v855_v8, %v2621_v11 }
 0x4c7   :  { %v863_v15 = vpack.c.bf16 %v860_v34, %v859_v33 }
 0x4c9   :  { %2396 = vmatmul.msk.bf16.vlgmr.msra.gmra.mxu2 %vm146_vm0, %v863_v15 }
 0x4cb   :  { %v2629_v1 = vpop.permute.xlu0 %2628 }
 0x4cc   :  { %v2630_v22 = vunpack.i.l.bf16 %v2629_v1  ;;  %v2631_v25 = vunpack.i.h.bf16 %v2629_v1 }
 0x4ce   :  { %v851_v37 = vsel %vm184_vm1, %v325_v28, %v2630_v22  ;;  %v2534_v22 = vld [vmem:[#allocation7] sm:$0xff] }
 0x4cf   :  { %1040 = vmatpush.bf16.msra.mxu1 %v2534_v22 }
 0x4e1   :  { %v2634_v18 = vpop.permute.xlu0 %2633 }
 0x4e2   :  { %v2635_v23 = vunpack.i.l.bf16 %v2634_v18  ;;  %v2636_v32 = vunpack.i.h.bf16 %v2634_v18 }
 0x4e4   :  { %v856_v40 = vsel %vm853_vm2, %v851_v37, %v2635_v23 }
 0x4e9   :  { %v2639_v21 = vpop.permute.xlu0 %2638 }
 0x4ea   :  { %v2640_v30 = vunpack.i.l.bf16 %v2639_v21  ;;  %v2641_v38 = vunpack.i.h.bf16 %v2639_v21 }
 0x4ec   :  { %v861_v42 = vsel %vm858_vm3, %v856_v40, %v2640_v30 }
 0x503   :  { %v318_v19 = vpop.xlane.xlu2 %317 }
 0x504   :  { %2774 = vrcp.f32 %v318_v19 }
 0x505   :  { %2776 = vrcp.f32 %v3028_v27 }
 0x50a   :  { %v2775_v16 = vpop.eup %2774 }
 0x50b   :  { %v326_v31 = vmul.f32 %v2775_v16, %v3341_v36 }
 0x50d   :  { %v852_v39 = vsel %vm184_vm1, %v326_v31, %v2631_v25 }
 0x50e   :  { %v857_v41 = vsel %vm853_vm2, %v852_v39, %v2636_v32 }
 0x50f   :  { %v862_v43 = vsel %vm858_vm3, %v857_v41, %v2641_v38 }
 0x510   :  { %v864_v44 = vpack.c.bf16 %v862_v43, %v861_v42 }
 0x512   :  { %2397 = vmatmul.msk.bf16.gmra.mxu2 %vm146_vm0, %v864_v44 }
 0x54c   :  { %v893_v36 = vpop.f32.mrf.mxu2 }
 0x54d   :  { %v894_v45 = vadd.f32 %v893_v36, %v865_v35 }
 0x54f   :  { %v903_v55 = vadd.f32 %v894_v45, %v3108_v6 }
 0x551   :  { %v907_v46 = vsel %vm146_vm0, %v903_v55, 0.0 }
 0x552   :  { %908 = vadd.xlane.f32.xlu0 %v907_v46 }
 0x554   :  { %v895_v47 = vpop.f32.mrf.mxu2 }
 0x555   :  { %v896_v48 = vadd.f32 %v895_v47, %v865_v35 }
 0x557   :  { %v904_v49 = vadd.f32 %v896_v48, %v3110_v7  ;;  %v2777_v7 = vpop.eup %2776 }
 0x558   :  { %v920_v24 = vmul.f32 32.0, %v2777_v7  ;;  %vm924_vm4 = vweird.f32 %v2777_v7 }
 0x559   :  { %v910_v50 = vsel %vm146_vm0, %v904_v49, 0.0 }
 0x55a   :  { %911 = vadd.xlane.f32.xlu1 %v910_v50  ;;  %v921_v59 = vsub.f32 1.0, %v920_v24 }
 0x55c   :  { %v922_v60 = vmul.f32 %v2777_v7, %v921_v59 }
 0x55e   :  { %v923_v61 = vadd.f32 %v2777_v7, %v922_v60 }
 0x560   :  { %v3422_v29 = vsel %vm924_vm4, %v2777_v7, %v923_v61 }
 0x595   :  { %v898_v51 = vpop.f32.mrf.mxu2 }
 0x596   :  { %v899_v26 = vadd.f32 %v898_v51, %v865_v35 }
 0x598   :  { %v905_v53 = vadd.f32 %v899_v26, %v3127_v13 }
 0x59a   :  { %v913_v17 = vsel %vm146_vm0, %v905_v53, 0.0 }
 0x59b   :  { %914 = vadd.xlane.f32.xlu2 %v913_v17 }
 0x59d   :  { %v900_v54 = vpop.f32.mrf.mxu2 }
 0x59e   :  { %v901_v56 = vadd.f32 %v900_v54, %v865_v35  ;;  %v3442_v35 = vld [vmem:[#allocation8] sm:$0xff] }
 0x59f   :  { %v1002_v36 = vperm.slane %v3442_v35, 2  ;;  %v1007_v47 = vperm.slane %v3442_v35, 3 }
 0x5a0   :  { %v906_v6 = vadd.f32 %v901_v56, %v3129_v14 }
 0x5a2   :  { %v916_v58 = vsel %vm146_vm0, %v906_v6, 0.0 }
 0x5a3   :  { %917 = vadd.xlane.f32.xlu1 %v916_v58 }
 0x5c5   :  { %v909_v13 = vpop.xlane.xlu0 %908 }
 0x5c6   :  { %v926_v62 = vmul.f32 %v3422_v29, %v909_v13 }
 0x5c8   :  { %v930_v4 = vsub.f32 %v903_v55, %v926_v62 }
 0x5ca   :  { %v934_v63 = vmul.f32 %v930_v4, %v930_v4 }
 0x5cc   :  { %v938_v14 = vsel %vm146_vm0, %v934_v63, 0.0 }
 0x5cd   :  { %v912_v0 = vpop.xlane.xlu1 %911  ;;  %939 = vadd.xlane.f32.xlu2 %v938_v14 }
 0x5ce   :  { %v927_v57 = vmul.f32 %v3422_v29, %v912_v0 }
 0x5d0   :  { %v931_v9 = vsub.f32 %v904_v49, %v927_v57 }
 0x5d2   :  { %v935_v2 = vmul.f32 %v931_v9, %v931_v9 }
 0x5d4   :  { %v941_v3 = vsel %vm146_vm0, %v935_v2, 0.0 }
 0x5d5   :  { %942 = vadd.xlane.f32.xlu1 %v941_v3 }
 0x60e   :  { %v915_v5 = vpop.xlane.xlu2 %914 }
 0x60f   :  { %v928_v8 = vmul.f32 %v3422_v29, %v915_v5 }
 0x611   :  { %v3429_v10 = vsub.f32 %v905_v53, %v928_v8 }
 0x613   :  { %v936_v11 = vmul.f32 %v3429_v10, %v3429_v10 }
 0x615   :  { %v944_v12 = vsel %vm146_vm0, %v936_v11, 0.0 }
 0x616   :  { %v918_v33 = vpop.xlane.xlu1 %917  ;;  %945 = vadd.xlane.f32.xlu2 %v944_v12 }
 0x617   :  { %v929_v34 = vmul.f32 %v3422_v29, %v918_v33 }
 0x619   :  { %v3435_v15 = vsub.f32 %v906_v6, %v929_v34 }
 0x61b   :  { %v937_v1 = vmul.f32 %v3435_v15, %v3435_v15 }
 0x61d   :  { %v947_v18 = vsel %vm146_vm0, %v937_v1, 0.0  ;;  %v2539_v1 = vld [vmem:[%s3904_s6 + $0x18] sm:$0xff] }
 0x61e   :  { %948 = vadd.xlane.f32.xlu1 %v947_v18  ;;  %1094 = vmatpush.bf16.msra.mxu3 %v2539_v1  ;;  %v2536_v18 = vld [vmem:[%s3904_s6] sm:$0xff] }
 0x640   :  { %v940_v19 = vpop.xlane.xlu2 %939 }
 0x641   :  { %v950_v20 = vmul.f32 %v940_v19, %v3422_v29  ;;  %v1014_v19 = vperm.slane %v3442_v35, 4 }
 0x643   :  { %v954_v21 = vadd.f32 1e-05, %v950_v20 }
 0x645   :  { %2778 = vrsqrt.f32 %v954_v21  ;;  %vm964_vm6 = vweird.f32 %v954_v21 }
 0x648   :  { %v943_v16 = vpop.xlane.xlu1 %942 }
 0x649   :  { %v951_v23 = vmul.f32 %v943_v16, %v3422_v29 }
 0x64b   :  { %v2779_v28 = vpop.eup %2778  ;;  %v955_v25 = vadd.f32 1e-05, %v951_v23 }
 0x64c   :  { %v959_v30 = vmul.f32 %v2779_v28, %v954_v21  ;;  %vm965_vm5 = vweird.f32 %v2779_v28 }
 0x64d   :  { %2780 = vrsqrt.f32 %v955_v25  ;;  %vm966_vm7 = vmor %vm964_vm6, %vm965_vm5  ;;  %vm974_vm9 = vweird.f32 %v955_v25  ;;  %vm1083_vm5 = vcmask 523264  }
 0x64e   :  { %v960_v31 = vmul.f32 %v2779_v28, %v959_v30 }
 0x650   :  { %v961_v32 = vmul.f32 0.5, %v960_v31 }
 0x652   :  { %v962_v37 = vsub.f32 1.5, %v961_v32 }
 0x653   :  { %v2781_v38 = vpop.eup %2780 }
 0x654   :  { %v963_v39 = vmul.f32 %v2779_v28, %v962_v37  ;;  %v969_v40 = vmul.f32 %v2781_v38, %v955_v25  ;;  %vm975_vm8 = vweird.f32 %v2781_v38 }
 0x655   :  { %vm976_vm10 = vmor %vm974_vm9, %vm975_vm8 }
 0x656   :  { %v970_v41 = vmul.f32 %v2781_v38, %v969_v40  ;;  %v967_v42 = vsel %vm966_vm7, %v2779_v28, %v963_v39  ;;  %v1058_v40 = vperm.slane %v3442_v35, 5 }
 0x657   :  { %v998_v45 = vmul.f32 %v967_v42, %v930_v4 }
 0x658   :  { %v971_v43 = vmul.f32 0.5, %v970_v41 }
 0x659   :  { %v1003_v48 = vmul.f32 %v1002_v36, %v998_v45 }
 0x65a   :  { %v972_v44 = vsub.f32 1.5, %v971_v43 }
 0x65b   :  { %v3446_v51 = vadd.f32 %v1007_v47, %v1003_v48 }
 0x65c   :  { %v973_v55 = vmul.f32 %v2781_v38, %v972_v44 }
 0x65e   :  { %v977_v46 = vsel %vm976_vm10, %v2781_v38, %v973_v55 }
 0x65f   :  { %v999_v49 = vmul.f32 %v977_v46, %v931_v9 }
 0x661   :  { %v1004_v50 = vmul.f32 %v1002_v36, %v999_v49 }
 0x663   :  { %v3448_v26 = vadd.f32 %v1007_v47, %v1004_v50 }
 0x665   :  { %v1012_v53 = vpack.c.bf16 %v3448_v26, %v3446_v51 }
 0x667   :  { %2406 = vmatmul.msk.bf16.vlgmr.msra.gmra.mxu1 %vm146_vm0, %v1012_v53 }
 0x689   :  { %v946_v17 = vpop.xlane.xlu2 %945 }
 0x68a   :  { %v952_v54 = vmul.f32 %v946_v17, %v3422_v29 }
 0x68c   :  { %v956_v56 = vadd.f32 1e-05, %v952_v54 }
 0x68e   :  { %2782 = vrsqrt.f32 %v956_v56  ;;  %vm984_vm12 = vweird.f32 %v956_v56 }
 0x691   :  { %v949_v6 = vpop.xlane.xlu1 %948 }
 0x692   :  { %v953_v58 = vmul.f32 %v949_v6, %v3422_v29 }
 0x694   :  { %v2783_v27 = vpop.eup %2782  ;;  %v957_v7 = vadd.f32 1e-05, %v953_v58 }
 0x695   :  { %v979_v24 = vmul.f32 %v2783_v27, %v956_v56  ;;  %vm985_vm11 = vweird.f32 %v2783_v27 }
 0x696   :  { %2784 = vrsqrt.f32 %v957_v7  ;;  %vm986_vm13 = vmor %vm984_vm12, %vm985_vm11  ;;  %vm994_vm15 = vweird.f32 %v957_v7 }
 0x697   :  { %v980_v59 = vmul.f32 %v2783_v27, %v979_v24 }
 0x699   :  { %v981_v60 = vmul.f32 0.5, %v980_v59 }
 0x69b   :  { %v982_v61 = vsub.f32 1.5, %v981_v60 }
 0x69c   :  { %v2785_v13 = vpop.eup %2784 }
 0x69d   :  { %v983_v62 = vmul.f32 %v2783_v27, %v982_v61  ;;  %v989_v4 = vmul.f32 %v2785_v13, %v957_v7  ;;  %vm995_vm14 = vweird.f32 %v2785_v13 }
 0x69e   :  { %vm996_vm4 = vmor %vm994_vm15, %vm995_vm14 }
 0x69f   :  { %v990_v63 = vmul.f32 %v2785_v13, %v989_v4  ;;  %v987_v14 = vsel %vm986_vm13, %v2783_v27, %v983_v62 }
 0x6a0   :  { %v1000_v9 = vmul.f32 %v987_v14, %v3429_v10  ;;  %v2538_v10 = vld [vmem:[%s3904_s6 + $0x10] sm:$0xff] }
 0x6a1   :  { %v991_v0 = vmul.f32 0.5, %v990_v63  ;;  %1095 = vmatpush.bf16.msra.mxu3 %v2538_v10 }
 0x6a2   :  { %v1005_v8 = vmul.f32 %v1002_v36, %v1000_v9 }
 0x6a3   :  { %v992_v57 = vsub.f32 1.5, %v991_v0 }
 0x6a4   :  { %v1010_v12 = vadd.f32 %v1007_v47, %v1005_v8 }
 0x6a5   :  { %v993_v2 = vmul.f32 %v2785_v13, %v992_v57 }
 0x6a7   :  { %v997_v3 = vsel %vm996_vm4, %v2785_v13, %v993_v2 }
 0x6a8   :  { %v1001_v5 = vmul.f32 %v997_v3, %v3435_v15  ;;  %v2537_v15 = vld [vmem:[%s3904_s6 + $0x8] sm:$0xff] }
 0x6a9   :  { %1096 = vmatpush.bf16.msra.mxu3 %v2537_v15 }
 0x6aa   :  { %v1006_v11 = vmul.f32 %v1002_v36, %v1001_v5  ;;  %v2541_v5 = vld [vmem:[#allocation2 + $0x18] sm:$0xff] }
 0x6ab   :  { %1264 = vmatpush.bf16.msrb.mxu0 %v2541_v5 }
 0x6ac   :  { %v1011_v33 = vadd.f32 %v1007_v47, %v1006_v11 }
 0x6ad   :  { %1097 = vmatpush.bf16.msra.mxu3 %v2536_v18 }
 0x6ae   :  { %v1013_v34 = vpack.c.bf16 %v1011_v33, %v1010_v12 }
 0x6b0   :  { %2407 = vmatmul.msk.bf16.gmra.mxu1 %vm146_vm0, %v1013_v34 }
 0x6e4   :  { %v1042_v52 = vpop.f32.mrf.mxu1 }
 0x6e5   :  { %v1043_v20 = vadd.f32 %v1042_v52, %v1014_v19 }
 0x6e7   :  { %v1052_v16 = vmax.f32 %v1043_v20, 0.0 }
 0x6ec   :  { %v1044_v21 = vpop.f32.mrf.mxu1 }
 0x6ed   :  { %v1045_v22 = vadd.f32 %v1044_v21, %v1014_v19 }
 0x6ef   :  { %v1053_v23 = vmax.f32 %v1045_v22, 0.0 }
 0x6f1   :  { %v1056_v28 = vpack.c.bf16 %v1053_v23, %v1052_v16 }
 0x6f3   :  { %2424 = vmatmul.msk.bf16.vlgmr.msra.gmra.mxu3 %vm1083_vm5, %v1056_v28 }
 0x72d   :  { %v1047_v25 = vpop.f32.mrf.mxu1 }
 0x72e   :  { %v1048_v30 = vadd.f32 %v1047_v25, %v1014_v19 }
 0x730   :  { %v1054_v37 = vmax.f32 %v1048_v30, 0.0 }
 0x735   :  { %v1049_v31 = vpop.f32.mrf.mxu1 }
 0x736   :  { %v1050_v32 = vadd.f32 %v1049_v31, %v1014_v19  ;;  %v1201_v31 = vperm.slane %v3442_v35, 6 }
 0x738   :  { %v1055_v38 = vmax.f32 %v1050_v32, 0.0 }
 0x73a   :  { %v1057_v39 = vpack.c.bf16 %v1055_v38, %v1054_v37 }
 0x73c   :  { %2425 = vmatmul.msk.bf16.gmra.mxu3 %vm1083_vm5, %v1057_v39  ;;  %v1206_v39 = vperm.slane %v3442_v35, 7 }
 0x776   :  { %v1099_v41 = vpop.f32.mrf.mxu3 }
 0x777   :  { %v1100_v42 = vadd.f32 %v1099_v41, %v1058_v40 }
 0x779   :  { %v1109_v43 = vadd.f32 %v1100_v42, %v3446_v51 }
 0x77b   :  { %v1113_v44 = vsel %vm146_vm0, %v1109_v43, 0.0 }
 0x77c   :  { %1114 = vadd.xlane.f32.xlu2 %v1113_v44 }
 0x77e   :  { %v1101_v36 = vpop.f32.mrf.mxu3 }
 0x77f   :  { %v1102_v45 = vadd.f32 %v1101_v36, %v1058_v40 }
 0x781   :  { %v1110_v55 = vadd.f32 %v1102_v45, %v3448_v26 }
 0x783   :  { %v1116_v46 = vsel %vm146_vm0, %v1110_v55, 0.0 }
 0x784   :  { %1117 = vadd.xlane.f32.xlu0 %v1116_v46 }
 0x7bf   :  { %v1104_v47 = vpop.f32.mrf.mxu3 }
 0x7c0   :  { %v1105_v48 = vadd.f32 %v1104_v47, %v1058_v40 }
 0x7c2   :  { %v1111_v49 = vadd.f32 %v1105_v48, %v1010_v12 }
 0x7c4   :  { %v1119_v50 = vsel %vm146_vm0, %v1111_v49, 0.0 }
 0x7c5   :  { %1120 = vadd.xlane.f32.xlu1 %v1119_v50 }
 0x7c7   :  { %v1106_v53 = vpop.f32.mrf.mxu3 }
 0x7c8   :  { %v1107_v17 = vadd.f32 %v1106_v53, %v1058_v40 }
 0x7ca   :  { %v1112_v54 = vadd.f32 %v1107_v17, %v1011_v33  ;;  %v2540_v33 = vld [vmem:[#allocation2 + $0x10] sm:$0xff] }
 0x7cb   :  { %1265 = vmatpush.bf16.msrb.mxu0 %v2540_v33 }
 0x7cc   :  { %v1122_v51 = vsel %vm146_vm0, %v1112_v54, 0.0 }
 0x7cd   :  { %1123 = vadd.xlane.f32.xlu2 %v1122_v51 }
 0x7ef   :  { %v1115_v56 = vpop.xlane.xlu2 %1114 }
 0x7f0   :  { %v1125_v6 = vmul.f32 %v1115_v56, %v3422_v29 }
 0x7f2   :  { %v1129_v58 = vsub.f32 %v1109_v43, %v1125_v6 }
 0x7f4   :  { %v1133_v26 = vmul.f32 %v1129_v58, %v1129_v58 }
 0x7f6   :  { %v1137_v27 = vsel %vm146_vm0, %v1133_v26, 0.0 }
 0x7f7   :  { %v1118_v7 = vpop.xlane.xlu0 %1117  ;;  %1138 = vadd.xlane.f32.xlu0 %v1137_v27 }
 0x7f8   :  { %v1126_v24 = vmul.f32 %v1118_v7, %v3422_v29 }
 0x7fa   :  { %v1130_v59 = vsub.f32 %v1110_v55, %v1126_v24 }
 0x7fc   :  { %v1134_v60 = vmul.f32 %v1130_v59, %v1130_v59 }
 0x7fe   :  { %v1140_v61 = vsel %vm146_vm0, %v1134_v60, 0.0 }
 0x7ff   :  { %1141 = vadd.xlane.f32.xlu1 %v1140_v61 }
 0x838   :  { %v1121_v13 = vpop.xlane.xlu1 %1120 }
 0x839   :  { %v1127_v62 = vmul.f32 %v1121_v13, %v3422_v29 }
 0x83b   :  { %v3485_v4 = vsub.f32 %v1111_v49, %v1127_v62 }
 0x83d   :  { %v1135_v63 = vmul.f32 %v3485_v4, %v3485_v4 }
 0x83f   :  { %v1143_v14 = vsel %vm146_vm0, %v1135_v63, 0.0 }
 0x840   :  { %1144 = vadd.xlane.f32.xlu2 %v1143_v14  ;;  %v1124_v0 = vpop.xlane.xlu2 %1123 }
 0x841   :  { %v1128_v57 = vmul.f32 %v1124_v0, %v3422_v29 }
 0x843   :  { %v3491_v9 = vsub.f32 %v1112_v54, %v1128_v57 }
 0x845   :  { %v1136_v2 = vmul.f32 %v3491_v9, %v3491_v9 }
 0x847   :  { %v1146_v3 = vsel %vm146_vm0, %v1136_v2, 0.0 }
 0x848   :  { %1147 = vadd.xlane.f32.xlu0 %v1146_v3 }
 0x86a   :  { %v1139_v8 = vpop.xlane.xlu0 %1138 }
 0x86b   :  { %v1149_v11 = vmul.f32 %v1139_v8, %v3422_v29 }
 0x86d   :  { %v1153_v12 = vadd.f32 1e-05, %v1149_v11 }
 0x86f   :  { %2786 = vrsqrt.f32 %v1153_v12  ;;  %vm1163_vm7 = vweird.f32 %v1153_v12 }
 0x872   :  { %v1142_v34 = vpop.xlane.xlu1 %1141 }
 0x873   :  { %v1150_v1 = vmul.f32 %v1142_v34, %v3422_v29 }
 0x875   :  { %v2787_v10 = vpop.eup %2786  ;;  %v1154_v15 = vadd.f32 1e-05, %v1150_v1 }
 0x876   :  { %v1158_v18 = vmul.f32 %v2787_v10, %v1153_v12  ;;  %vm1164_vm6 = vweird.f32 %v2787_v10 }
 0x877   :  { %2788 = vrsqrt.f32 %v1154_v15  ;;  %vm1165_vm8 = vmor %vm1163_vm7, %vm1164_vm6  ;;  %vm1173_vm10 = vweird.f32 %v1154_v15 }
 0x878   :  { %v1159_v52 = vmul.f32 %v2787_v10, %v1158_v18 }
 0x87a   :  { %v1160_v19 = vmul.f32 0.5, %v1159_v52 }
 0x87c   :  { %v1161_v20 = vsub.f32 1.5, %v1160_v19 }
 0x87d   :  { %v2789_v21 = vpop.eup %2788 }
 0x87e   :  { %v1162_v22 = vmul.f32 %v2787_v10, %v1161_v20  ;;  %v1168_v16 = vmul.f32 %v2789_v21, %v1154_v15  ;;  %vm1174_vm9 = vweird.f32 %v2789_v21 }
 0x87f   :  { %vm1175_vm11 = vmor %vm1173_vm10, %vm1174_vm9 }
 0x880   :  { %v1169_v23 = vmul.f32 %v2789_v21, %v1168_v16  ;;  %v1166_v28 = vsel %vm1165_vm8, %v2787_v10, %v1162_v22 }
 0x881   :  { %v1197_v32 = vmul.f32 %v1166_v28, %v1129_v58 }
 0x882   :  { %v1170_v25 = vmul.f32 0.5, %v1169_v23 }
 0x883   :  { %v1202_v40 = vmul.f32 %v1201_v31, %v1197_v32 }
 0x884   :  { %v1171_v30 = vsub.f32 1.5, %v1170_v25 }
 0x885   :  { %v3500_v43 = vadd.f32 %v1206_v39, %v1202_v40 }
 0x886   :  { %v1172_v37 = vmul.f32 %v2789_v21, %v1171_v30 }
 0x888   :  { %v1176_v38 = vsel %vm1175_vm11, %v2789_v21, %v1172_v37 }
 0x889   :  { %v1198_v41 = vmul.f32 %v1176_v38, %v1130_v59 }
 0x88b   :  { %v1203_v42 = vmul.f32 %v1201_v31, %v1198_v41 }
 0x88d   :  { %v3502_v44 = vadd.f32 %v1206_v39, %v1203_v42 }
 0x88f   :  { %v1237_v36 = vpack.c.bf16 %v3502_v44, %v3500_v43 }
 0x891   :  { %2442 = vmatmul.msk.bf16.vlgmr.msrb.gmra.mxu0 %vm146_vm0, %v1237_v36 }
 0x8b3   :  { %v1145_v45 = vpop.xlane.xlu2 %1144 }
 0x8b4   :  { %v1151_v55 = vmul.f32 %v1145_v45, %v3422_v29 }
 0x8b6   :  { %v1155_v46 = vadd.f32 1e-05, %v1151_v55 }
 0x8b8   :  { %2790 = vrsqrt.f32 %v1155_v46  ;;  %vm1183_vm13 = vweird.f32 %v1155_v46 }
 0x8bb   :  { %v1148_v47 = vpop.xlane.xlu0 %1147 }
 0x8bc   :  { %v1152_v35 = vmul.f32 %v1148_v47, %v3422_v29 }
 0x8be   :  { %v2791_v48 = vpop.eup %2790  ;;  %v1156_v49 = vadd.f32 1e-05, %v1152_v35 }
 0x8bf   :  { %v1178_v50 = vmul.f32 %v2791_v48, %v1155_v46  ;;  %vm1184_vm12 = vweird.f32 %v2791_v48 }
 0x8c0   :  { %2792 = vrsqrt.f32 %v1156_v49  ;;  %vm1185_vm14 = vmor %vm1183_vm13, %vm1184_vm12  ;;  %vm1193_vm4 = vweird.f32 %v1156_v49 }
 0x8c1   :  { %v1179_v53 = vmul.f32 %v2791_v48, %v1178_v50 }
 0x8c3   :  { %v1180_v17 = vmul.f32 0.5, %v1179_v53 }
 0x8c5   :  { %v1181_v54 = vsub.f32 1.5, %v1180_v17 }
 0x8c6   :  { %v2793_v51 = vpop.eup %2792 }
 0x8c7   :  { %v1182_v56 = vmul.f32 %v2791_v48, %v1181_v54  ;;  %v1188_v6 = vmul.f32 %v2793_v51, %v1156_v49  ;;  %vm1194_vm15 = vweird.f32 %v2793_v51 }
 0x8c8   :  { %vm1195_vm6 = vmor %vm1193_vm4, %vm1194_vm15 }
 0x8c9   :  { %v1189_v58 = vmul.f32 %v2793_v51, %v1188_v6  ;;  %v1186_v26 = vsel %vm1185_vm14, %v2791_v48, %v1182_v56 }
 0x8ca   :  { %v1199_v24 = vmul.f32 %v1186_v26, %v3485_v4  ;;  %v3518_v4 = vld [vmem:[#allocation8 + $0x8] sm:$0xff] }
 0x8cb   :  { %v1190_v27 = vmul.f32 0.5, %v1189_v58  ;;  %v1239_v3 = vperm.slane %v3518_v4, 0 }
 0x8cc   :  { %v1204_v13 = vmul.f32 %v1201_v31, %v1199_v24 }
 0x8cd   :  { %v1191_v7 = vsub.f32 1.5, %v1190_v27 }
 0x8ce   :  { %v3511_v63 = vadd.f32 %v1206_v39, %v1204_v13  ;;  %v2875_v13 = vld [vmem:[%s3900_s2] sm:$0xff] }
 0x8cf   :  { %v1192_v59 = vmul.f32 %v2793_v51, %v1191_v7 }
 0x8d1   :  { %v1196_v60 = vsel %vm1195_vm6, %v2793_v51, %v1192_v59 }
 0x8d2   :  { %v1200_v61 = vmul.f32 %v1196_v60, %v3491_v9 }
 0x8d4   :  { %v1205_v62 = vmul.f32 %v1201_v31, %v1200_v61 }
 0x8d6   :  { %v3513_v14 = vadd.f32 %v1206_v39, %v1205_v62 }
 0x8d8   :  { %v1238_v0 = vpack.c.bf16 %v3513_v14, %v3511_v63 }
 0x8da   :  { %2443 = vmatmul.msk.bf16.gmra.mxu0 %vm146_vm0, %v1238_v0 }
 0x90e   :  { %v1267_v57 = vpop.f32.mrf.mxu0 }
 0x90f   :  { %v1268_v33 = vadd.f32 %v1267_v57, %v1239_v3 }
 0x916   :  { %v1269_v2 = vpop.f32.mrf.mxu0 }
 0x917   :  { %v1270_v12 = vadd.f32 %v1269_v2, %v1239_v3 }
 0x919   :  { %v3567_v34 = vpack.i.bf16 %v1268_v33, %v1270_v12 }
 0x957   :  { %v1272_v5 = vpop.f32.mrf.mxu0 }
 0x958   :  { %v3521_v8 = vadd.f32 %v1272_v5, %v1239_v3 }
 0x95a   :  { %1285 = vrot.lane.b32.xlu0 %v3521_v8, %s3017_s1 }
 0x95f   :  { %v1274_v9 = vpop.f32.mrf.mxu0 }
 0x960   :  { %v3525_v11 = vadd.f32 %v1274_v9, %v1239_v3 }
 0x962   :  { %1445 = vrot.lane.b32.xlu2 %v3525_v11, %s3019_s20  ;;  %1287 = vrot.lane.b32.xlu1 %v3525_v11, %s3017_s1  ;;  %v3571_v1 = vpack.i.bf16 %v3521_v8, %v3525_v11 }
 0x963   :  { %1443 = vrot.lane.b32.xlu0 %v3521_v8, %s3019_s20 }
 0x96a   :  { %1441 = vrot.lane.b32.xlu2 %v1270_v12, %s3019_s20  ;;  %1283 = vrot.lane.b32.xlu1 %v1270_v12, %s3017_s1 }
 0x96b   :  { %1281 = vrot.lane.b32.xlu0 %v1268_v33, %s3017_s1 }
 0x972   :  { %1431 = vrot.lane.b32.xlu2 %v1268_v33, %s3020_s3  ;;  %1439 = vrot.lane.b32.xlu1 %v1268_v33, %s3019_s20 }
 0x973   :  { %1433 = vrot.lane.b32.xlu0 %v1270_v12, %s3020_s3 }
 0x97a   :  { %1759 = vrot.lane.b32.xlu2 %v3521_v8, %s3018_s19  ;;  %1435 = vrot.lane.b32.xlu1 %v3521_v8, %s3020_s3 }
 0x97b   :  { %1597 = vrot.lane.b32.xlu0 %v1268_v33, %s3016_s0 }
 0x982   :  { %1603 = vrot.lane.b32.xlu2 %v3525_v11, %s3016_s0  ;;  %1601 = vrot.lane.b32.xlu1 %v3521_v8, %s3016_s0 }
 0x983   :  { %1761 = vrot.lane.b32.xlu0 %v3525_v11, %s3018_s19 }
 0x98a   :  { %1757 = vrot.lane.b32.xlu2 %v1270_v12, %s3018_s19  ;;  %1599 = vrot.lane.b32.xlu1 %v1270_v12, %s3016_s0 }
 0x98b   :  { %1437 = vrot.lane.b32.xlu0 %v3525_v11, %s3020_s3 }
 0x992   :  { %1589 = vrot.lane.b32.xlu2 %v1268_v33, %s3022_s22  ;;  %1755 = vrot.lane.b32.xlu1 %v1268_v33, %s3018_s19 }
 0x993   :  { %1747 = vrot.lane.b32.xlu0 %v1268_v33, %s3021_s21 }
 0x99a   :  { %1749 = vrot.lane.b32.xlu2 %v1270_v12, %s3021_s21  ;;  %1591 = vrot.lane.b32.xlu1 %v1270_v12, %s3022_s22 }
 0x99b   :  { %1593 = vrot.lane.b32.xlu0 %v3521_v8, %s3022_s22 }
 0x9a2   :  { %1595 = vrot.lane.b32.xlu2 %v3525_v11, %s3022_s22  ;;  %1751 = vrot.lane.b32.xlu1 %v3521_v8, %s3021_s21 }
 0x9a3   :  { %1753 = vrot.lane.b32.xlu0 %v3525_v11, %s3021_s21 }
 0x9aa   :  { %2643 = vrot.lane.b32.xlu2 %v3567_v34, %s3009_s13  ;;  %2648 = vrot.lane.b32.xlu1 %v3567_v34, %s3023_s29 }
 0x9ab   :  { %2653 = vrot.lane.b32.xlu0 %v3571_v1, %s3009_s13 }
 0x9b3   :  { %2658 = vrot.lane.b32.xlu0 %v3571_v1, %s3023_s29 }
 0x9bb   :  { %2663 = vrot.lane.b32.xlu0 %v3571_v1, %s3025_s11 }
 0x9bc   :  { %v1446_v10 = vpop.permute.xlu2 %1445 }
 0x9bd   :  { %2456 = vmatpush.xpose.msk.msrb.mxu3 %vm184_vm1, %v1446_v10 }
 0x9c4   :  { %v1442_v15 = vpop.permute.xlu2 %1441 }
 0x9cc   :  { %v1286_v18 = vpop.permute.xlu0 %1285  ;;  %v1432_v52 = vpop.permute.xlu2 %1431 }
 0x9d4   :  { %v1288_v19 = vpop.permute.xlu1 %1287  ;;  %v1760_v21 = vpop.permute.xlu2 %1759 }
 0x9d5   :  { %v1444_v20 = vpop.permute.xlu0 %1443  ;;  %2444 = vmatpush.xpose.msk.msrb.mxu2 %vm184_vm1, %v1288_v19 }
 0x9d6   :  { %2457 = vmatpush.xpose.msk.msrb.mxu3 %vm184_vm1, %v1444_v20 }
 0x9d9   :  { %2445 = vmatpush.xpose.msk.msrb.mxu2 %vm184_vm1, %v1286_v18  ;;  %v3642_v18 = vld [vmem:[%s3900_s2 + $0x10] sm:$0xff] }
 0x9da   :  { %2458 = vmatpush.xpose.msk.msrb.mxu3 %vm184_vm1, %v1442_v15 }
 0x9dc   :  { %v1284_v22 = vpop.permute.xlu1 %1283  ;;  %v1604_v23 = vpop.permute.xlu2 %1603 }
 0x9dd   :  { %v1282_v16 = vpop.permute.xlu0 %1281  ;;  %2446 = vmatpush.xpose.msk.msrb.mxu2 %vm184_vm1, %v1284_v22 }
 0x9e1   :  { %2447 = vmatpush.xpose.msk.msrb.mxu2 %vm184_vm1, %v1282_v16 }
 0x9e4   :  { %v1440_v28 = vpop.permute.xlu1 %1439  ;;  %2448 = vmatmul.msk.f32.vlgmr.msrb.gmra.mxu2 %vm184_vm1, %v1268_v33  ;;  %v1758_v38 = vpop.permute.xlu2 %1757 }
 0x9e5   :  { %2468 = vmatpush.xpose.msk.msra.mxu2 %vm184_vm1, %v1604_v23  ;;  %v1434_v25 = vpop.permute.xlu0 %1433  ;;  %2459 = vmatpush.xpose.msk.msrb.mxu3 %vm184_vm1, %v1440_v28  ;;  %v2878_v23 = vld [vmem:[%s3900_s2 + $0x18] sm:$0xff] }
 0x9e8   :  { %2460 = vmatmul.msk.f32.vlgmr.msrb.gmra.mxu3 %vm184_vm1, %v1432_v52 }
 0x9ec   :  { %v1436_v30 = vpop.permute.xlu1 %1435  ;;  %2449 = vmatmul.msk.f32.gmra.mxu2 %vm184_vm1, %v1270_v12  ;;  %v1590_v41 = vpop.permute.xlu2 %1589 }
 0x9ed   :  { %v1598_v31 = vpop.permute.xlu0 %1597 }
 0x9f0   :  { %2461 = vmatmul.msk.f32.gmra.mxu3 %vm184_vm1, %v1434_v25 }
 0x9f4   :  { %v1602_v32 = vpop.permute.xlu1 %1601  ;;  %2450 = vmatmul.msk.f32.gmra.mxu2 %vm184_vm1, %v3521_v8  ;;  %v1750_v45 = vpop.permute.xlu2 %1749  ;;  %v2876_v8 = vld [vmem:[%s3900_s2 + $0x8] sm:$0xff] }
 0x9f5   :  { %v1762_v37 = vpop.permute.xlu0 %1761  ;;  %2469 = vmatpush.xpose.msk.msra.mxu2 %vm184_vm1, %v1602_v32 }
 0x9f6   :  { %2480 = vmatpush.xpose.msk.msra.mxu3 %vm184_vm1, %v1762_v37 }
 0x9f8   :  { %2462 = vmatmul.msk.f32.gmra.mxu3 %vm184_vm1, %v1436_v30 }
 0x9fa   :  { %2481 = vmatpush.xpose.msk.msra.mxu3 %vm184_vm1, %v1760_v21 }
 0x9fc   :  { %v1600_v39 = vpop.permute.xlu1 %1599  ;;  %2451 = vmatmul.msk.f32.gmra.mxu2 %vm184_vm1, %v3525_v11  ;;  %v1596_v47 = vpop.permute.xlu2 %1595 }
 0x9fd   :  { %v1438_v40 = vpop.permute.xlu0 %1437  ;;  %2470 = vmatpush.xpose.msk.msra.mxu2 %vm184_vm1, %v1600_v39 }
 0x9fe   :  { %2482 = vmatpush.xpose.msk.msra.mxu3 %vm184_vm1, %v1758_v38 }
 0xa00   :  { %2463 = vmatmul.msk.f32.gmra.mxu3 %vm184_vm1, %v1438_v40 }
 0xa01   :  { %2471 = vmatpush.xpose.msk.msra.mxu2 %vm184_vm1, %v1598_v31 }
 0xa04   :  { %v1756_v42 = vpop.permute.xlu1 %1755  ;;  %2472 = vmatmul.msk.f32.vlgmr.msra.gmra.mxu2 %vm184_vm1, %v1590_v41  ;;  %v2644_v53 = vpop.permute.xlu2 %2643 }
 0xa05   :  { %v1748_v36 = vpop.permute.xlu0 %1747  ;;  %2483 = vmatpush.xpose.msk.msra.mxu3 %vm184_vm1, %v1756_v42  ;;  %v2645_v54 = vunpack.i.l.bf16 %v2644_v53  ;;  %v2646_v51 = vunpack.i.h.bf16 %v2644_v53 }
 0xa08   :  { %2484 = vmatmul.msk.f32.vlgmr.msra.gmra.mxu3 %vm184_vm1, %v1748_v36 }
 0xa0c   :  { %v1592_v55 = vpop.permute.xlu1 %1591 }
 0xa0d   :  { %v1594_v46 = vpop.permute.xlu0 %1593  ;;  %2473 = vmatmul.msk.f32.gmra.mxu2 %vm184_vm1, %v1592_v55 }
 0xa10   :  { %2485 = vmatmul.msk.f32.gmra.mxu3 %vm184_vm1, %v1750_v45 }
 0xa14   :  { %v1752_v48 = vpop.permute.xlu1 %1751 }
 0xa15   :  { %v1754_v35 = vpop.permute.xlu0 %1753  ;;  %2474 = vmatmul.msk.f32.gmra.mxu2 %vm184_vm1, %v1594_v46 }
 0xa18   :  { %2486 = vmatmul.msk.f32.gmra.mxu3 %vm184_vm1, %v1752_v48 }
 0xa1c   :  { %v2649_v58 = vpop.permute.xlu1 %2648 }
 0xa1d   :  { %v2654_v49 = vpop.permute.xlu0 %2653  ;;  %2475 = vmatmul.msk.f32.gmra.mxu2 %vm184_vm1, %v1596_v47  ;;  %v2650_v27 = vunpack.i.l.bf16 %v2649_v58  ;;  %v2651_v7 = vunpack.i.h.bf16 %v2649_v58 }
 0xa1e   :  { %v2655_v50 = vunpack.i.l.bf16 %v2654_v49  ;;  %v2656_v17 = vunpack.i.h.bf16 %v2654_v49 }
 0xa20   :  { %1394 = vmatpush.msrb.mxu1 %v2655_v50  ;;  %2487 = vmatmul.msk.f32.gmra.mxu3 %vm184_vm1, %v1754_v35 }
 0xa22   :  { %1395 = vmatpush.msrb.mxu1 %v2656_v17 }
 0xa24   :  { %1396 = vmatpush.msrb.mxu1 %v2645_v54 }
 0xa25   :  { %v2659_v56 = vpop.permute.xlu0 %2658 }
 0xa26   :  { %v2660_v6 = vunpack.i.l.bf16 %v2659_v56  ;;  %1397 = vmatpush.msrb.mxu1 %v2646_v51  ;;  %v2661_v26 = vunpack.i.h.bf16 %v2659_v56 }
 0xa28   :  { %1552 = vmatpush.msra.mxu0 %v2660_v6 }
 0xa2a   :  { %1553 = vmatpush.msra.mxu0 %v2661_v26 }
 0xa2c   :  { %1554 = vmatpush.msra.mxu0 %v2650_v27 }
 0xa2d   :  { %v2664_v24 = vpop.permute.xlu0 %2663 }
 0xa2e   :  { %v2665_v59 = vunpack.i.l.bf16 %v2664_v24  ;;  %1555 = vmatpush.msra.mxu0 %v2651_v7  ;;  %v2666_v60 = vunpack.i.h.bf16 %v2664_v24 }
 0xa30   :  { %1710 = vmatpush.msra.mxu1 %v2665_v59 }
 0xa32   :  { %1711 = vmatpush.msra.mxu1 %v2666_v60 }
 0xa67   :  { %v1322_v61 = vpop.f32.mrf.mxu2 }
 0xa68   :  { %v3620_v62 = vadd.f32 %v2875_v13, %v1322_v61 }
 0xa6a   :  { %v1334_v0 = vsel %vm146_vm0, %v3620_v62, -inf }
 0xa6b   :  { %v1480_v57 = vpop.f32.mrf.mxu3  ;;  %1335 = vmax.xlane.f32.xlu1 %v1334_v0 }
 0xa6c   :  { %v3624_v2 = vadd.f32 %v2875_v13, %v1480_v57 }
 0xa6e   :  { %v1492_v3 = vsel %vm146_vm0, %v3624_v2, -inf }
 0xa6f   :  { %1493 = vmax.xlane.f32.xlu2 %v1492_v3  ;;  %v1325_v5 = vpop.f32.mrf.mxu2 }
 0xa70   :  { %v3631_v9 = vadd.f32 %v2876_v8, %v1325_v5 }
 0xa72   :  { %v1337_v11 = vsel %vm146_vm0, %v3631_v9, -inf }
 0xa73   :  { %1338 = vmax.xlane.f32.xlu0 %v1337_v11  ;;  %v1483_v12 = vpop.f32.mrf.mxu3 }
 0xa74   :  { %v3635_v33 = vadd.f32 %v2876_v8, %v1483_v12 }
 0xa76   :  { %v1495_v10 = vsel %vm146_vm0, %v3635_v33, -inf }
 0xa77   :  { %v1328_v15 = vpop.f32.mrf.mxu2  ;;  %1496 = vmax.xlane.f32.xlu1 %v1495_v10 }
 0xa78   :  { %v3645_v52 = vadd.f32 %v3642_v18, %v1328_v15 }
 0xa7a   :  { %v1340_v19 = vsel %vm146_vm0, %v3645_v52, -inf }
 0xa7b   :  { %1341 = vmax.xlane.f32.xlu0 %v1340_v19  ;;  %v1486_v20 = vpop.f32.mrf.mxu3 }
 0xa7c   :  { %v3650_v21 = vadd.f32 %v3642_v18, %v1486_v20 }
 0xa7e   :  { %v1498_v22 = vsel %vm146_vm0, %v3650_v21, -inf }
 0xa7f   :  { %v1331_v16 = vpop.f32.mrf.mxu2  ;;  %1499 = vmax.xlane.f32.xlu2 %v1498_v22 }
 0xa80   :  { %v3657_v28 = vadd.f32 %v2878_v23, %v1331_v16 }
 0xa82   :  { %v1343_v25 = vsel %vm146_vm0, %v3657_v28, -inf }
 0xa83   :  { %1344 = vmax.xlane.f32.xlu0 %v1343_v25  ;;  %v1489_v30 = vpop.f32.mrf.mxu3 }
 0xa84   :  { %v3688_v50 = vadd.f32 %v2878_v23, %v1489_v30 }
 0xa86   :  { %v1501_v53 = vsel %vm146_vm0, %v3688_v50, -inf }
 0xa87   :  { %v1638_v31 = vpop.f32.mrf.mxu2 }
 0xa88   :  { %v3661_v32 = vadd.f32 %v2875_v13, %v1638_v31 }
 0xa8a   :  { %v1650_v37 = vsel %vm146_vm0, %v3661_v32, -inf }
 0xa8b   :  { %1651 = vmax.xlane.f32.xlu0 %v1650_v37  ;;  %v1796_v38 = vpop.f32.mrf.mxu3 }
 0xa8c   :  { %v3665_v39 = vadd.f32 %v2875_v13, %v1796_v38 }
 0xa8e   :  { %v1808_v41 = vsel %vm146_vm0, %v3665_v39, -inf }
 0xa90   :  { %2673 = vrot.lane.b32.xlu1 %v3567_v34, %s3025_s11  ;;  %v1641_v40 = vpop.f32.mrf.mxu2 }
 0xa91   :  { %v3671_v36 = vadd.f32 %v2876_v8, %v1641_v40 }
 0xa93   :  { %v1799_v42 = vpop.f32.mrf.mxu3  ;;  %1809 = vmax.xlane.f32.xlu0 %v1808_v41  ;;  %v1653_v55 = vsel %vm146_vm0, %v3671_v36, -inf }
 0xa94   :  { %v3692_v17 = vadd.f32 %v2876_v8, %v1799_v42 }
 0xa96   :  { %v1811_v54 = vsel %vm146_vm0, %v3692_v17, -inf }
 0xa97   :  { %2668 = vrot.lane.b32.xlu2 %v3571_v1, %s3024_s10 }
 0xa98   :  { %v3675_v45 = vpop.f32.mrf.mxu2 }
 0xa9b   :  { %v1802_v46 = vpop.f32.mrf.mxu3  ;;  %1654 = vmax.xlane.f32.xlu0 %v1653_v55 }
 0xa9c   :  { %v3680_v47 = vadd.f32 %v3642_v18, %v1802_v46 }
 0xa9e   :  { %v1814_v35 = vsel %vm146_vm0, %v3680_v47, -inf }
 0xaa0   :  { %v1647_v48 = vpop.f32.mrf.mxu2 }
 0xaa1   :  { %v3684_v49 = vadd.f32 %v2878_v23, %v1647_v48 }
 0xaa3   :  { %1815 = vmax.xlane.f32.xlu0 %v1814_v35  ;;  %v1659_v1 = vsel %vm146_vm0, %v3684_v49, -inf  ;;  %v1805_v51 = vpop.f32.mrf.mxu3 }
 0xaa4   :  { %v3696_v56 = vadd.f32 %v2878_v23, %v1805_v51  ;;  %v3719_v23 = vadd.f32 %v3642_v18, %v3675_v45 }
 0xaa6   :  { %v1817_v6 = vsel %vm146_vm0, %v3696_v56, -inf  ;;  %v1656_v37 = vsel %vm146_vm0, %v3719_v23, -inf }
 0xaab   :  { %1660 = vmax.xlane.f32.xlu0 %v1659_v1 }
 0xaba   :  { %1502 = vmax.xlane.f32.xlu1 %v1501_v53 }
 0xac0   :  { %1812 = vmax.xlane.f32.xlu2 %v1811_v54 }
 0xac8   :  { %1818 = vmax.xlane.f32.xlu2 %v1817_v6 }
 0xad3   :  { %2678 = vrot.lane.b32.xlu1 %v3567_v34, %s3024_s10 }
 0xade   :  { %v1336_v58 = vpop.xlane.xlu1 %1335 }
 0xadf   :  { %v1346_v26 = vsub.f32 %v3620_v62, %v1336_v58 }
 0xae1   :  { %v1350_v27 = vmul.f32 1.442695, %v1346_v26 }
 0xae2   :  { %v1494_v7 = vpop.xlane.xlu2 %1493 }
 0xae3   :  { %2794 = vpow2.f32 %v1350_v27  ;;  %v1504_v24 = vsub.f32 %v3624_v2, %v1494_v7 }
 0xae5   :  { %v1508_v59 = vmul.f32 1.442695, %v1504_v24 }
 0xae6   :  { %v1339_v60 = vpop.xlane.xlu0 %1338 }
 0xae7   :  { %2796 = vpow2.f32 %v1508_v59  ;;  %v1347_v61 = vsub.f32 %v3631_v9, %v1339_v60 }
 0xae9   :  { %v2795_v13 = vpop.eup %2794  ;;  %v1352_v0 = vmul.f32 1.442695, %v1347_v61 }
 0xaea   :  { %v1497_v57 = vpop.xlane.xlu1 %1496  ;;  %2452 = vmatmul.msk.f32.vlgmr.msrb.gmra.mxu1 %vm146_vm0, %v2795_v13  ;;  %v1411_v34 = vsel %vm146_vm0, %v2795_v13, 0.0 }
 0xaeb   :  { %2798 = vpow2.f32 %v1352_v0  ;;  %v1505_v62 = vsub.f32 %v3635_v33, %v1497_v57  ;;  %1412 = vadd.xlane.f32.xlu2 %v1411_v34 }
 0xaed   :  { %v2797_v3 = vpop.eup %2796  ;;  %v1510_v5 = vmul.f32 1.442695, %v1505_v62 }
 0xaee   :  { %v1342_v8 = vpop.xlane.xlu0 %1341  ;;  %2464 = vmatmul.msk.f32.vlgmr.msra.gmra.mxu0 %vm146_vm0, %v2797_v3  ;;  %v1569_v2 = vsel %vm146_vm0, %v2797_v3, 0.0 }
 0xaef   :  { %2800 = vpow2.f32 %v1510_v5  ;;  %v1348_v9 = vsub.f32 %v3645_v52, %v1342_v8  ;;  %1570 = vadd.xlane.f32.xlu0 %v1569_v2 }
 0xaf1   :  { %v2799_v11 = vpop.eup %2798  ;;  %v1354_v12 = vmul.f32 1.442695, %v1348_v9 }
 0xaf2   :  { %v1500_v10 = vpop.xlane.xlu2 %1499  ;;  %2453 = vmatmul.msk.f32.gmra.mxu1 %vm146_vm0, %v2799_v11  ;;  %v1414_v16 = vsel %vm146_vm0, %v2799_v11, 0.0 }
 0xaf3   :  { %2802 = vpow2.f32 %v1354_v12  ;;  %v1506_v33 = vsub.f32 %v3650_v21, %v1500_v10 }
 0xaf5   :  { %v2801_v15 = vpop.eup %2800  ;;  %v1512_v19 = vmul.f32 1.442695, %v1506_v33 }
 0xaf6   :  { %v1345_v20 = vpop.xlane.xlu0 %1344  ;;  %2465 = vmatmul.msk.f32.gmra.mxu0 %vm146_vm0, %v2801_v15  ;;  %v1572_v22 = vsel %vm146_vm0, %v2801_v15, 0.0 }
 0xaf7   :  { %2804 = vpow2.f32 %v1512_v19  ;;  %v1349_v52 = vsub.f32 %v3657_v28, %v1345_v20  ;;  %1573 = vadd.xlane.f32.xlu2 %v1572_v22  ;;  %1415 = vadd.xlane.f32.xlu0 %v1414_v16 }
 0xaf9   :  { %v3721_v25 = vpop.eup %2802  ;;  %v1356_v21 = vmul.f32 1.442695, %v1349_v52 }
 0xafa   :  { %v2669_v30 = vpop.permute.xlu2 %2668  ;;  %2454 = vmatmul.msk.f32.gmra.mxu1 %vm146_vm0, %v3721_v25 }
 0xafb   :  { %2806 = vpow2.f32 %v1356_v21  ;;  %v2670_v31 = vunpack.i.l.bf16 %v2669_v30  ;;  %v2671_v28 = vunpack.i.h.bf16 %v2669_v30 }
 0xafd   :  { %v2805_v38 = vpop.eup %2804  ;;  %1657 = vmax.xlane.f32.xlu1 %v1656_v37  ;;  %1868 = vmatpush.msrb.mxu0 %v2670_v31 }
 0xafe   :  { %v1652_v40 = vpop.xlane.xlu0 %1651  ;;  %2466 = vmatmul.msk.f32.gmra.mxu0 %vm146_vm0, %v2805_v38  ;;  %v1575_v18 = vsel %vm146_vm0, %v2805_v38, 0.0 }
 0xaff   :  { %v1662_v41 = vsub.f32 %v3661_v32, %v1652_v40  ;;  %1576 = vadd.xlane.f32.xlu2 %v1575_v18  ;;  %1869 = vmatpush.msrb.mxu0 %v2671_v28 }
 0xb01   :  { %v3730_v42 = vpop.eup %2806  ;;  %v1666_v45 = vmul.f32 1.442695, %v1662_v41 }
 0xb02   :  { %v2674_v55 = vpop.permute.xlu1 %2673  ;;  %2455 = vmatmul.msk.f32.gmra.mxu1 %vm146_vm0, %v3730_v42 }
 0xb03   :  { %2808 = vpow2.f32 %v1666_v45  ;;  %v2675_v46 = vunpack.i.l.bf16 %v2674_v55  ;;  %v2676_v35 = vunpack.i.h.bf16 %v2674_v55 }
 0xb05   :  { %1712 = vmatpush.msra.mxu1 %v2675_v46 }
 0xb06   :  { %v1810_v48 = vpop.xlane.xlu0 %1809 }
 0xb07   :  { %1713 = vmatpush.msra.mxu1 %v2676_v35  ;;  %v1820_v62 = vsub.f32 %v3665_v39, %v1810_v48 }
 0xb09   :  { %v2809_v1 = vpop.eup %2808  ;;  %v1824_v3 = vmul.f32 1.442695, %v1820_v62 }
 0xb0a   :  { %2476 = vmatmul.msk.f32.vlgmr.msra.gmra.mxu1 %vm146_vm0, %v2809_v1 }
 0xb0e   :  { %v1655_v53 = vpop.xlane.xlu0 %1654 }
 0xb0f   :  { %v1663_v32 = vsub.f32 %v3671_v36, %v1655_v53 }
 0xb11   :  { %v1668_v54 = vmul.f32 1.442695, %v1663_v32 }
 0xb13   :  { %2810 = vpow2.f32 %v1668_v54 }
 0xb16   :  { %v1816_v51 = vpop.xlane.xlu0 %1815 }
 0xb19   :  { %v2811_v6 = vpop.eup %2810 }
 0xb1a   :  { %2477 = vmatmul.msk.f32.gmra.mxu1 %vm146_vm0, %v2811_v6  ;;  %v1730_v58 = vsel %vm146_vm0, %v2811_v6, 0.0 }
 0xb1b   :  { %1731 = vadd.xlane.f32.xlu2 %v1730_v58 }
 0xb1e   :  { %v1661_v26 = vpop.xlane.xlu0 %1660 }
 0xb1f   :  { %v1665_v27 = vsub.f32 %v3684_v49, %v1661_v26 }
 0xb21   :  { %v1672_v7 = vmul.f32 1.442695, %v1665_v27 }
 0xb23   :  { %2812 = vpow2.f32 %v1672_v7 }
 0xb29   :  { %v2813_v24 = vpop.eup %2812 }
 0xb2a   :  { %v1736_v59 = vsel %vm146_vm0, %v2813_v24, 0.0 }
 0xb2b   :  { %1737 = vadd.xlane.f32.xlu2 %v1736_v59 }
 0xb2d   :  { %v1503_v60 = vpop.xlane.xlu1 %1502 }
 0xb2e   :  { %v1507_v36 = vsub.f32 %v3688_v50, %v1503_v60  ;;  %v1822_v50 = vsub.f32 %v3680_v47, %v1816_v51 }
 0xb30   :  { %v1514_v61 = vmul.f32 1.442695, %v1507_v36  ;;  %v1828_v2 = vmul.f32 1.442695, %v1822_v50 }
 0xb32   :  { %2814 = vpow2.f32 %v1514_v61 }
 0xb33   :  { %v1813_v13 = vpop.xlane.xlu2 %1812 }
 0xb34   :  { %v1821_v0 = vsub.f32 %v3692_v17, %v1813_v13  ;;  %v1727_v17 = vsel %vm146_vm0, %v2809_v1, 0.0 }
 0xb36   :  { %v1826_v57 = vmul.f32 1.442695, %v1821_v0 }
 0xb38   :  { %v2815_v34 = vpop.eup %2814  ;;  %2816 = vpow2.f32 %v1826_v57 }
 0xb39   :  { %2467 = vmatmul.msk.f32.gmra.mxu0 %vm146_vm0, %v2815_v34  ;;  %v1578_v49 = vsel %vm146_vm0, %v2815_v34, 0.0  ;;  %2818 = vpow2.f32 %v1824_v3 }
 0xb3a   :  { %1579 = vadd.xlane.f32.xlu0 %v1578_v49  ;;  %2820 = vpow2.f32 %v1828_v2 }
 0xb3b   :  { %v1819_v15 = vpop.xlane.xlu2 %1818 }
 0xb3c   :  { %v1823_v19 = vsub.f32 %v3696_v56, %v1819_v15 }
 0xb3e   :  { %v2817_v5 = vpop.eup %2816  ;;  %v1830_v20 = vmul.f32 1.442695, %v1823_v19 }
 0xb3f   :  { %v1888_v8 = vsel %vm146_vm0, %v2817_v5, 0.0  ;;  %v2819_v39 = vpop.eup %2818 }
 0xb40   :  { %1889 = vadd.xlane.f32.xlu1 %v1888_v8  ;;  %v1885_v10 = vsel %vm146_vm0, %v2819_v39, 0.0  ;;  %v2821_v33 = vpop.eup %2820  ;;  %2822 = vpow2.f32 %v1830_v20 }
 0xb41   :  { %v1891_v47 = vsel %vm146_vm0, %v2821_v33, 0.0 }
 0xb42   :  { %1728 = vadd.xlane.f32.xlu0 %v1727_v17  ;;  %v1417_v17 = vsel %vm146_vm0, %v3721_v25, 0.0 }
 0xb45   :  { %v2679_v9 = vpop.permute.xlu1 %2678 }
 0xb46   :  { %v2680_v11 = vunpack.i.l.bf16 %v2679_v9  ;;  %v2681_v12 = vunpack.i.h.bf16 %v2679_v9  ;;  %v2823_v16 = vpop.eup %2822 }
 0xb47   :  { %v1894_v40 = vsel %vm146_vm0, %v2823_v16, 0.0 }
 0xb48   :  { %1870 = vmatpush.msrb.mxu0 %v2680_v11 }
 0xb4a   :  { %1886 = vadd.xlane.f32.xlu0 %v1885_v10  ;;  %1871 = vmatpush.msrb.mxu0 %v2681_v12 }
 0xb4b   :  { %2488 = vmatmul.msk.f32.vlgmr.msrb.gmra.mxu0 %vm146_vm0, %v2819_v39 }
 0xb52   :  { %1892 = vadd.xlane.f32.xlu0 %v1891_v47 }
 0xb53   :  { %2489 = vmatmul.msk.f32.gmra.mxu0 %vm146_vm0, %v2817_v5 }
 0xb5b   :  { %2490 = vmatmul.msk.f32.gmra.mxu0 %vm146_vm0, %v2821_v33 }
 0xb5e   :  { %v1413_v22 = vpop.xlane.xlu2 %1412 }
 0xb5f   :  { %2824 = vrcp.f32 %v1413_v22  ;;  %v1420_v22 = vsel %vm146_vm0, %v3730_v42, 0.0  ;;  %v2543_v42 = vld [vmem:[#allocation5 + $0x18] sm:$0xff] }
 0xb60   :  { %1992 = vmatpush.bf16.msrb.mxu2 %v2543_v42 }
 0xb62   :  { %v1571_v45 = vpop.xlane.xlu0 %1570 }
 0xb63   :  { %2491 = vmatmul.msk.f32.gmra.mxu0 %vm146_vm0, %v2823_v16 }
 0xb65   :  { %v2825_v52 = vpop.eup %2824 }
 0xb67   :  { %v1399_v21 = vpop.f32.mrf.mxu1 }
 0xb68   :  { %v3755_v30 = vmul.f32 %v2825_v52, %v1399_v21 }
 0xb6a   :  { %v1574_v41 = vpop.xlane.xlu2 %1573  ;;  %v3767_v54 = vpop.xlane.xlu0 %1415 }
 0xb6b   :  { %v1557_v18 = vpop.f32.mrf.mxu0 }
 0xb6f   :  { %v3762_v55 = vpop.f32.mrf.mxu1 }
 0xb70   :  { %v1658_v31 = vpop.xlane.xlu1 %1657 }
 0xb71   :  { %v1664_v37 = vsub.f32 %v3719_v23, %v1658_v31 }
 0xb72   :  { %v1577_v6 = vpop.xlane.xlu2 %1576 }
 0xb73   :  { %v1670_v38 = vmul.f32 1.442695, %v1664_v37  ;;  %v1560_v23 = vpop.f32.mrf.mxu0 }
 0xb75   :  { %2826 = vpow2.f32 %v1670_v38 }
 0xb76   :  { %2828 = vrcp.f32 %v1574_v41 }
 0xb77   :  { %2830 = vrcp.f32 %v1571_v45  ;;  %v3764_v32 = vpop.f32.mrf.mxu1 }
 0xb7b   :  { %v2827_v28 = vpop.eup %2826 }
 0xb7c   :  { %2478 = vmatmul.msk.f32.gmra.mxu1 %vm146_vm0, %v2827_v28  ;;  %v1733_v56 = vsel %vm146_vm0, %v2827_v28, 0.0  ;;  %v2829_v46 = vpop.eup %2828 }
 0xb7d   :  { %1734 = vadd.xlane.f32.xlu1 %v1733_v56  ;;  %v1586_v35 = vmul.f32 %v2829_v46, %v1560_v23  ;;  %v2831_v48 = vpop.eup %2830  ;;  %v2542_v46 = vld [vmem:[#allocation5 + $0x10] sm:$0xff] }
 0xb7e   :  { %v1585_v1 = vmul.f32 %v2831_v48, %v1557_v18  ;;  %1993 = vmatpush.bf16.msrb.mxu2 %v2542_v46 }
 0xb7f   :  { %v3769_v51 = vpop.f32.mrf.mxu1 }
 0xb80   :  { %v2682_v53 = vpack.i.bf16 %v1586_v35, %v1585_v1 }
 0xb84   :  { %2479 = vmatmul.msk.f32.gmra.mxu1 %vm146_vm0, %v2813_v24  ;;  %v1563_v24 = vpop.f32.mrf.mxu0 }
 0xb85   :  { %1895 = vadd.xlane.f32.xlu1 %v1894_v40 }
 0xb87   :  { %v1715_v26 = vpop.f32.mrf.mxu1 }
 0xb8e   :  { %v1732_v27 = vpop.xlane.xlu2 %1731 }
 0xb8f   :  { %2832 = vrcp.f32 %v1732_v27 }
 0xb95   :  { %v2833_v60 = vpop.eup %2832 }
 0xb97   :  { %v1718_v59 = vpop.f32.mrf.mxu1 }
 0xb98   :  { %v1744_v61 = vmul.f32 %v2833_v60, %v1718_v59 }
 0xb9e   :  { %2683 = vrot.lane.b32.xlu1 %v2682_v53, %s3015_s25  ;;  %v1738_v47 = vpop.xlane.xlu2 %1737 }
 0xbad   :  { %v1580_v58 = vpop.xlane.xlu0 %1579 }
 0xbb3   :  { %v1890_v5 = vpop.xlane.xlu1 %1889 }
 0xbb5   :  { %v1729_v7 = vpop.xlane.xlu0 %1728 }
 0xbb6   :  { %2834 = vrcp.f32 %v1729_v7  ;;  %v1566_v57 = vpop.f32.mrf.mxu0 }
 0xbb7   :  { %2836 = vrcp.f32 %v1580_v58 }
 0xbb8   :  { %2838 = vrcp.f32 %v1577_v6 }
 0xbb9   :  { %2840 = vrcp.f32 %v1890_v5 }
 0xbbc   :  { %v2835_v36 = vpop.eup %2834 }
 0xbbd   :  { %v1743_v13 = vmul.f32 %v2835_v36, %v1715_v26  ;;  %v2837_v34 = vpop.eup %2836  ;;  %v1887_v50 = vpop.xlane.xlu0 %1886 }
 0xbbe   :  { %v1588_v62 = vmul.f32 %v2837_v34, %v1566_v57  ;;  %v2839_v49 = vpop.eup %2838  ;;  %2842 = vrcp.f32 %v1887_v50 }
 0xbbf   :  { %v2687_v0 = vpack.i.bf16 %v1744_v61, %v1743_v13  ;;  %v1587_v3 = vmul.f32 %v2839_v49, %v1563_v24  ;;  %v2841_v9 = vpop.eup %2840  ;;  %2844 = vrcp.f32 %v1738_v47 }
 0xbc1   :  { %2688 = vrot.lane.b32.xlu2 %v2687_v0, %s3027_s14  ;;  %v2697_v8 = vpack.i.bf16 %v1588_v62, %v1587_v3 }
 0xbc4   :  { %v2843_v39 = vpop.eup %2842 }
 0xbc5   :  { %v2845_v16 = vpop.eup %2844  ;;  %v1893_v52 = vpop.xlane.xlu0 %1892 }
 0xbc8   :  { %1418 = vadd.xlane.f32.xlu1 %v1417_v17  ;;  %v1873_v2 = vpop.f32.mrf.mxu0 }
 0xbc9   :  { %2698 = vrot.lane.b32.xlu2 %v2697_v8, %s3015_s25  ;;  %v1901_v12 = vmul.f32 %v2843_v39, %v1873_v2 }
 0xbd0   :  { %v1876_v11 = vpop.f32.mrf.mxu0 }
 0xbd1   :  { %v1902_v10 = vmul.f32 %v2841_v9, %v1876_v11 }
 0xbd3   :  { %v2692_v33 = vpack.i.bf16 %v1902_v10, %v1901_v12 }
 0xbd5   :  { %2693 = vrot.lane.b32.xlu0 %v2692_v33, %s3026_s12 }
 0xbd8   :  { %v1879_v20 = vpop.f32.mrf.mxu0 }
 0xbe0   :  { %v1882_v40 = vpop.f32.mrf.mxu0 }
 0xbf0   :  { %v1735_v15 = vpop.xlane.xlu1 %1734 }
 0xbf1   :  { %2846 = vrcp.f32 %v1735_v15 }
 0xbf7   :  { %v2847_v21 = vpop.eup %2846 }
 0xbf8   :  { %v1896_v25 = vpop.xlane.xlu1 %1895 }
 0xbf9   :  { %v1721_v19 = vpop.f32.mrf.mxu1  ;;  %2848 = vrcp.f32 %v1896_v25 }
 0xbfa   :  { %v1745_v37 = vmul.f32 %v2847_v21, %v1721_v19  ;;  %2850 = vrcp.f32 %v1893_v52 }
 0xbfb   :  { %2852 = vrcp.f32 %v3767_v54 }
 0xbff   :  { %1421 = vadd.xlane.f32.xlu0 %v1420_v22  ;;  %v2849_v56 = vpop.eup %2848 }
 0xc00   :  { %v1904_v18 = vmul.f32 %v2849_v56, %v1882_v40  ;;  %v2851_v41 = vpop.eup %2850 }
 0xc01   :  { %v1724_v31 = vpop.f32.mrf.mxu1  ;;  %v1903_v45 = vmul.f32 %v2851_v41, %v1879_v20  ;;  %v2853_v1 = vpop.eup %2852  ;;  %v1967_v20 = vperm.slane %v3518_v4, 1 }
 0xc02   :  { %v1746_v38 = vmul.f32 %v2845_v16, %v1724_v31  ;;  %v1428_v27 = vmul.f32 %v2853_v1, %v3762_v55 }
 0xc03   :  { %v2707_v23 = vpack.i.bf16 %v1904_v18, %v1903_v45 }
 0xc04   :  { %v2702_v28 = vpack.i.bf16 %v1746_v38, %v1745_v37 }
 0xc06   :  { %2703 = vrot.lane.b32.xlu2 %v2702_v28, %s3027_s14 }
 0xc0e   :  { %2708 = vrot.lane.b32.xlu2 %v2707_v23, %s3026_s12 }
 0xc10   :  { %v2684_v35 = vpop.permute.xlu1 %2683 }
 0xc11   :  { %v2686_v53 = vunpack.i.h.bf16 %v2684_v35  ;;  %v2685_v6 = vunpack.i.l.bf16 %v2684_v35 }
 0xc13   :  { %v1953_v24 = vsel %vm184_vm1, %v3755_v30, %v2685_v6  ;;  %v1954_v59 = vsel %vm184_vm1, %v1428_v27, %v2686_v53 }
 0xc1b   :  { %v2689_v48 = vpop.permute.xlu2 %2688 }
 0xc1c   :  { %v2691_v58 = vunpack.i.h.bf16 %v2689_v48  ;;  %v2690_v26 = vunpack.i.l.bf16 %v2689_v48 }
 0xc1e   :  { %v1958_v61 = vsel %vm853_vm2, %v1954_v59, %v2691_v58  ;;  %v1957_v54 = vsel %vm853_vm2, %v1953_v24, %v2690_v26 }
 0xc23   :  { %v2699_v55 = vpop.permute.xlu2 %2698 }
 0xc24   :  { %v2701_v17 = vunpack.i.h.bf16 %v2699_v55  ;;  %v2700_v2 = vunpack.i.l.bf16 %v2699_v55  ;;  %v2544_v55 = vld [vmem:[#allocation7 + $0x10] sm:$0xff] }
 0xc3b   :  { %v1419_v34 = vpop.xlane.xlu1 %1418 }
 0xc3c   :  { %2854 = vrcp.f32 %v1419_v34 }
 0xc42   :  { %v2855_v49 = vpop.eup %2854 }
 0xc43   :  { %v1429_v5 = vmul.f32 %v2855_v49, %v3764_v32 }
 0xc45   :  { %v1955_v12 = vsel %vm184_vm1, %v1429_v5, %v2700_v2 }
 0xc47   :  { %v2694_v7 = vpop.permute.xlu0 %2693 }
 0xc48   :  { %v2696_v60 = vunpack.i.h.bf16 %v2694_v7  ;;  %v2695_v36 = vunpack.i.l.bf16 %v2694_v7 }
 0xc4a   :  { %v1961_v13 = vsel %vm858_vm3, %v1957_v54, %v2695_v36  ;;  %v1962_v0 = vsel %vm858_vm3, %v1958_v61, %v2696_v60  ;;  %v2545_v54 = vld [vmem:[#allocation7 + $0x18] sm:$0xff] }
 0xc4b   :  { %v1965_v57 = vpack.c.bf16 %v1962_v0, %v1961_v13  ;;  %2134 = vmatpush.bf16.msrb.mxu1 %v2545_v54 }
 0xc4d   :  { %2500 = vmatmul.msk.bf16.vlgmr.msrb.gmra.mxu2 %vm146_vm0, %v1965_v57 }
 0xc4f   :  { %2135 = vmatpush.bf16.msrb.mxu1 %v2544_v55 }
 0xc60   :  { %v2704_v62 = vpop.permute.xlu2 %2703 }
 0xc61   :  { %v2705_v50 = vunpack.i.l.bf16 %v2704_v62  ;;  %v2706_v11 = vunpack.i.h.bf16 %v2704_v62 }
 0xc63   :  { %v1959_v15 = vsel %vm853_vm2, %v1955_v12, %v2705_v50 }
 0xc68   :  { %v2709_v3 = vpop.permute.xlu2 %2708 }
 0xc69   :  { %v2710_v9 = vunpack.i.l.bf16 %v2709_v3  ;;  %v2711_v10 = vunpack.i.h.bf16 %v2709_v3 }
 0xc6b   :  { %v1963_v19 = vsel %vm858_vm3, %v1959_v15, %v2710_v9 }
 0xc72   :  { %v1422_v30 = vpop.xlane.xlu0 %1421 }
 0xc73   :  { %2856 = vrcp.f32 %v1422_v30 }
 0xc79   :  { %v2857_v8 = vpop.eup %2856 }
 0xc7a   :  { %v1430_v39 = vmul.f32 %v2857_v8, %v3769_v51 }
 0xc7c   :  { %v1956_v33 = vsel %vm184_vm1, %v1430_v39, %v2701_v17 }
 0xc7d   :  { %v1960_v47 = vsel %vm853_vm2, %v1956_v33, %v2706_v11  ;;  %v3826_v33 = vld [vmem:[#allocation8 + $0x8] sm:$0xff] }
 0xc7e   :  { %v1964_v32 = vsel %vm858_vm3, %v1960_v47, %v2711_v10  ;;  %v2097_v15 = vperm.slane %v3826_v33, 2 }
 0xc7f   :  { %v1966_v25 = vpack.c.bf16 %v1964_v32, %v1963_v19 }
 0xc81   :  { %2501 = vmatmul.msk.bf16.gmra.mxu2 %vm146_vm0, %v1966_v25  ;;  %v2102_v25 = vperm.slane %v3826_v33, 3 }
 0xcd0   :  { %v1995_v51 = vpop.f32.mrf.mxu2 }
 0xcd1   :  { %v1996_v22 = vadd.f32 %v1995_v51, %v1967_v20 }
 0xcd3   :  { %v2005_v16 = vadd.f32 %v1996_v22, %v3500_v43 }
 0xcd5   :  { %v2009_v52 = vsel %vm146_vm0, %v2005_v16, 0.0 }
 0xcd6   :  { %2010 = vadd.xlane.f32.xlu2 %v2009_v52 }
 0xcd8   :  { %v1997_v21 = vpop.f32.mrf.mxu2 }
 0xcd9   :  { %v1998_v31 = vadd.f32 %v1997_v21, %v1967_v20 }
 0xcdb   :  { %v2006_v37 = vadd.f32 %v1998_v31, %v3502_v44 }
 0xcdd   :  { %v2012_v38 = vsel %vm146_vm0, %v2006_v37, 0.0 }
 0xcde   :  { %2013 = vadd.xlane.f32.xlu1 %v2012_v38 }
 0xd04   :  { %v2000_v28 = vpop.f32.mrf.mxu2 }
 0xd05   :  { %v2001_v56 = vadd.f32 %v2000_v28, %v1967_v20 }
 0xd07   :  { %v2007_v40 = vadd.f32 %v2001_v56, %v3511_v63 }
 0xd09   :  { %v2015_v4 = vsel %vm146_vm0, %v2007_v40, 0.0 }
 0xd0a   :  { %2016 = vadd.xlane.f32.xlu0 %v2015_v4 }
 0xd0c   :  { %v2002_v18 = vpop.f32.mrf.mxu2 }
 0xd0d   :  { %v2003_v41 = vadd.f32 %v2002_v18, %v1967_v20 }
 0xd0f   :  { %v2008_v43 = vadd.f32 %v2003_v41, %v3513_v14 }
 0xd11   :  { %v2018_v45 = vsel %vm146_vm0, %v2008_v43, 0.0 }
 0xd12   :  { %2019 = vadd.xlane.f32.xlu1 %v2018_v45 }
 0xd49   :  { %v2011_v23 = vpop.xlane.xlu2 %2010 }
 0xd4a   :  { %v2021_v44 = vmul.f32 %v2011_v23, %v3422_v29 }
 0xd4c   :  { %v2025_v42 = vsub.f32 %v2005_v16, %v2021_v44 }
 0xd4e   :  { %v2029_v46 = vmul.f32 %v2025_v42, %v2025_v42 }
 0xd50   :  { %v2033_v35 = vsel %vm146_vm0, %v2029_v46, 0.0 }
 0xd51   :  { %v2014_v48 = vpop.xlane.xlu1 %2013  ;;  %2034 = vadd.xlane.f32.xlu0 %v2033_v35 }
 0xd52   :  { %v2022_v63 = vmul.f32 %v2014_v48, %v3422_v29 }
 0xd54   :  { %v2026_v1 = vsub.f32 %v2006_v37, %v2022_v63 }
 0xd56   :  { %v2030_v53 = vmul.f32 %v2026_v1, %v2026_v1 }
 0xd58   :  { %v2036_v6 = vsel %vm146_vm0, %v2030_v53, 0.0 }
 0xd59   :  { %2037 = vadd.xlane.f32.xlu1 %v2036_v6 }
 0xd7d   :  { %v2017_v14 = vpop.xlane.xlu0 %2016 }
 0xd7e   :  { %v2023_v58 = vmul.f32 %v2017_v14, %v3422_v29 }
 0xd80   :  { %v3813_v26 = vsub.f32 %v2007_v40, %v2023_v58 }
 0xd82   :  { %v2031_v27 = vmul.f32 %v3813_v26, %v3813_v26 }
 0xd84   :  { %v2039_v7 = vsel %vm146_vm0, %v2031_v27, 0.0 }
 0xd85   :  { %v2020_v24 = vpop.xlane.xlu1 %2019  ;;  %2040 = vadd.xlane.f32.xlu0 %v2039_v7 }
 0xd86   :  { %v2024_v59 = vmul.f32 %v2020_v24, %v3422_v29 }
 0xd88   :  { %v3819_v60 = vsub.f32 %v2008_v43, %v2024_v59 }
 0xd8a   :  { %v2032_v36 = vmul.f32 %v3819_v60, %v3819_v60 }
 0xd8c   :  { %v2042_v61 = vsel %vm146_vm0, %v2032_v36, 0.0  ;;  %v2549_v36 = vld [vmem:[%s3904_s6 + $0x38] sm:$0xff] }
 0xd8d   :  { %2043 = vadd.xlane.f32.xlu1 %v2042_v61  ;;  %2188 = vmatpush.bf16.msrb.mxu3 %v2549_v36  ;;  %v2546_v61 = vld [vmem:[%s3904_s6 + $0x20] sm:$0xff] }
 0xdc4   :  { %v2035_v13 = vpop.xlane.xlu0 %2034 }
 0xdc5   :  { %v2045_v0 = vmul.f32 %v2035_v13, %v3422_v29  ;;  %v2109_v13 = vperm.slane %v3826_v33, 4 }
 0xdc7   :  { %v2049_v57 = vadd.f32 1e-05, %v2045_v0 }
 0xdc9   :  { %2858 = vrsqrt.f32 %v2049_v57  ;;  %vm2059_vm2 = vweird.f32 %v2049_v57 }
 0xdcc   :  { %v2038_v34 = vpop.xlane.xlu1 %2037 }
 0xdcd   :  { %v2046_v62 = vmul.f32 %v2038_v34, %v3422_v29 }
 0xdcf   :  { %v2859_v30 = vpop.eup %2858  ;;  %v2050_v49 = vadd.f32 1e-05, %v2046_v62 }
 0xdd0   :  { %v2054_v3 = vmul.f32 %v2859_v30, %v2049_v57  ;;  %vm2060_vm1 = vweird.f32 %v2859_v30 }
 0xdd1   :  { %2860 = vrsqrt.f32 %v2050_v49  ;;  %vm2061_vm3 = vmor %vm2059_vm2, %vm2060_vm1  ;;  %vm2069_vm8 = vweird.f32 %v2050_v49 }
 0xdd2   :  { %v2055_v5 = vmul.f32 %v2859_v30, %v2054_v3 }
 0xdd4   :  { %v2056_v8 = vmul.f32 0.5, %v2055_v5 }
 0xdd6   :  { %v2057_v50 = vsub.f32 1.5, %v2056_v8 }
 0xdd7   :  { %v2861_v17 = vpop.eup %2860 }
 0xdd8   :  { %v2058_v2 = vmul.f32 %v2859_v30, %v2057_v50  ;;  %v2064_v9 = vmul.f32 %v2861_v17, %v2050_v49  ;;  %vm2070_vm7 = vweird.f32 %v2861_v17 }
 0xdd9   :  { %vm2071_vm9 = vmor %vm2069_vm8, %vm2070_vm7 }
 0xdda   :  { %v2065_v39 = vmul.f32 %v2861_v17, %v2064_v9  ;;  %v2062_v11 = vsel %vm2061_vm3, %v2859_v30, %v2058_v2  ;;  %v2153_v9 = vperm.slane %v3826_v33, 5 }
 0xddb   :  { %v2093_v47 = vmul.f32 %v2062_v11, %v2025_v42 }
 0xddc   :  { %v2066_v12 = vmul.f32 0.5, %v2065_v39 }
 0xddd   :  { %v2098_v20 = vmul.f32 %v2097_v15, %v2093_v47 }
 0xdde   :  { %v2067_v10 = vsub.f32 1.5, %v2066_v12 }
 0xddf   :  { %v3830_v16 = vadd.f32 %v2102_v25, %v2098_v20 }
 0xde0   :  { %v2068_v19 = vmul.f32 %v2861_v17, %v2067_v10 }
 0xde2   :  { %v2072_v32 = vsel %vm2071_vm9, %v2861_v17, %v2068_v19 }
 0xde3   :  { %v2094_v51 = vmul.f32 %v2072_v32, %v2026_v1 }
 0xde5   :  { %v2099_v22 = vmul.f32 %v2097_v15, %v2094_v51 }
 0xde7   :  { %v3832_v52 = vadd.f32 %v2102_v25, %v2099_v22 }
 0xde9   :  { %v2107_v21 = vpack.c.bf16 %v3832_v52, %v3830_v16 }
 0xdeb   :  { %2510 = vmatmul.msk.bf16.vlgmr.msrb.gmra.mxu1 %vm146_vm0, %v2107_v21 }
 0xdf8   :  { %v2041_v31 = vpop.xlane.xlu0 %2040 }
 0xdf9   :  { %v2047_v37 = vmul.f32 %v2041_v31, %v3422_v29 }
 0xdfb   :  { %v2051_v38 = vadd.f32 1e-05, %v2047_v37 }
 0xdfd   :  { %2862 = vrsqrt.f32 %v2051_v38  ;;  %vm2079_vm11 = vweird.f32 %v2051_v38 }
 0xe00   :  { %v2044_v28 = vpop.xlane.xlu1 %2043 }
 0xe01   :  { %v2048_v56 = vmul.f32 %v2044_v28, %v3422_v29 }
 0xe03   :  { %v2863_v40 = vpop.eup %2862  ;;  %v2052_v4 = vadd.f32 1e-05, %v2048_v56 }
 0xe04   :  { %v2074_v18 = vmul.f32 %v2863_v40, %v2051_v38  ;;  %vm2080_vm10 = vweird.f32 %v2863_v40 }
 0xe05   :  { %2864 = vrsqrt.f32 %v2052_v4  ;;  %vm2081_vm12 = vmor %vm2079_vm11, %vm2080_vm10  ;;  %vm2089_vm14 = vweird.f32 %v2052_v4 }
 0xe06   :  { %v2075_v41 = vmul.f32 %v2863_v40, %v2074_v18 }
 0xe08   :  { %v2076_v43 = vmul.f32 0.5, %v2075_v41 }
 0xe0a   :  { %v2077_v45 = vsub.f32 1.5, %v2076_v43 }
 0xe0b   :  { %v2865_v23 = vpop.eup %2864 }
 0xe0c   :  { %v2078_v44 = vmul.f32 %v2863_v40, %v2077_v45  ;;  %v2084_v42 = vmul.f32 %v2865_v23, %v2052_v4  ;;  %vm2090_vm13 = vweird.f32 %v2865_v23 }
 0xe0d   :  { %vm2091_vm15 = vmor %vm2089_vm14, %vm2090_vm13 }
 0xe0e   :  { %v2085_v46 = vmul.f32 %v2865_v23, %v2084_v42  ;;  %v2082_v35 = vsel %vm2081_vm12, %v2863_v40, %v2078_v44 }
 0xe0f   :  { %v2095_v1 = vmul.f32 %v2082_v35, %v3813_v26  ;;  %v2548_v26 = vld [vmem:[%s3904_s6 + $0x30] sm:$0xff] }
 0xe10   :  { %v2086_v48 = vmul.f32 0.5, %v2085_v46  ;;  %2189 = vmatpush.bf16.msrb.mxu3 %v2548_v26 }
 0xe11   :  { %v2100_v58 = vmul.f32 %v2097_v15, %v2095_v1 }
 0xe12   :  { %v2087_v63 = vsub.f32 1.5, %v2086_v48 }
 0xe13   :  { %v2105_v7 = vadd.f32 %v2102_v25, %v2100_v58 }
 0xe14   :  { %v2088_v53 = vmul.f32 %v2865_v23, %v2087_v63 }
 0xe16   :  { %v2092_v6 = vsel %vm2091_vm15, %v2865_v23, %v2088_v53 }
 0xe17   :  { %v2096_v14 = vmul.f32 %v2092_v6, %v3819_v60  ;;  %v2547_v60 = vld [vmem:[%s3904_s6 + $0x28] sm:$0xff]  ;;  %s3029_s6 = smov [#allocation10]  }
 0xe18   :  { %2190 = vmatpush.bf16.msrb.mxu3 %v2547_v60  ;;  %s2313_s11 = sshll.u32 %s3029_s6, 4  ;;  %s2314_s11 = int_to_ptr.vmem [resolvable:$true] %s2313_s11 }
 0xe19   :  { %v2101_v27 = vmul.f32 %v2097_v15, %v2096_v14 }
 0xe1b   :  { %v2106_v24 = vadd.f32 %v2102_v25, %v2101_v27 }
 0xe1c   :  { %2191 = vmatpush.bf16.msrb.mxu3 %v2546_v61 }
 0xe1d   :  { %v2108_v59 = vpack.c.bf16 %v2106_v24, %v2105_v7 }
 0xe1f   :  { %2511 = vmatmul.msk.bf16.gmra.mxu1 %vm146_vm0, %v2108_v59 }
 0xe68   :  { %v2137_v54 = vpop.f32.mrf.mxu1 }
 0xe69   :  { %v2138_v0 = vadd.f32 %v2137_v54, %v2109_v13 }
 0xe6b   :  { %v2147_v34 = vmax.f32 %v2138_v0, 0.0 }
 0xe70   :  { %v2139_v57 = vpop.f32.mrf.mxu1 }
 0xe71   :  { %v2140_v55 = vadd.f32 %v2139_v57, %v2109_v13 }
 0xe73   :  { %v2148_v62 = vmax.f32 %v2140_v55, 0.0  ;;  %v2295_v55 = vperm.slane %v3826_v33, 6 }
 0xe75   :  { %v2151_v30 = vpack.c.bf16 %v2148_v62, %v2147_v34 }
 0xe77   :  { %2528 = vmatmul.msk.bf16.vlgmr.msrb.gmra.mxu3 %vm1083_vm5, %v2151_v30  ;;  %v2300_v30 = vperm.slane %v3826_v33, 7 }
 0xe9c   :  { %v2142_v49 = vpop.f32.mrf.mxu1 }
 0xe9d   :  { %v2143_v3 = vadd.f32 %v2142_v49, %v2109_v13 }
 0xe9f   :  { %v2149_v50 = vmax.f32 %v2143_v3, 0.0 }
 0xea4   :  { %v2144_v5 = vpop.f32.mrf.mxu1 }
 0xea5   :  { %v2145_v8 = vadd.f32 %v2144_v5, %v2109_v13 }
 0xea7   :  { %v2150_v17 = vmax.f32 %v2145_v8, 0.0 }
 0xea9   :  { %v2152_v2 = vpack.c.bf16 %v2150_v17, %v2149_v50 }
 0xeab   :  { %2529 = vmatmul.msk.bf16.gmra.mxu3 %vm1083_vm5, %v2152_v2 }
 0xefa   :  { %v2193_v39 = vpop.f32.mrf.mxu3 }
 0xefb   :  { %v2194_v11 = vadd.f32 %v2193_v39, %v2153_v9 }
 0xefd   :  { %v2203_v12 = vadd.f32 %v2194_v11, %v3830_v16 }
 0xeff   :  { %v2207_v10 = vsel %vm146_vm0, %v2203_v12, 0.0 }
 0xf00   :  { %2208 = vadd.xlane.f32.xlu0 %v2207_v10 }
 0xf02   :  { %v2195_v15 = vpop.f32.mrf.mxu3 }
 0xf03   :  { %v2196_v47 = vadd.f32 %v2195_v15, %v2153_v9 }
 0xf05   :  { %v2204_v19 = vadd.f32 %v2196_v47, %v3832_v52 }
 0xf07   :  { %v2210_v32 = vsel %vm146_vm0, %v2204_v19, 0.0 }
 0xf08   :  { %2211 = vadd.xlane.f32.xlu2 %v2210_v32 }
 0xf2e   :  { %v2198_v25 = vpop.f32.mrf.mxu3 }
 0xf2f   :  { %v2199_v20 = vadd.f32 %v2198_v25, %v2153_v9 }
 0xf31   :  { %v2205_v51 = vadd.f32 %v2199_v20, %v2105_v7 }
 0xf33   :  { %v2213_v22 = vsel %vm146_vm0, %v2205_v51, 0.0 }
 0xf34   :  { %2214 = vadd.xlane.f32.xlu1 %v2213_v22 }
 0xf36   :  { %v2200_v21 = vpop.f32.mrf.mxu3 }
 0xf37   :  { %v2201_v31 = vadd.f32 %v2200_v21, %v2153_v9 }
 0xf39   :  { %v2206_v37 = vadd.f32 %v2201_v31, %v2106_v24 }
 0xf3b   :  { %v2216_v16 = vsel %vm146_vm0, %v2206_v37, 0.0 }
 0xf3c   :  { %2217 = vadd.xlane.f32.xlu0 %v2216_v16 }
 0xf73   :  { %v2209_v38 = vpop.xlane.xlu0 %2208 }
 0xf74   :  { %v2219_v28 = vmul.f32 %v2209_v38, %v3422_v29 }
 0xf76   :  { %v2223_v56 = vsub.f32 %v2203_v12, %v2219_v28 }
 0xf78   :  { %v2227_v52 = vmul.f32 %v2223_v56, %v2223_v56 }
 0xf7a   :  { %v2231_v40 = vsel %vm146_vm0, %v2227_v52, 0.0 }
 0xf7b   :  { %v2212_v4 = vpop.xlane.xlu2 %2211  ;;  %2232 = vadd.xlane.f32.xlu2 %v2231_v40 }
 0xf7c   :  { %v2220_v18 = vmul.f32 %v2212_v4, %v3422_v29 }
 0xf7e   :  { %v2224_v41 = vsub.f32 %v2204_v19, %v2220_v18 }
 0xf80   :  { %v2228_v43 = vmul.f32 %v2224_v41, %v2224_v41 }
 0xf82   :  { %v2234_v45 = vsel %vm146_vm0, %v2228_v43, 0.0 }
 0xf83   :  { %2235 = vadd.xlane.f32.xlu1 %v2234_v45 }
 0xfa7   :  { %v2215_v23 = vpop.xlane.xlu1 %2214 }
 0xfa8   :  { %v2221_v44 = vmul.f32 %v2215_v23, %v3422_v29 }
 0xfaa   :  { %v3869_v42 = vsub.f32 %v2205_v51, %v2221_v44 }
 0xfac   :  { %v2229_v46 = vmul.f32 %v3869_v42, %v3869_v42 }
 0xfae   :  { %v2237_v35 = vsel %vm146_vm0, %v2229_v46, 0.0 }
 0xfaf   :  { %2238 = vadd.xlane.f32.xlu0 %v2237_v35  ;;  %v2218_v48 = vpop.xlane.xlu0 %2217 }
 0xfb0   :  { %v2222_v63 = vmul.f32 %v2218_v48, %v3422_v29 }
 0xfb2   :  { %v3875_v1 = vsub.f32 %v2206_v37, %v2222_v63 }
 0xfb4   :  { %v2230_v53 = vmul.f32 %v3875_v1, %v3875_v1 }
 0xfb6   :  { %v2240_v6 = vsel %vm146_vm0, %v2230_v53, 0.0 }
 0xfb7   :  { %2241 = vadd.xlane.f32.xlu2 %v2240_v6 }
 0xfee   :  { %v2233_v14 = vpop.xlane.xlu2 %2232 }
 0xfef   :  { %v2243_v58 = vmul.f32 %v2233_v14, %v3422_v29 }
 0xff1   :  { %v2247_v27 = vadd.f32 1e-05, %v2243_v58 }
 0xff3   :  { %2866 = vrsqrt.f32 %v2247_v27  ;;  %vm2257_vm4 = vweird.f32 %v2247_v27 }
 0xff6   :  { %v2236_v7 = vpop.xlane.xlu1 %2235 }
 0xff7   :  { %v2244_v24 = vmul.f32 %v2236_v7, %v3422_v29 }
 0xff9   :  { %v2867_v59 = vpop.eup %2866  ;;  %v2248_v36 = vadd.f32 1e-05, %v2244_v24 }
 0xffa   :  { %v2252_v26 = vmul.f32 %v2867_v59, %v2247_v27  ;;  %vm2258_vm5 = vweird.f32 %v2867_v59 }
 0xffb   :  { %2868 = vrsqrt.f32 %v2248_v36  ;;  %vm2259_vm6 = vmor %vm2257_vm4, %vm2258_vm5  ;;  %vm2267_vm2 = vweird.f32 %v2248_v36 }
 0xffc   :  { %v2253_v60 = vmul.f32 %v2867_v59, %v2252_v26 }
 0xffe   :  { %v2254_v61 = vmul.f32 0.5, %v2253_v60 }
0x1000   :  { %v2255_v54 = vsub.f32 1.5, %v2254_v61 }
0x1001   :  { %v2869_v13 = vpop.eup %2868 }
0x1002   :  { %v2256_v0 = vmul.f32 %v2867_v59, %v2255_v54  ;;  %v2262_v57 = vmul.f32 %v2869_v13, %v2248_v36  ;;  %vm2268_vm1 = vweird.f32 %v2869_v13 }
0x1003   :  { %vm2269_vm3 = vmor %vm2267_vm2, %vm2268_vm1 }
0x1004   :  { %v2260_v34 = vsel %vm2259_vm6, %v2867_v59, %v2256_v0  ;;  %v2263_v62 = vmul.f32 %v2869_v13, %v2262_v57 }
0x1005   :  { %v2291_v49 = vmul.f32 %v2260_v34, %v2223_v56 }
0x1006   :  { %v2264_v3 = vmul.f32 0.5, %v2263_v62 }
0x1007   :  { %v2296_v5 = vmul.f32 %v2295_v55, %v2291_v49 }
0x1008   :  { %v2265_v8 = vsub.f32 1.5, %v2264_v3 }
0x1009   :  { %v2301_v50 = vadd.f32 %v2300_v30, %v2296_v5 }
0x100a   :  { %v2266_v17 = vmul.f32 %v2869_v13, %v2265_v8 }
0x100b   :  { %2305 = vst.msk [vmem:[#allocation10] sm:$0xff] %vm146_vm0, %v2301_v50 }
0x100c   :  { %v2270_v2 = vsel %vm2269_vm3, %v2869_v13, %v2266_v17 }
0x100d   :  { %v2292_v9 = vmul.f32 %v2270_v2, %v2224_v41 }
0x100f   :  { %v2297_v39 = vmul.f32 %v2295_v55, %v2292_v9 }
0x1011   :  { %v2302_v11 = vadd.f32 %v2300_v30, %v2297_v39 }
0x1013   :  { %2306 = vst.msk [vmem:[#allocation10 + $0x8] sm:$0xff] %vm146_vm0, %v2302_v11 }
0x1022   :  { %v2239_v12 = vpop.xlane.xlu0 %2238 }
0x1023   :  { %v2245_v33 = vmul.f32 %v2239_v12, %v3422_v29 }
0x1025   :  { %v2249_v10 = vadd.f32 1e-05, %v2245_v33 }
0x1027   :  { %2870 = vrsqrt.f32 %v2249_v10  ;;  %vm2277_vm8 = vweird.f32 %v2249_v10 }
0x102a   :  { %v2242_v15 = vpop.xlane.xlu2 %2241 }
0x102b   :  { %v2246_v47 = vmul.f32 %v2242_v15, %v3422_v29 }
0x102d   :  { %v2871_v19 = vpop.eup %2870  ;;  %v2250_v32 = vadd.f32 1e-05, %v2246_v47 }
0x102e   :  { %v2272_v25 = vmul.f32 %v2871_v19, %v2249_v10  ;;  %vm2278_vm7 = vweird.f32 %v2871_v19 }
0x102f   :  { %2872 = vrsqrt.f32 %v2250_v32  ;;  %vm2279_vm9 = vmor %vm2277_vm8, %vm2278_vm7  ;;  %vm2287_vm11 = vweird.f32 %v2250_v32 }
0x1030   :  { %v2273_v20 = vmul.f32 %v2871_v19, %v2272_v25 }
0x1032   :  { %v2274_v51 = vmul.f32 0.5, %v2273_v20 }
0x1034   :  { %v2275_v22 = vsub.f32 1.5, %v2274_v51 }
0x1035   :  { %v2873_v21 = vpop.eup %2872 }
0x1036   :  { %v2276_v31 = vmul.f32 %v2871_v19, %v2275_v22  ;;  %v2282_v37 = vmul.f32 %v2873_v21, %v2250_v32  ;;  %vm2288_vm10 = vweird.f32 %v2873_v21 }
0x1037   :  { %vm2289_vm12 = vmor %vm2287_vm11, %vm2288_vm10 }
0x1038   :  { %v2280_v16 = vsel %vm2279_vm9, %v2871_v19, %v2276_v31  ;;  %v2283_v38 = vmul.f32 %v2873_v21, %v2282_v37 }
0x1039   :  { %v2293_v28 = vmul.f32 %v2280_v16, %v3869_v42 }
0x103a   :  { %v2284_v56 = vmul.f32 0.5, %v2283_v38 }
0x103b   :  { %v2298_v52 = vmul.f32 %v2295_v55, %v2293_v28 }
0x103c   :  { %v2285_v29 = vsub.f32 1.5, %v2284_v56 }
0x103d   :  { %v2303_v40 = vadd.f32 %v2300_v30, %v2298_v52 }
0x103e   :  { %v2286_v4 = vmul.f32 %v2873_v21, %v2285_v29 }
0x103f   :  { %2307 = vst.msk [vmem:[#allocation10 + $0x10] sm:$0xff] %vm146_vm0, %v2303_v40 }
0x1040   :  { %v2290_v18 = vsel %vm2289_vm12, %v2873_v21, %v2286_v4 }
0x1041   :  { %v2294_v41 = vmul.f32 %v2290_v18, %v3875_v1 }
0x1043   :  { %v2299_v43 = vmul.f32 %v2295_v55, %v2294_v41 }
0x1045   :  { %v2304_v45 = vadd.f32 %v2300_v30, %v2299_v43 }
0x1047   :  { %2308 = vst.msk [vmem:[#allocation10 + $0x18] sm:$0xff] %vm146_vm0, %v2304_v45 }
0x1048   :  { %2321 = dma.vmem_to_hbm [thread:$0]  %s2314_s11, 512, %s2316_s15, [#allocation4], %s3014_s5, %s3014_s5, %s3015_s25  }
0x1049   :  { %3006 = dma.done.wait [#allocation4], 512  }
0x104a   :  { %3007 = vsyncadd [#allocation4], 4294966784 }
0x104b   :  { %2326 = vsyncpa [#allocation3], 1 }
0x104c   :  { %2327 = vsyncpa [#allocation6], 1 }
0x104d   :  { %2328 = vsyncpa [#allocation9], 1 }
0x104e   :  { %2329 = vsyncpa [#allocation4], 1 }

</bundles_post_ra>
